<compile_context>
chip_gen: v7x
topology: tpu7x:2x2x1
jax: 0.10.0
libtpu: 0.0.40
codegen_flags: <defaults>
</compile_context>

<pallas_src>
import functools

import jax
import jax.numpy as jnp
from jax.experimental import pallas as pl
from jax.experimental.pallas import tpu as pltpu

COMPUTE_DTYPE = jnp.bfloat16
VMEM_LIMIT = 32 * 1024 * 1024


def _round_up(x, m):
    return (x + m - 1) // m * m


# ---------------------------------------------------------------------------
# 3x3 conv (padding=1) + fused ReLU + optional fused MaxPool2d(2, 2)
# ---------------------------------------------------------------------------
def _conv3x3_kernel(x_ref, w_ref, b_ref, o_ref, scr_ref, *, Wp, W, th, relu, pool):
    """x_ref: (1, Hp*Wp, 3*Cin)  kx-folded, row-flattened zero-padded image
    w_ref: (3, 3*Cin, Cout)      one (3*Cin, Cout) matrix per ky
    b_ref: (1, Cout) float32
    o_ref: (1, th, W, Cout) or (1, th//2, W//2, Cout) when pool=True
    scr_ref: (th, Wp, Cout) float32 VMEM scratch."""
    t = pl.program_id(1)
    n_rows = th * Wp
    cout = o_ref.shape[-1]

    acc = jnp.zeros((n_rows, cout), jnp.float32)
    for ky in range(3):
        # Wp % 8 == 0 and n_rows % 8 == 0 -> sublane-aligned slice starts.
        start = pl.multiple_of(t * n_rows + ky * Wp, 8)
        xs = x_ref[0, pl.ds(start, n_rows), :]
        acc = acc + jnp.dot(xs, w_ref[ky], preferred_element_type=jnp.float32)
    acc = acc + b_ref[...]
    if relu:
        acc = jnp.maximum(acc, 0.0)

    # stage the (th, Wp, Cout) tile in VMEM so the valid-width extraction and
    # the pool can use simple / strided ref reads.
    scr_ref[...] = acc.reshape(th, Wp, cout)

    if pool:
        wo = W // 2
        w_even = scr_ref[:, pl.ds(0, wo, stride=2), :]
        w_odd = scr_ref[:, pl.ds(1, wo, stride=2), :]
        pw = jnp.maximum(w_even, w_odd)               # (th, wo, cout)  W-pool
        pw = pw.reshape(th // 2, 2, wo, cout)
        out = jnp.maximum(pw[:, 0], pw[:, 1])         # (th//2, wo, cout)  H-pool
        o_ref[0] = out.astype(o_ref.dtype)
    else:
        o_ref[0] = scr_ref[:, :W, :].astype(o_ref.dtype)


def conv3x3(x_nhwc, w_oihw, b, *, relu, pool=False, out_dtype=COMPUTE_DTYPE):
    N, H, W, Cin = x_nhwc.shape
    Cout = w_oihw.shape[0]
    Hp = H + 2
    Wp = _round_up(W + 2, 8)          # padded width, sublane-aligned

    # H tiling: more grid steps for pipelining / megacore; must divide H and be
    # even when the 2x2 pool is fused.
    if H % 8 == 0:
        th = 8
    elif H % 4 == 0:
        th = 4
    else:
        th = H
    if pool:
        assert th % 2 == 0 and W % 2 == 0
    n_tiles = H // th

    # OIHW -> (ky, kx, Cin, Cout) -> (3, 3*Cin, Cout); kx folded into K.
    w_taps = jnp.transpose(w_oihw, (2, 3, 1, 0)).reshape(3, 3 * Cin, Cout)
    w_taps = w_taps.astype(COMPUTE_DTYPE)
    b2 = b.reshape(1, Cout).astype(jnp.float32)

    x = x_nhwc.astype(COMPUTE_DTYPE)
    x_pad = jnp.pad(x, ((0, 0), (1, 1), (1, Wp - W - 1), (0, 0)))   # (N,Hp,Wp,Cin)
    x_flat = x_pad.reshape(N, Hp * Wp, Cin)
    x_flat = jnp.pad(x_flat, ((0, 0), (0, 2), (0, 0)))
    # kx-folded input: channel layout [kx=0 | kx=1 | kx=2] matches w_taps rows.
    x_cat = jnp.concatenate([x_flat[:, k:k + Hp * Wp, :] for k in range(3)],
                            axis=-1)                                 # (N,Hp*Wp,3Cin)

    if pool:
        out_shape = jax.ShapeDtypeStruct((N, H // 2, W // 2, Cout), out_dtype)
        out_spec = pl.BlockSpec((1, th // 2, W // 2, Cout),
                                lambda n, t: (n, t, 0, 0))
    else:
        out_shape = jax.ShapeDtypeStruct((N, H, W, Cout), out_dtype)
        out_spec = pl.BlockSpec((1, th, W, Cout), lambda n, t: (n, t, 0, 0))

    kernel = functools.partial(_conv3x3_kernel, Wp=Wp, W=W, th=th,
                               relu=relu, pool=pool)
    return pl.pallas_call(
        kernel,
        out_shape=out_shape,
        grid=(N, n_tiles),
        in_specs=[
            pl.BlockSpec((1, Hp * Wp, 3 * Cin), lambda n, t: (n, 0, 0)),
            pl.BlockSpec((3, 3 * Cin, Cout), lambda n, t: (0, 0, 0)),
            pl.BlockSpec((1, Cout), lambda n, t: (0, 0)),
        ],
        out_specs=out_spec,
        scratch_shapes=[pltpu.VMEM((th, Wp, Cout), jnp.float32)],
        compiler_params=pltpu.CompilerParams(
            dimension_semantics=("parallel", "parallel"),
            vmem_limit_bytes=VMEM_LIMIT),
    )(x_cat, w_taps, b2)


# ---------------------------------------------------------------------------
# ConvTranspose2d(kernel_size=2, stride=2): one wide MXU matmul per row,
# output layout chosen so the 2x2 interleave is a pure reshape in glue.
# ---------------------------------------------------------------------------
def _deconv2x2_kernel(x_ref, w_ref, b_ref, o_ref, *, Cout):
    """x_ref: (1, 1, W, Cin); w_ref: (Cin, 4*Cout) cols ordered (dy, dx, c);
    b_ref: (1, 4*Cout); o_ref: (1, 1, 2, W, 2*Cout)."""
    y = jnp.dot(x_ref[0, 0], w_ref[...], preferred_element_type=jnp.float32)
    y = y + b_ref[...]
    o_ref[0, 0, 0] = y[:, :2 * Cout].astype(o_ref.dtype)   # dy = 0
    o_ref[0, 0, 1] = y[:, 2 * Cout:].astype(o_ref.dtype)   # dy = 1


def conv_transpose2x2(x_nhwc, w_iohw, b, *, out_dtype=COMPUTE_DTYPE):
    N, H, W, Cin = x_nhwc.shape
    Cout = w_iohw.shape[1]
    # (Cin, Cout, 2, 2) -> (Cin, dy, dx, Cout) -> (Cin, 4*Cout)
    w_cat = jnp.transpose(w_iohw, (0, 2, 3, 1)).reshape(Cin, 4 * Cout)
    w_cat = w_cat.astype(COMPUTE_DTYPE)
    b_cat = jnp.tile(b.astype(jnp.float32), 4).reshape(1, 4 * Cout)
    x = x_nhwc.astype(COMPUTE_DTYPE)

    kernel = functools.partial(_deconv2x2_kernel, Cout=Cout)
    out = pl.pallas_call(
        kernel,
        out_shape=jax.ShapeDtypeStruct((N, H, 2, W, 2 * Cout), out_dtype),
        grid=(N, H),
        in_specs=[
            pl.BlockSpec((1, 1, W, Cin), lambda n, h: (n, h, 0, 0)),
            pl.BlockSpec((Cin, 4 * Cout), lambda n, h: (0, 0)),
            pl.BlockSpec((1, 4 * Cout), lambda n, h: (0, 0)),
        ],
        out_specs=pl.BlockSpec((1, 1, 2, W, 2 * Cout),
                               lambda n, h: (n, h, 0, 0, 0)),
        compiler_params=pltpu.CompilerParams(
            dimension_semantics=("parallel", "parallel"),
            vmem_limit_bytes=VMEM_LIMIT),
    )(x, w_cat, b_cat)
    # (N, H, 2, W, 2*Cout) -> (N, 2H, 2W, Cout): pure reshape, no transpose.
    return out.reshape(N, 2 * H, 2 * W, Cout)


# ---------------------------------------------------------------------------
# Parameter init (deterministic, PyTorch-default-style uniform bounds)
# ---------------------------------------------------------------------------
def init_params(key, in_channels, out_channels):
    def conv_init(k, cout, cin, kh, kw):
        k1, k2 = jax.random.split(k)
        bound = 1.0 / (cin * kh * kw) ** 0.5
        w = jax.random.uniform(k1, (cout, cin, kh, kw), jnp.float32, -bound, bound)
        b = jax.random.uniform(k2, (cout,), jnp.float32, -bound, bound)
        return w, b

    keys = jax.random.split(key, 8)
    p = {}
    p["enc1"] = conv_init(keys[0], 64, in_channels, 3, 3)
    p["enc2"] = conv_init(keys[1], 64, 64, 3, 3)
    p["mid1"] = conv_init(keys[2], 128, 64, 3, 3)
    p["mid2"] = conv_init(keys[3], 128, 128, 3, 3)
    p["dec1"] = conv_init(keys[4], 64, 128, 3, 3)
    p["dec2"] = conv_init(keys[5], 64, 64, 3, 3)
    # ConvTranspose2d weight layout is (in_channels, out_channels, kH, kW)
    k1, k2 = jax.random.split(keys[6])
    bound = 1.0 / (64 * 2 * 2) ** 0.5
    wt = jax.random.uniform(k1, (64, 64, 2, 2), jnp.float32, -bound, bound)
    bt = jax.random.uniform(k2, (64,), jnp.float32, -bound, bound)
    p["up"] = (wt, bt)
    p["out"] = conv_init(keys[7], out_channels, 64, 3, 3)
    return p


# ---------------------------------------------------------------------------
# Full UNet forward (matches the PyTorch module semantics)
# ---------------------------------------------------------------------------
def unet_forward(x_nchw, params):
    x = jnp.transpose(x_nchw, (0, 2, 3, 1))          # NCHW -> NHWC
    # encoder (pool fused into enc2)
    x = conv3x3(x, *params["enc1"], relu=True)
    x = conv3x3(x, *params["enc2"], relu=True, pool=True)
    # middle (pool fused into mid2)
    x = conv3x3(x, *params["mid1"], relu=True)
    x = conv3x3(x, *params["mid2"], relu=True, pool=True)
    # decoder
    x = conv3x3(x, *params["dec1"], relu=True)
    x = conv3x3(x, *params["dec2"], relu=True)
    x = conv_transpose2x2(x, *params["up"])
    # final conv: pad Cout up to 128 for lane-dense MXU/stores, slice after.
    w_out, b_out = params["out"]
    cout = w_out.shape[0]
    cpad = _round_up(cout, 128)
    w_pad = jnp.pad(w_out, ((0, cpad - cout), (0, 0), (0, 0), (0, 0)))
    b_pad = jnp.pad(b_out, ((0, cpad - cout),))
    x = conv3x3(x, w_pad, b_pad, relu=False, out_dtype=jnp.float32)
    x = x[..., :cout]
    return jnp.transpose(x, (0, 3, 1, 2))            # NHWC -> NCHW


if __name__ == "__main__":
    in_channels, out_channels = 4, 4
    key = jax.random.PRNGKey(0)
    kx, kp = jax.random.split(key)
    x = jax.random.normal(kx, (2, in_channels, 16, 16), jnp.float32)
    params = init_params(kp, in_channels, out_channels)

    fwd = jax.jit(lambda inp: unet_forward(inp, params))
    y = fwd(x)
    jax.block_until_ready(y)
    assert y.shape == (2, out_channels, 8, 8), y.shape
    assert bool(jnp.all(jnp.isfinite(y)))
    print("KERNEL_OK")
</pallas_src>

<mosaic_0001>
module attributes {stable_mosaic.version = 11 : i64} {
  func.func @_conv3x3_kernel(%arg0: i32, %arg1: i32, %arg2: memref<1x432x12xbf16, #tpu.memory_space<vmem>>, %arg3: memref<3x12x64xbf16, #tpu.memory_space<vmem>>, %arg4: memref<1x64xf32, #tpu.memory_space<vmem>>, %arg5: memref<1x8x16x64xbf16, #tpu.memory_space<vmem>>, %arg6: memref<8x24x64xf32, #tpu.memory_space<vmem>>) attributes {dimension_semantics = [#tpu.dimension_semantics<parallel>, #tpu.dimension_semantics<parallel>], iteration_bounds = array<i64: 2, 2>, scalar_prefetch = 0 : i64, scratch_operands = 1 : i64, tpu.core_type = #tpu.core_type<tc>, window_params = [{transform_indices = @transform_0, window_bounds = array<i64: 1, 432, 12>}, {pipeline_mode = #tpu.pipeline_mode<synchronous>, transform_indices = @transform_1, window_bounds = array<i64: 3, 12, 64>}, {pipeline_mode = #tpu.pipeline_mode<synchronous>, transform_indices = @transform_2, window_bounds = array<i64: 1, 64>}, {transform_indices = @transform_3, window_bounds = array<i64: 1, 8, 16, 64>}]} {
    %cst = arith.constant 0.000000e+00 : f32
    %0 = vector.broadcast %cst : f32 to vector<192x64xf32>
    %c192_i32 = arith.constant 192 : i32
    %1 = arith.muli %arg1, %c192_i32 : i32
    %c0_i32 = arith.constant 0 : i32
    %2 = arith.addi %1, %c0_i32 : i32
    %3 = tpu.assume_multiple %2, 8 : i32
    %c0 = arith.constant 0 : index
    %4 = arith.index_cast %3 : i32 to index
    %c0_0 = arith.constant 0 : index
    %5 = vector.load %arg2[%c0, %4, %c0_0] : memref<1x432x12xbf16, #tpu.memory_space<vmem>>, vector<1x192x12xbf16>
    %6 = vector.shape_cast %5 : vector<1x192x12xbf16> to vector<192x12xbf16>
    %c0_1 = arith.constant 0 : index
    %c0_2 = arith.constant 0 : index
    %c0_3 = arith.constant 0 : index
    %7 = vector.load %arg3[%c0_1, %c0_2, %c0_3] : memref<3x12x64xbf16, #tpu.memory_space<vmem>>, vector<1x12x64xbf16>
    %8 = vector.shape_cast %7 : vector<1x12x64xbf16> to vector<12x64xbf16>
    %cst_4 = arith.constant dense<0.000000e+00> : vector<192x64xf32>
    %9 = tpu.matmul %6, %8, %cst_4 {dimension_numbers = #tpu.dot_dimension_numbers<[1], [0], [0], [1], [0, 0, 1, 1], [], []>} : vector<192x12xbf16>, vector<12x64xbf16>, vector<192x64xf32> -> vector<192x64xf32>
    %10 = arith.addf %0, %9 : vector<192x64xf32>
    %c192_i32_5 = arith.constant 192 : i32
    %11 = arith.muli %arg1, %c192_i32_5 : i32
    %c24_i32 = arith.constant 24 : i32
    %12 = arith.addi %11, %c24_i32 : i32
    %13 = tpu.assume_multiple %12, 8 : i32
    %c0_6 = arith.constant 0 : index
    %14 = arith.index_cast %13 : i32 to index
    %c0_7 = arith.constant 0 : index
    %15 = vector.load %arg2[%c0_6, %14, %c0_7] : memref<1x432x12xbf16, #tpu.memory_space<vmem>>, vector<1x192x12xbf16>
    %16 = vector.shape_cast %15 : vector<1x192x12xbf16> to vector<192x12xbf16>
    %c1 = arith.constant 1 : index
    %c0_8 = arith.constant 0 : index
    %c0_9 = arith.constant 0 : index
    %17 = vector.load %arg3[%c1, %c0_8, %c0_9] : memref<3x12x64xbf16, #tpu.memory_space<vmem>>, vector<1x12x64xbf16>
    %18 = vector.shape_cast %17 : vector<1x12x64xbf16> to vector<12x64xbf16>
    %cst_10 = arith.constant dense<0.000000e+00> : vector<192x64xf32>
    %19 = tpu.matmul %16, %18, %cst_10 {dimension_numbers = #tpu.dot_dimension_numbers<[1], [0], [0], [1], [0, 0, 1, 1], [], []>} : vector<192x12xbf16>, vector<12x64xbf16>, vector<192x64xf32> -> vector<192x64xf32>
    %20 = arith.addf %10, %19 : vector<192x64xf32>
    %c192_i32_11 = arith.constant 192 : i32
    %21 = arith.muli %arg1, %c192_i32_11 : i32
    %c48_i32 = arith.constant 48 : i32
    %22 = arith.addi %21, %c48_i32 : i32
    %23 = tpu.assume_multiple %22, 8 : i32
    %c0_12 = arith.constant 0 : index
    %24 = arith.index_cast %23 : i32 to index
    %c0_13 = arith.constant 0 : index
    %25 = vector.load %arg2[%c0_12, %24, %c0_13] : memref<1x432x12xbf16, #tpu.memory_space<vmem>>, vector<1x192x12xbf16>
    %26 = vector.shape_cast %25 : vector<1x192x12xbf16> to vector<192x12xbf16>
    %c2 = arith.constant 2 : index
    %c0_14 = arith.constant 0 : index
    %c0_15 = arith.constant 0 : index
    %27 = vector.load %arg3[%c2, %c0_14, %c0_15] : memref<3x12x64xbf16, #tpu.memory_space<vmem>>, vector<1x12x64xbf16>
    %28 = vector.shape_cast %27 : vector<1x12x64xbf16> to vector<12x64xbf16>
    %cst_16 = arith.constant dense<0.000000e+00> : vector<192x64xf32>
    %29 = tpu.matmul %26, %28, %cst_16 {dimension_numbers = #tpu.dot_dimension_numbers<[1], [0], [0], [1], [0, 0, 1, 1], [], []>} : vector<192x12xbf16>, vector<12x64xbf16>, vector<192x64xf32> -> vector<192x64xf32>
    %30 = arith.addf %20, %29 : vector<192x64xf32>
    %c0_17 = arith.constant 0 : index
    %c0_18 = arith.constant 0 : index
    %31 = vector.load %arg4[%c0_17, %c0_18] : memref<1x64xf32, #tpu.memory_space<vmem>>, vector<1x64xf32>
    %32 = vector.broadcast %31 : vector<1x64xf32> to vector<192x64xf32>
    %33 = arith.addf %30, %32 : vector<192x64xf32>
    %cst_19 = arith.constant 0.000000e+00 : f32
    %34 = vector.broadcast %cst_19 : f32 to vector<192x64xf32>
    %35 = arith.maximumf %33, %34 : vector<192x64xf32>
    %36 = vector.shape_cast %35 : vector<192x64xf32> to vector<8x24x64xf32>
    %c0_20 = arith.constant 0 : index
    %c0_21 = arith.constant 0 : index
    %c0_22 = arith.constant 0 : index
    %37 = vector.load %arg6[%c0_20, %c0_21, %c0_22] : memref<8x24x64xf32, #tpu.memory_space<vmem>>, vector<8x24x64xf32>
    tpu.vector_store %arg6[%c0_20, %c0_21, %c0_22], %36 {strides = array<i32>} : memref<8x24x64xf32, #tpu.memory_space<vmem>>, vector<8x24x64xf32>,
    %c0_23 = arith.constant 0 : index
    %c0_24 = arith.constant 0 : index
    %c0_25 = arith.constant 0 : index
    %38 = vector.load %arg6[%c0_23, %c0_24, %c0_25] : memref<8x24x64xf32, #tpu.memory_space<vmem>>, vector<8x16x64xf32>
    %39 = arith.truncf %38 : vector<8x16x64xf32> to vector<8x16x64xbf16>
    %c0_26 = arith.constant 0 : index
    %c0_27 = arith.constant 0 : index
    %c0_28 = arith.constant 0 : index
    %c0_29 = arith.constant 0 : index
    %40 = vector.load %arg5[%c0_26, %c0_27, %c0_28, %c0_29] : memref<1x8x16x64xbf16, #tpu.memory_space<vmem>>, vector<1x8x16x64xbf16>
    %41 = vector.shape_cast %40 : vector<1x8x16x64xbf16> to vector<8x16x64xbf16>
    %42 = vector.shape_cast %39 : vector<8x16x64xbf16> to vector<1x8x16x64xbf16>
    tpu.vector_store %arg5[%c0_26, %c0_27, %c0_28, %c0_29], %42 {strides = array<i32>} : memref<1x8x16x64xbf16, #tpu.memory_space<vmem>>, vector<1x8x16x64xbf16>,
    return
  }
  func.func @transform_0(%arg0: i32, %arg1: i32) -> (i32, i32, i32) {
    %c0_i32 = arith.constant 0 : i32
    %c0_i32_0 = arith.constant 0 : i32
    %c0_i32_1 = arith.constant 0 : i32
    return %arg0, %c0_i32, %c0_i32_0 : i32, i32, i32
  }
  func.func @transform_1(%arg0: i32, %arg1: i32) -> (i32, i32, i32) {
    %c0_i32 = arith.constant 0 : i32
    %c0_i32_0 = arith.constant 0 : i32
    %c0_i32_1 = arith.constant 0 : i32
    %c0_i32_2 = arith.constant 0 : i32
    return %c0_i32, %c0_i32_0, %c0_i32_1 : i32, i32, i32
  }
  func.func @transform_2(%arg0: i32, %arg1: i32) -> (i32, i32) {
    %c0_i32 = arith.constant 0 : i32
    %c0_i32_0 = arith.constant 0 : i32
    %c0_i32_1 = arith.constant 0 : i32
    return %c0_i32, %c0_i32_0 : i32, i32
  }
  func.func @transform_3(%arg0: i32, %arg1: i32) -> (i32, i32, i32, i32) {
    %c0_i32 = arith.constant 0 : i32
    %c0_i32_0 = arith.constant 0 : i32
    %c0_i32_1 = arith.constant 0 : i32
    return %arg0, %arg1, %c0_i32, %c0_i32_0 : i32, i32, i32, i32
  }
}

module attributes {stable_mosaic.version = 11 : i64} {
  func.func @_conv3x3_kernel(%arg0: i32, %arg1: i32, %arg2: memref<1x432x192xbf16, #tpu.memory_space<vmem>>, %arg3: memref<3x192x64xbf16, #tpu.memory_space<vmem>>, %arg4: memref<1x64xf32, #tpu.memory_space<vmem>>, %arg5: memref<1x4x8x64xbf16, #tpu.memory_space<vmem>>, %arg6: memref<8x24x64xf32, #tpu.memory_space<vmem>>) attributes {dimension_semantics = [#tpu.dimension_semantics<parallel>, #tpu.dimension_semantics<parallel>], iteration_bounds = array<i64: 2, 2>, scalar_prefetch = 0 : i64, scratch_operands = 1 : i64, tpu.core_type = #tpu.core_type<tc>, window_params = [{transform_indices = @transform_0, window_bounds = array<i64: 1, 432, 192>}, {pipeline_mode = #tpu.pipeline_mode<synchronous>, transform_indices = @transform_1, window_bounds = array<i64: 3, 192, 64>}, {pipeline_mode = #tpu.pipeline_mode<synchronous>, transform_indices = @transform_2, window_bounds = array<i64: 1, 64>}, {transform_indices = @transform_3, window_bounds = array<i64: 1, 4, 8, 64>}]} {
    %cst = arith.constant 0.000000e+00 : f32
    %0 = vector.broadcast %cst : f32 to vector<192x64xf32>
    %c192_i32 = arith.constant 192 : i32
    %1 = arith.muli %arg1, %c192_i32 : i32
    %c0_i32 = arith.constant 0 : i32
    %2 = arith.addi %1, %c0_i32 : i32
    %3 = tpu.assume_multiple %2, 8 : i32
    %c0 = arith.constant 0 : index
    %4 = arith.index_cast %3 : i32 to index
    %c0_0 = arith.constant 0 : index
    %5 = vector.load %arg2[%c0, %4, %c0_0] : memref<1x432x192xbf16, #tpu.memory_space<vmem>>, vector<1x192x192xbf16>
    %6 = vector.shape_cast %5 : vector<1x192x192xbf16> to vector<192x192xbf16>
    %c0_1 = arith.constant 0 : index
    %c0_2 = arith.constant 0 : index
    %c0_3 = arith.constant 0 : index
    %7 = vector.load %arg3[%c0_1, %c0_2, %c0_3] : memref<3x192x64xbf16, #tpu.memory_space<vmem>>, vector<1x192x64xbf16>
    %8 = vector.shape_cast %7 : vector<1x192x64xbf16> to vector<192x64xbf16>
    %cst_4 = arith.constant dense<0.000000e+00> : vector<192x64xf32>
    %9 = tpu.matmul %6, %8, %cst_4 {dimension_numbers = #tpu.dot_dimension_numbers<[1], [0], [0], [1], [0, 0, 1, 1], [], []>} : vector<192x192xbf16>, vector<192x64xbf16>, vector<192x64xf32> -> vector<192x64xf32>
    %10 = arith.addf %0, %9 : vector<192x64xf32>
    %c192_i32_5 = arith.constant 192 : i32
    %11 = arith.muli %arg1, %c192_i32_5 : i32
    %c24_i32 = arith.constant 24 : i32
    %12 = arith.addi %11, %c24_i32 : i32
    %13 = tpu.assume_multiple %12, 8 : i32
    %c0_6 = arith.constant 0 : index
    %14 = arith.index_cast %13 : i32 to index
    %c0_7 = arith.constant 0 : index
    %15 = vector.load %arg2[%c0_6, %14, %c0_7] : memref<1x432x192xbf16, #tpu.memory_space<vmem>>, vector<1x192x192xbf16>
    %16 = vector.shape_cast %15 : vector<1x192x192xbf16> to vector<192x192xbf16>
    %c1 = arith.constant 1 : index
    %c0_8 = arith.constant 0 : index
    %c0_9 = arith.constant 0 : index
    %17 = vector.load %arg3[%c1, %c0_8, %c0_9] : memref<3x192x64xbf16, #tpu.memory_space<vmem>>, vector<1x192x64xbf16>
    %18 = vector.shape_cast %17 : vector<1x192x64xbf16> to vector<192x64xbf16>
    %cst_10 = arith.constant dense<0.000000e+00> : vector<192x64xf32>
    %19 = tpu.matmul %16, %18, %cst_10 {dimension_numbers = #tpu.dot_dimension_numbers<[1], [0], [0], [1], [0, 0, 1, 1], [], []>} : vector<192x192xbf16>, vector<192x64xbf16>, vector<192x64xf32> -> vector<192x64xf32>
    %20 = arith.addf %10, %19 : vector<192x64xf32>
    %c192_i32_11 = arith.constant 192 : i32
    %21 = arith.muli %arg1, %c192_i32_11 : i32
    %c48_i32 = arith.constant 48 : i32
    %22 = arith.addi %21, %c48_i32 : i32
    %23 = tpu.assume_multiple %22, 8 : i32
    %c0_12 = arith.constant 0 : index
    %24 = arith.index_cast %23 : i32 to index
    %c0_13 = arith.constant 0 : index
    %25 = vector.load %arg2[%c0_12, %24, %c0_13] : memref<1x432x192xbf16, #tpu.memory_space<vmem>>, vector<1x192x192xbf16>
    %26 = vector.shape_cast %25 : vector<1x192x192xbf16> to vector<192x192xbf16>
    %c2 = arith.constant 2 : index
    %c0_14 = arith.constant 0 : index
    %c0_15 = arith.constant 0 : index
    %27 = vector.load %arg3[%c2, %c0_14, %c0_15] : memref<3x192x64xbf16, #tpu.memory_space<vmem>>, vector<1x192x64xbf16>
    %28 = vector.shape_cast %27 : vector<1x192x64xbf16> to vector<192x64xbf16>
    %cst_16 = arith.constant dense<0.000000e+00> : vector<192x64xf32>
    %29 = tpu.matmul %26, %28, %cst_16 {dimension_numbers = #tpu.dot_dimension_numbers<[1], [0], [0], [1], [0, 0, 1, 1], [], []>} : vector<192x192xbf16>, vector<192x64xbf16>, vector<192x64xf32> -> vector<192x64xf32>
    %30 = arith.addf %20, %29 : vector<192x64xf32>
    %c0_17 = arith.constant 0 : index
    %c0_18 = arith.constant 0 : index
    %31 = vector.load %arg4[%c0_17, %c0_18] : memref<1x64xf32, #tpu.memory_space<vmem>>, vector<1x64xf32>
    %32 = vector.broadcast %31 : vector<1x64xf32> to vector<192x64xf32>
    %33 = arith.addf %30, %32 : vector<192x64xf32>
    %cst_19 = arith.constant 0.000000e+00 : f32
    %34 = vector.broadcast %cst_19 : f32 to vector<192x64xf32>
    %35 = arith.maximumf %33, %34 : vector<192x64xf32>
    %36 = vector.shape_cast %35 : vector<192x64xf32> to vector<8x24x64xf32>
    %c0_20 = arith.constant 0 : index
    %c0_21 = arith.constant 0 : index
    %c0_22 = arith.constant 0 : index
    %37 = vector.load %arg6[%c0_20, %c0_21, %c0_22] : memref<8x24x64xf32, #tpu.memory_space<vmem>>, vector<8x24x64xf32>
    tpu.vector_store %arg6[%c0_20, %c0_21, %c0_22], %36 {strides = array<i32>} : memref<8x24x64xf32, #tpu.memory_space<vmem>>, vector<8x24x64xf32>,
    %c0_23 = arith.constant 0 : index
    %c0_24 = arith.constant 0 : index
    %c0_25 = arith.constant 0 : index
    %38 = tpu.strided_load %arg6[%c0_23, %c0_24, %c0_25] {strides = array<i32: 1, 2, 1>} : memref<8x24x64xf32, #tpu.memory_space<vmem>>, vector<8x8x64xf32>
    %c0_26 = arith.constant 0 : index
    %c1_27 = arith.constant 1 : index
    %c0_28 = arith.constant 0 : index
    %39 = tpu.strided_load %arg6[%c0_26, %c1_27, %c0_28] {strides = array<i32: 1, 2, 1>} : memref<8x24x64xf32, #tpu.memory_space<vmem>>, vector<8x8x64xf32>
    %40 = arith.maximumf %38, %39 : vector<8x8x64xf32>
    %41 = vector.shape_cast %40 : vector<8x8x64xf32> to vector<4x2x8x64xf32>
    %42 = vector.extract_strided_slice %41 {offsets = [0, 0, 0, 0], sizes = [4, 1, 8, 64], strides = [1, 1, 1, 1]} : vector<4x2x8x64xf32> to vector<4x1x8x64xf32>
    %43 = vector.shape_cast %42 : vector<4x1x8x64xf32> to vector<4x8x64xf32>
    %44 = vector.extract_strided_slice %41 {offsets = [0, 1, 0, 0], sizes = [4, 1, 8, 64], strides = [1, 1, 1, 1]} : vector<4x2x8x64xf32> to vector<4x1x8x64xf32>
    %45 = vector.shape_cast %44 : vector<4x1x8x64xf32> to vector<4x8x64xf32>
    %46 = arith.maximumf %43, %45 : vector<4x8x64xf32>
    %47 = arith.truncf %46 : vector<4x8x64xf32> to vector<4x8x64xbf16>
    %c0_29 = arith.constant 0 : index
    %c0_30 = arith.constant 0 : index
    %c0_31 = arith.constant 0 : index
    %c0_32 = arith.constant 0 : index
    %48 = vector.load %arg5[%c0_29, %c0_30, %c0_31, %c0_32] : memref<1x4x8x64xbf16, #tpu.memory_space<vmem>>, vector<1x4x8x64xbf16>
    %49 = vector.shape_cast %48 : vector<1x4x8x64xbf16> to vector<4x8x64xbf16>
    %50 = vector.shape_cast %47 : vector<4x8x64xbf16> to vector<1x4x8x64xbf16>
    tpu.vector_store %arg5[%c0_29, %c0_30, %c0_31, %c0_32], %50 {strides = array<i32>} : memref<1x4x8x64xbf16, #tpu.memory_space<vmem>>, vector<1x4x8x64xbf16>,
    return
  }
  func.func @transform_0(%arg0: i32, %arg1: i32) -> (i32, i32, i32) {
    %c0_i32 = arith.constant 0 : i32
    %c0_i32_0 = arith.constant 0 : i32
    %c0_i32_1 = arith.constant 0 : i32
    return %arg0, %c0_i32, %c0_i32_0 : i32, i32, i32
  }
  func.func @transform_1(%arg0: i32, %arg1: i32) -> (i32, i32, i32) {
    %c0_i32 = arith.constant 0 : i32
    %c0_i32_0 = arith.constant 0 : i32
    %c0_i32_1 = arith.constant 0 : i32
    %c0_i32_2 = arith.constant 0 : i32
    return %c0_i32, %c0_i32_0, %c0_i32_1 : i32, i32, i32
  }
  func.func @transform_2(%arg0: i32, %arg1: i32) -> (i32, i32) {
    %c0_i32 = arith.constant 0 : i32
    %c0_i32_0 = arith.constant 0 : i32
    %c0_i32_1 = arith.constant 0 : i32
    return %c0_i32, %c0_i32_0 : i32, i32
  }
  func.func @transform_3(%arg0: i32, %arg1: i32) -> (i32, i32, i32, i32) {
    %c0_i32 = arith.constant 0 : i32
    %c0_i32_0 = arith.constant 0 : i32
    %c0_i32_1 = arith.constant 0 : i32
    return %arg0, %arg1, %c0_i32, %c0_i32_0 : i32, i32, i32, i32
  }
}

module attributes {stable_mosaic.version = 11 : i64} {
  func.func @_conv3x3_kernel(%arg0: i32, %arg1: i32, %arg2: memref<1x160x192xbf16, #tpu.memory_space<vmem>>, %arg3: memref<3x192x128xbf16, #tpu.memory_space<vmem>>, %arg4: memref<1x128xf32, #tpu.memory_space<vmem>>, %arg5: memref<1x8x8x128xbf16, #tpu.memory_space<vmem>>, %arg6: memref<8x16x128xf32, #tpu.memory_space<vmem>>) attributes {dimension_semantics = [#tpu.dimension_semantics<parallel>, #tpu.dimension_semantics<parallel>], iteration_bounds = array<i64: 2, 1>, scalar_prefetch = 0 : i64, scratch_operands = 1 : i64, tpu.core_type = #tpu.core_type<tc>, window_params = [{transform_indices = @transform_0, window_bounds = array<i64: 1, 160, 192>}, {pipeline_mode = #tpu.pipeline_mode<synchronous>, transform_indices = @transform_1, window_bounds = array<i64: 3, 192, 128>}, {pipeline_mode = #tpu.pipeline_mode<synchronous>, transform_indices = @transform_2, window_bounds = array<i64: 1, 128>}, {transform_indices = @transform_3, window_bounds = array<i64: 1, 8, 8, 128>}]} {
    %cst = arith.constant 0.000000e+00 : f32
    %0 = vector.broadcast %cst : f32 to vector<128x128xf32>
    %c128_i32 = arith.constant 128 : i32
    %1 = arith.muli %arg1, %c128_i32 : i32
    %c0_i32 = arith.constant 0 : i32
    %2 = arith.addi %1, %c0_i32 : i32
    %3 = tpu.assume_multiple %2, 8 : i32
    %c0 = arith.constant 0 : index
    %4 = arith.index_cast %3 : i32 to index
    %c0_0 = arith.constant 0 : index
    %5 = vector.load %arg2[%c0, %4, %c0_0] : memref<1x160x192xbf16, #tpu.memory_space<vmem>>, vector<1x128x192xbf16>
    %6 = vector.shape_cast %5 : vector<1x128x192xbf16> to vector<128x192xbf16>
    %c0_1 = arith.constant 0 : index
    %c0_2 = arith.constant 0 : index
    %c0_3 = arith.constant 0 : index
    %7 = vector.load %arg3[%c0_1, %c0_2, %c0_3] : memref<3x192x128xbf16, #tpu.memory_space<vmem>>, vector<1x192x128xbf16>
    %8 = vector.shape_cast %7 : vector<1x192x128xbf16> to vector<192x128xbf16>
    %cst_4 = arith.constant dense<0.000000e+00> : vector<128x128xf32>
    %9 = tpu.matmul %6, %8, %cst_4 {dimension_numbers = #tpu.dot_dimension_numbers<[1], [0], [0], [1], [0, 0, 1, 1], [], []>} : vector<128x192xbf16>, vector<192x128xbf16>, vector<128x128xf32> -> vector<128x128xf32>
    %10 = arith.addf %0, %9 : vector<128x128xf32>
    %c128_i32_5 = arith.constant 128 : i32
    %11 = arith.muli %arg1, %c128_i32_5 : i32
    %c16_i32 = arith.constant 16 : i32
    %12 = arith.addi %11, %c16_i32 : i32
    %13 = tpu.assume_multiple %12, 8 : i32
    %c0_6 = arith.constant 0 : index
    %14 = arith.index_cast %13 : i32 to index
    %c0_7 = arith.constant 0 : index
    %15 = vector.load %arg2[%c0_6, %14, %c0_7] : memref<1x160x192xbf16, #tpu.memory_space<vmem>>, vector<1x128x192xbf16>
    %16 = vector.shape_cast %15 : vector<1x128x192xbf16> to vector<128x192xbf16>
    %c1 = arith.constant 1 : index
    %c0_8 = arith.constant 0 : index
    %c0_9 = arith.constant 0 : index
    %17 = vector.load %arg3[%c1, %c0_8, %c0_9] : memref<3x192x128xbf16, #tpu.memory_space<vmem>>, vector<1x192x128xbf16>
    %18 = vector.shape_cast %17 : vector<1x192x128xbf16> to vector<192x128xbf16>
    %cst_10 = arith.constant dense<0.000000e+00> : vector<128x128xf32>
    %19 = tpu.matmul %16, %18, %cst_10 {dimension_numbers = #tpu.dot_dimension_numbers<[1], [0], [0], [1], [0, 0, 1, 1], [], []>} : vector<128x192xbf16>, vector<192x128xbf16>, vector<128x128xf32> -> vector<128x128xf32>
    %20 = arith.addf %10, %19 : vector<128x128xf32>
    %c128_i32_11 = arith.constant 128 : i32
    %21 = arith.muli %arg1, %c128_i32_11 : i32
    %c32_i32 = arith.constant 32 : i32
    %22 = arith.addi %21, %c32_i32 : i32
    %23 = tpu.assume_multiple %22, 8 : i32
    %c0_12 = arith.constant 0 : index
    %24 = arith.index_cast %23 : i32 to index
    %c0_13 = arith.constant 0 : index
    %25 = vector.load %arg2[%c0_12, %24, %c0_13] : memref<1x160x192xbf16, #tpu.memory_space<vmem>>, vector<1x128x192xbf16>
    %26 = vector.shape_cast %25 : vector<1x128x192xbf16> to vector<128x192xbf16>
    %c2 = arith.constant 2 : index
    %c0_14 = arith.constant 0 : index
    %c0_15 = arith.constant 0 : index
    %27 = vector.load %arg3[%c2, %c0_14, %c0_15] : memref<3x192x128xbf16, #tpu.memory_space<vmem>>, vector<1x192x128xbf16>
    %28 = vector.shape_cast %27 : vector<1x192x128xbf16> to vector<192x128xbf16>
    %cst_16 = arith.constant dense<0.000000e+00> : vector<128x128xf32>
    %29 = tpu.matmul %26, %28, %cst_16 {dimension_numbers = #tpu.dot_dimension_numbers<[1], [0], [0], [1], [0, 0, 1, 1], [], []>} : vector<128x192xbf16>, vector<192x128xbf16>, vector<128x128xf32> -> vector<128x128xf32>
    %30 = arith.addf %20, %29 : vector<128x128xf32>
    %c0_17 = arith.constant 0 : index
    %c0_18 = arith.constant 0 : index
    %31 = vector.load %arg4[%c0_17, %c0_18] : memref<1x128xf32, #tpu.memory_space<vmem>>, vector<1x128xf32>
    %32 = vector.broadcast %31 : vector<1x128xf32> to vector<128x128xf32>
    %33 = arith.addf %30, %32 : vector<128x128xf32>
    %cst_19 = arith.constant 0.000000e+00 : f32
    %34 = vector.broadcast %cst_19 : f32 to vector<128x128xf32>
    %35 = arith.maximumf %33, %34 : vector<128x128xf32>
    %36 = vector.shape_cast %35 : vector<128x128xf32> to vector<8x16x128xf32>
    %c0_20 = arith.constant 0 : index
    %c0_21 = arith.constant 0 : index
    %c0_22 = arith.constant 0 : index
    %37 = vector.load %arg6[%c0_20, %c0_21, %c0_22] : memref<8x16x128xf32, #tpu.memory_space<vmem>>, vector<8x16x128xf32>
    tpu.vector_store %arg6[%c0_20, %c0_21, %c0_22], %36 {strides = array<i32>} : memref<8x16x128xf32, #tpu.memory_space<vmem>>, vector<8x16x128xf32>,
    %c0_23 = arith.constant 0 : index
    %c0_24 = arith.constant 0 : index
    %c0_25 = arith.constant 0 : index
    %38 = vector.load %arg6[%c0_23, %c0_24, %c0_25] : memref<8x16x128xf32, #tpu.memory_space<vmem>>, vector<8x8x128xf32>
    %39 = arith.truncf %38 : vector<8x8x128xf32> to vector<8x8x128xbf16>
    %c0_26 = arith.constant 0 : index
    %c0_27 = arith.constant 0 : index
    %c0_28 = arith.constant 0 : index
    %c0_29 = arith.constant 0 : index
    %40 = vector.load %arg5[%c0_26, %c0_27, %c0_28, %c0_29] : memref<1x8x8x128xbf16, #tpu.memory_space<vmem>>, vector<1x8x8x128xbf16>
    %41 = vector.shape_cast %40 : vector<1x8x8x128xbf16> to vector<8x8x128xbf16>
    %42 = vector.shape_cast %39 : vector<8x8x128xbf16> to vector<1x8x8x128xbf16>
    tpu.vector_store %arg5[%c0_26, %c0_27, %c0_28, %c0_29], %42 {strides = array<i32>} : memref<1x8x8x128xbf16, #tpu.memory_space<vmem>>, vector<1x8x8x128xbf16>,
    return
  }
  func.func @transform_0(%arg0: i32, %arg1: i32) -> (i32, i32, i32) {
    %c0_i32 = arith.constant 0 : i32
    %c0_i32_0 = arith.constant 0 : i32
    %c0_i32_1 = arith.constant 0 : i32
    return %arg0, %c0_i32, %c0_i32_0 : i32, i32, i32
  }
  func.func @transform_1(%arg0: i32, %arg1: i32) -> (i32, i32, i32) {
    %c0_i32 = arith.constant 0 : i32
    %c0_i32_0 = arith.constant 0 : i32
    %c0_i32_1 = arith.constant 0 : i32
    %c0_i32_2 = arith.constant 0 : i32
    return %c0_i32, %c0_i32_0, %c0_i32_1 : i32, i32, i32
  }
  func.func @transform_2(%arg0: i32, %arg1: i32) -> (i32, i32) {
    %c0_i32 = arith.constant 0 : i32
    %c0_i32_0 = arith.constant 0 : i32
    %c0_i32_1 = arith.constant 0 : i32
    return %c0_i32, %c0_i32_0 : i32, i32
  }
  func.func @transform_3(%arg0: i32, %arg1: i32) -> (i32, i32, i32, i32) {
    %c0_i32 = arith.constant 0 : i32
    %c0_i32_0 = arith.constant 0 : i32
    %c0_i32_1 = arith.constant 0 : i32
    return %arg0, %arg1, %c0_i32, %c0_i32_0 : i32, i32, i32, i32
  }
}

module attributes {stable_mosaic.version = 11 : i64} {
  func.func @_conv3x3_kernel(%arg0: i32, %arg1: i32, %arg2: memref<1x160x384xbf16, #tpu.memory_space<vmem>>, %arg3: memref<3x384x128xbf16, #tpu.memory_space<vmem>>, %arg4: memref<1x128xf32, #tpu.memory_space<vmem>>, %arg5: memref<1x4x4x128xbf16, #tpu.memory_space<vmem>>, %arg6: memref<8x16x128xf32, #tpu.memory_space<vmem>>) attributes {dimension_semantics = [#tpu.dimension_semantics<parallel>, #tpu.dimension_semantics<parallel>], iteration_bounds = array<i64: 2, 1>, scalar_prefetch = 0 : i64, scratch_operands = 1 : i64, tpu.core_type = #tpu.core_type<tc>, window_params = [{transform_indices = @transform_0, window_bounds = array<i64: 1, 160, 384>}, {pipeline_mode = #tpu.pipeline_mode<synchronous>, transform_indices = @transform_1, window_bounds = array<i64: 3, 384, 128>}, {pipeline_mode = #tpu.pipeline_mode<synchronous>, transform_indices = @transform_2, window_bounds = array<i64: 1, 128>}, {transform_indices = @transform_3, window_bounds = array<i64: 1, 4, 4, 128>}]} {
    %cst = arith.constant 0.000000e+00 : f32
    %0 = vector.broadcast %cst : f32 to vector<128x128xf32>
    %c128_i32 = arith.constant 128 : i32
    %1 = arith.muli %arg1, %c128_i32 : i32
    %c0_i32 = arith.constant 0 : i32
    %2 = arith.addi %1, %c0_i32 : i32
    %3 = tpu.assume_multiple %2, 8 : i32
    %c0 = arith.constant 0 : index
    %4 = arith.index_cast %3 : i32 to index
    %c0_0 = arith.constant 0 : index
    %5 = vector.load %arg2[%c0, %4, %c0_0] : memref<1x160x384xbf16, #tpu.memory_space<vmem>>, vector<1x128x384xbf16>
    %6 = vector.shape_cast %5 : vector<1x128x384xbf16> to vector<128x384xbf16>
    %c0_1 = arith.constant 0 : index
    %c0_2 = arith.constant 0 : index
    %c0_3 = arith.constant 0 : index
    %7 = vector.load %arg3[%c0_1, %c0_2, %c0_3] : memref<3x384x128xbf16, #tpu.memory_space<vmem>>, vector<1x384x128xbf16>
    %8 = vector.shape_cast %7 : vector<1x384x128xbf16> to vector<384x128xbf16>
    %cst_4 = arith.constant dense<0.000000e+00> : vector<128x128xf32>
    %9 = tpu.matmul %6, %8, %cst_4 {dimension_numbers = #tpu.dot_dimension_numbers<[1], [0], [0], [1], [0, 0, 1, 1], [], []>} : vector<128x384xbf16>, vector<384x128xbf16>, vector<128x128xf32> -> vector<128x128xf32>
    %10 = arith.addf %0, %9 : vector<128x128xf32>
    %c128_i32_5 = arith.constant 128 : i32
    %11 = arith.muli %arg1, %c128_i32_5 : i32
    %c16_i32 = arith.constant 16 : i32
    %12 = arith.addi %11, %c16_i32 : i32
    %13 = tpu.assume_multiple %12, 8 : i32
    %c0_6 = arith.constant 0 : index
    %14 = arith.index_cast %13 : i32 to index
    %c0_7 = arith.constant 0 : index
    %15 = vector.load %arg2[%c0_6, %14, %c0_7] : memref<1x160x384xbf16, #tpu.memory_space<vmem>>, vector<1x128x384xbf16>
    %16 = vector.shape_cast %15 : vector<1x128x384xbf16> to vector<128x384xbf16>
    %c1 = arith.constant 1 : index
    %c0_8 = arith.constant 0 : index
    %c0_9 = arith.constant 0 : index
    %17 = vector.load %arg3[%c1, %c0_8, %c0_9] : memref<3x384x128xbf16, #tpu.memory_space<vmem>>, vector<1x384x128xbf16>
    %18 = vector.shape_cast %17 : vector<1x384x128xbf16> to vector<384x128xbf16>
    %cst_10 = arith.constant dense<0.000000e+00> : vector<128x128xf32>
    %19 = tpu.matmul %16, %18, %cst_10 {dimension_numbers = #tpu.dot_dimension_numbers<[1], [0], [0], [1], [0, 0, 1, 1], [], []>} : vector<128x384xbf16>, vector<384x128xbf16>, vector<128x128xf32> -> vector<128x128xf32>
    %20 = arith.addf %10, %19 : vector<128x128xf32>
    %c128_i32_11 = arith.constant 128 : i32
    %21 = arith.muli %arg1, %c128_i32_11 : i32
    %c32_i32 = arith.constant 32 : i32
    %22 = arith.addi %21, %c32_i32 : i32
    %23 = tpu.assume_multiple %22, 8 : i32
    %c0_12 = arith.constant 0 : index
    %24 = arith.index_cast %23 : i32 to index
    %c0_13 = arith.constant 0 : index
    %25 = vector.load %arg2[%c0_12, %24, %c0_13] : memref<1x160x384xbf16, #tpu.memory_space<vmem>>, vector<1x128x384xbf16>
    %26 = vector.shape_cast %25 : vector<1x128x384xbf16> to vector<128x384xbf16>
    %c2 = arith.constant 2 : index
    %c0_14 = arith.constant 0 : index
    %c0_15 = arith.constant 0 : index
    %27 = vector.load %arg3[%c2, %c0_14, %c0_15] : memref<3x384x128xbf16, #tpu.memory_space<vmem>>, vector<1x384x128xbf16>
    %28 = vector.shape_cast %27 : vector<1x384x128xbf16> to vector<384x128xbf16>
    %cst_16 = arith.constant dense<0.000000e+00> : vector<128x128xf32>
    %29 = tpu.matmul %26, %28, %cst_16 {dimension_numbers = #tpu.dot_dimension_numbers<[1], [0], [0], [1], [0, 0, 1, 1], [], []>} : vector<128x384xbf16>, vector<384x128xbf16>, vector<128x128xf32> -> vector<128x128xf32>
    %30 = arith.addf %20, %29 : vector<128x128xf32>
    %c0_17 = arith.constant 0 : index
    %c0_18 = arith.constant 0 : index
    %31 = vector.load %arg4[%c0_17, %c0_18] : memref<1x128xf32, #tpu.memory_space<vmem>>, vector<1x128xf32>
    %32 = vector.broadcast %31 : vector<1x128xf32> to vector<128x128xf32>
    %33 = arith.addf %30, %32 : vector<128x128xf32>
    %cst_19 = arith.constant 0.000000e+00 : f32
    %34 = vector.broadcast %cst_19 : f32 to vector<128x128xf32>
    %35 = arith.maximumf %33, %34 : vector<128x128xf32>
    %36 = vector.shape_cast %35 : vector<128x128xf32> to vector<8x16x128xf32>
    %c0_20 = arith.constant 0 : index
    %c0_21 = arith.constant 0 : index
    %c0_22 = arith.constant 0 : index
    %37 = vector.load %arg6[%c0_20, %c0_21, %c0_22] : memref<8x16x128xf32, #tpu.memory_space<vmem>>, vector<8x16x128xf32>
    tpu.vector_store %arg6[%c0_20, %c0_21, %c0_22], %36 {strides = array<i32>} : memref<8x16x128xf32, #tpu.memory_space<vmem>>, vector<8x16x128xf32>,
    %c0_23 = arith.constant 0 : index
    %c0_24 = arith.constant 0 : index
    %c0_25 = arith.constant 0 : index
    %38 = tpu.strided_load %arg6[%c0_23, %c0_24, %c0_25] {strides = array<i32: 1, 2, 1>} : memref<8x16x128xf32, #tpu.memory_space<vmem>>, vector<8x4x128xf32>
    %c0_26 = arith.constant 0 : index
    %c1_27 = arith.constant 1 : index
    %c0_28 = arith.constant 0 : index
    %39 = tpu.strided_load %arg6[%c0_26, %c1_27, %c0_28] {strides = array<i32: 1, 2, 1>} : memref<8x16x128xf32, #tpu.memory_space<vmem>>, vector<8x4x128xf32>
    %40 = arith.maximumf %38, %39 : vector<8x4x128xf32>
    %41 = vector.shape_cast %40 : vector<8x4x128xf32> to vector<4x2x4x128xf32>
    %42 = vector.extract_strided_slice %41 {offsets = [0, 0, 0, 0], sizes = [4, 1, 4, 128], strides = [1, 1, 1, 1]} : vector<4x2x4x128xf32> to vector<4x1x4x128xf32>
    %43 = vector.shape_cast %42 : vector<4x1x4x128xf32> to vector<4x4x128xf32>
    %44 = vector.extract_strided_slice %41 {offsets = [0, 1, 0, 0], sizes = [4, 1, 4, 128], strides = [1, 1, 1, 1]} : vector<4x2x4x128xf32> to vector<4x1x4x128xf32>
    %45 = vector.shape_cast %44 : vector<4x1x4x128xf32> to vector<4x4x128xf32>
    %46 = arith.maximumf %43, %45 : vector<4x4x128xf32>
    %47 = arith.truncf %46 : vector<4x4x128xf32> to vector<4x4x128xbf16>
    %c0_29 = arith.constant 0 : index
    %c0_30 = arith.constant 0 : index
    %c0_31 = arith.constant 0 : index
    %c0_32 = arith.constant 0 : index
    %48 = vector.load %arg5[%c0_29, %c0_30, %c0_31, %c0_32] : memref<1x4x4x128xbf16, #tpu.memory_space<vmem>>, vector<1x4x4x128xbf16>
    %49 = vector.shape_cast %48 : vector<1x4x4x128xbf16> to vector<4x4x128xbf16>
    %50 = vector.shape_cast %47 : vector<4x4x128xbf16> to vector<1x4x4x128xbf16>
    tpu.vector_store %arg5[%c0_29, %c0_30, %c0_31, %c0_32], %50 {strides = array<i32>} : memref<1x4x4x128xbf16, #tpu.memory_space<vmem>>, vector<1x4x4x128xbf16>,
    return
  }
  func.func @transform_0(%arg0: i32, %arg1: i32) -> (i32, i32, i32) {
    %c0_i32 = arith.constant 0 : i32
    %c0_i32_0 = arith.constant 0 : i32
    %c0_i32_1 = arith.constant 0 : i32
    return %arg0, %c0_i32, %c0_i32_0 : i32, i32, i32
  }
  func.func @transform_1(%arg0: i32, %arg1: i32) -> (i32, i32, i32) {
    %c0_i32 = arith.constant 0 : i32
    %c0_i32_0 = arith.constant 0 : i32
    %c0_i32_1 = arith.constant 0 : i32
    %c0_i32_2 = arith.constant 0 : i32
    return %c0_i32, %c0_i32_0, %c0_i32_1 : i32, i32, i32
  }
  func.func @transform_2(%arg0: i32, %arg1: i32) -> (i32, i32) {
    %c0_i32 = arith.constant 0 : i32
    %c0_i32_0 = arith.constant 0 : i32
    %c0_i32_1 = arith.constant 0 : i32
    return %c0_i32, %c0_i32_0 : i32, i32
  }
  func.func @transform_3(%arg0: i32, %arg1: i32) -> (i32, i32, i32, i32) {
    %c0_i32 = arith.constant 0 : i32
    %c0_i32_0 = arith.constant 0 : i32
    %c0_i32_1 = arith.constant 0 : i32
    return %arg0, %arg1, %c0_i32, %c0_i32_0 : i32, i32, i32, i32
  }
}

module attributes {stable_mosaic.version = 11 : i64} {
  func.func @_conv3x3_kernel(%arg0: i32, %arg1: i32, %arg2: memref<1x48x384xbf16, #tpu.memory_space<vmem>>, %arg3: memref<3x384x64xbf16, #tpu.memory_space<vmem>>, %arg4: memref<1x64xf32, #tpu.memory_space<vmem>>, %arg5: memref<1x4x4x64xbf16, #tpu.memory_space<vmem>>, %arg6: memref<4x8x64xf32, #tpu.memory_space<vmem>>) attributes {dimension_semantics = [#tpu.dimension_semantics<parallel>, #tpu.dimension_semantics<parallel>], iteration_bounds = array<i64: 2, 1>, scalar_prefetch = 0 : i64, scratch_operands = 1 : i64, tpu.core_type = #tpu.core_type<tc>, window_params = [{transform_indices = @transform_0, window_bounds = array<i64: 1, 48, 384>}, {pipeline_mode = #tpu.pipeline_mode<synchronous>, transform_indices = @transform_1, window_bounds = array<i64: 3, 384, 64>}, {pipeline_mode = #tpu.pipeline_mode<synchronous>, transform_indices = @transform_2, window_bounds = array<i64: 1, 64>}, {transform_indices = @transform_3, window_bounds = array<i64: 1, 4, 4, 64>}]} {
    %cst = arith.constant 0.000000e+00 : f32
    %0 = vector.broadcast %cst : f32 to vector<32x64xf32>
    %c32_i32 = arith.constant 32 : i32
    %1 = arith.muli %arg1, %c32_i32 : i32
    %c0_i32 = arith.constant 0 : i32
    %2 = arith.addi %1, %c0_i32 : i32
    %3 = tpu.assume_multiple %2, 8 : i32
    %c0 = arith.constant 0 : index
    %4 = arith.index_cast %3 : i32 to index
    %c0_0 = arith.constant 0 : index
    %5 = vector.load %arg2[%c0, %4, %c0_0] : memref<1x48x384xbf16, #tpu.memory_space<vmem>>, vector<1x32x384xbf16>
    %6 = vector.shape_cast %5 : vector<1x32x384xbf16> to vector<32x384xbf16>
    %c0_1 = arith.constant 0 : index
    %c0_2 = arith.constant 0 : index
    %c0_3 = arith.constant 0 : index
    %7 = vector.load %arg3[%c0_1, %c0_2, %c0_3] : memref<3x384x64xbf16, #tpu.memory_space<vmem>>, vector<1x384x64xbf16>
    %8 = vector.shape_cast %7 : vector<1x384x64xbf16> to vector<384x64xbf16>
    %cst_4 = arith.constant dense<0.000000e+00> : vector<32x64xf32>
    %9 = tpu.matmul %6, %8, %cst_4 {dimension_numbers = #tpu.dot_dimension_numbers<[1], [0], [0], [1], [0, 0, 1, 1], [], []>} : vector<32x384xbf16>, vector<384x64xbf16>, vector<32x64xf32> -> vector<32x64xf32>
    %10 = arith.addf %0, %9 : vector<32x64xf32>
    %c32_i32_5 = arith.constant 32 : i32
    %11 = arith.muli %arg1, %c32_i32_5 : i32
    %c8_i32 = arith.constant 8 : i32
    %12 = arith.addi %11, %c8_i32 : i32
    %13 = tpu.assume_multiple %12, 8 : i32
    %c0_6 = arith.constant 0 : index
    %14 = arith.index_cast %13 : i32 to index
    %c0_7 = arith.constant 0 : index
    %15 = vector.load %arg2[%c0_6, %14, %c0_7] : memref<1x48x384xbf16, #tpu.memory_space<vmem>>, vector<1x32x384xbf16>
    %16 = vector.shape_cast %15 : vector<1x32x384xbf16> to vector<32x384xbf16>
    %c1 = arith.constant 1 : index
    %c0_8 = arith.constant 0 : index
    %c0_9 = arith.constant 0 : index
    %17 = vector.load %arg3[%c1, %c0_8, %c0_9] : memref<3x384x64xbf16, #tpu.memory_space<vmem>>, vector<1x384x64xbf16>
    %18 = vector.shape_cast %17 : vector<1x384x64xbf16> to vector<384x64xbf16>
    %cst_10 = arith.constant dense<0.000000e+00> : vector<32x64xf32>
    %19 = tpu.matmul %16, %18, %cst_10 {dimension_numbers = #tpu.dot_dimension_numbers<[1], [0], [0], [1], [0, 0, 1, 1], [], []>} : vector<32x384xbf16>, vector<384x64xbf16>, vector<32x64xf32> -> vector<32x64xf32>
    %20 = arith.addf %10, %19 : vector<32x64xf32>
    %c32_i32_11 = arith.constant 32 : i32
    %21 = arith.muli %arg1, %c32_i32_11 : i32
    %c16_i32 = arith.constant 16 : i32
    %22 = arith.addi %21, %c16_i32 : i32
    %23 = tpu.assume_multiple %22, 8 : i32
    %c0_12 = arith.constant 0 : index
    %24 = arith.index_cast %23 : i32 to index
    %c0_13 = arith.constant 0 : index
    %25 = vector.load %arg2[%c0_12, %24, %c0_13] : memref<1x48x384xbf16, #tpu.memory_space<vmem>>, vector<1x32x384xbf16>
    %26 = vector.shape_cast %25 : vector<1x32x384xbf16> to vector<32x384xbf16>
    %c2 = arith.constant 2 : index
    %c0_14 = arith.constant 0 : index
    %c0_15 = arith.constant 0 : index
    %27 = vector.load %arg3[%c2, %c0_14, %c0_15] : memref<3x384x64xbf16, #tpu.memory_space<vmem>>, vector<1x384x64xbf16>
    %28 = vector.shape_cast %27 : vector<1x384x64xbf16> to vector<384x64xbf16>
    %cst_16 = arith.constant dense<0.000000e+00> : vector<32x64xf32>
    %29 = tpu.matmul %26, %28, %cst_16 {dimension_numbers = #tpu.dot_dimension_numbers<[1], [0], [0], [1], [0, 0, 1, 1], [], []>} : vector<32x384xbf16>, vector<384x64xbf16>, vector<32x64xf32> -> vector<32x64xf32>
    %30 = arith.addf %20, %29 : vector<32x64xf32>
    %c0_17 = arith.constant 0 : index
    %c0_18 = arith.constant 0 : index
    %31 = vector.load %arg4[%c0_17, %c0_18] : memref<1x64xf32, #tpu.memory_space<vmem>>, vector<1x64xf32>
    %32 = vector.broadcast %31 : vector<1x64xf32> to vector<32x64xf32>
    %33 = arith.addf %30, %32 : vector<32x64xf32>
    %cst_19 = arith.constant 0.000000e+00 : f32
    %34 = vector.broadcast %cst_19 : f32 to vector<32x64xf32>
    %35 = arith.maximumf %33, %34 : vector<32x64xf32>
    %36 = vector.shape_cast %35 : vector<32x64xf32> to vector<4x8x64xf32>
    %c0_20 = arith.constant 0 : index
    %c0_21 = arith.constant 0 : index
    %c0_22 = arith.constant 0 : index
    %37 = vector.load %arg6[%c0_20, %c0_21, %c0_22] : memref<4x8x64xf32, #tpu.memory_space<vmem>>, vector<4x8x64xf32>
    tpu.vector_store %arg6[%c0_20, %c0_21, %c0_22], %36 {strides = array<i32>} : memref<4x8x64xf32, #tpu.memory_space<vmem>>, vector<4x8x64xf32>,
    %c0_23 = arith.constant 0 : index
    %c0_24 = arith.constant 0 : index
    %c0_25 = arith.constant 0 : index
    %38 = vector.load %arg6[%c0_23, %c0_24, %c0_25] : memref<4x8x64xf32, #tpu.memory_space<vmem>>, vector<4x4x64xf32>
    %39 = arith.truncf %38 : vector<4x4x64xf32> to vector<4x4x64xbf16>
    %c0_26 = arith.constant 0 : index
    %c0_27 = arith.constant 0 : index
    %c0_28 = arith.constant 0 : index
    %c0_29 = arith.constant 0 : index
    %40 = vector.load %arg5[%c0_26, %c0_27, %c0_28, %c0_29] : memref<1x4x4x64xbf16, #tpu.memory_space<vmem>>, vector<1x4x4x64xbf16>
    %41 = vector.shape_cast %40 : vector<1x4x4x64xbf16> to vector<4x4x64xbf16>
    %42 = vector.shape_cast %39 : vector<4x4x64xbf16> to vector<1x4x4x64xbf16>
    tpu.vector_store %arg5[%c0_26, %c0_27, %c0_28, %c0_29], %42 {strides = array<i32>} : memref<1x4x4x64xbf16, #tpu.memory_space<vmem>>, vector<1x4x4x64xbf16>,
    return
  }
  func.func @transform_0(%arg0: i32, %arg1: i32) -> (i32, i32, i32) {
    %c0_i32 = arith.constant 0 : i32
    %c0_i32_0 = arith.constant 0 : i32
    %c0_i32_1 = arith.constant 0 : i32
    return %arg0, %c0_i32, %c0_i32_0 : i32, i32, i32
  }
  func.func @transform_1(%arg0: i32, %arg1: i32) -> (i32, i32, i32) {
    %c0_i32 = arith.constant 0 : i32
    %c0_i32_0 = arith.constant 0 : i32
    %c0_i32_1 = arith.constant 0 : i32
    %c0_i32_2 = arith.constant 0 : i32
    return %c0_i32, %c0_i32_0, %c0_i32_1 : i32, i32, i32
  }
  func.func @transform_2(%arg0: i32, %arg1: i32) -> (i32, i32) {
    %c0_i32 = arith.constant 0 : i32
    %c0_i32_0 = arith.constant 0 : i32
    %c0_i32_1 = arith.constant 0 : i32
    return %c0_i32, %c0_i32_0 : i32, i32
  }
  func.func @transform_3(%arg0: i32, %arg1: i32) -> (i32, i32, i32, i32) {
    %c0_i32 = arith.constant 0 : i32
    %c0_i32_0 = arith.constant 0 : i32
    %c0_i32_1 = arith.constant 0 : i32
    return %arg0, %arg1, %c0_i32, %c0_i32_0 : i32, i32, i32, i32
  }
}

module attributes {stable_mosaic.version = 11 : i64} {
  func.func @_conv3x3_kernel(%arg0: i32, %arg1: i32, %arg2: memref<1x48x192xbf16, #tpu.memory_space<vmem>>, %arg3: memref<3x192x64xbf16, #tpu.memory_space<vmem>>, %arg4: memref<1x64xf32, #tpu.memory_space<vmem>>, %arg5: memref<1x4x4x64xbf16, #tpu.memory_space<vmem>>, %arg6: memref<4x8x64xf32, #tpu.memory_space<vmem>>) attributes {dimension_semantics = [#tpu.dimension_semantics<parallel>, #tpu.dimension_semantics<parallel>], iteration_bounds = array<i64: 2, 1>, scalar_prefetch = 0 : i64, scratch_operands = 1 : i64, tpu.core_type = #tpu.core_type<tc>, window_params = [{transform_indices = @transform_0, window_bounds = array<i64: 1, 48, 192>}, {pipeline_mode = #tpu.pipeline_mode<synchronous>, transform_indices = @transform_1, window_bounds = array<i64: 3, 192, 64>}, {pipeline_mode = #tpu.pipeline_mode<synchronous>, transform_indices = @transform_2, window_bounds = array<i64: 1, 64>}, {transform_indices = @transform_3, window_bounds = array<i64: 1, 4, 4, 64>}]} {
    %cst = arith.constant 0.000000e+00 : f32
    %0 = vector.broadcast %cst : f32 to vector<32x64xf32>
    %c32_i32 = arith.constant 32 : i32
    %1 = arith.muli %arg1, %c32_i32 : i32
    %c0_i32 = arith.constant 0 : i32
    %2 = arith.addi %1, %c0_i32 : i32
    %3 = tpu.assume_multiple %2, 8 : i32
    %c0 = arith.constant 0 : index
    %4 = arith.index_cast %3 : i32 to index
    %c0_0 = arith.constant 0 : index
    %5 = vector.load %arg2[%c0, %4, %c0_0] : memref<1x48x192xbf16, #tpu.memory_space<vmem>>, vector<1x32x192xbf16>
    %6 = vector.shape_cast %5 : vector<1x32x192xbf16> to vector<32x192xbf16>
    %c0_1 = arith.constant 0 : index
    %c0_2 = arith.constant 0 : index
    %c0_3 = arith.constant 0 : index
    %7 = vector.load %arg3[%c0_1, %c0_2, %c0_3] : memref<3x192x64xbf16, #tpu.memory_space<vmem>>, vector<1x192x64xbf16>
    %8 = vector.shape_cast %7 : vector<1x192x64xbf16> to vector<192x64xbf16>
    %cst_4 = arith.constant dense<0.000000e+00> : vector<32x64xf32>
    %9 = tpu.matmul %6, %8, %cst_4 {dimension_numbers = #tpu.dot_dimension_numbers<[1], [0], [0], [1], [0, 0, 1, 1], [], []>} : vector<32x192xbf16>, vector<192x64xbf16>, vector<32x64xf32> -> vector<32x64xf32>
    %10 = arith.addf %0, %9 : vector<32x64xf32>
    %c32_i32_5 = arith.constant 32 : i32
    %11 = arith.muli %arg1, %c32_i32_5 : i32
    %c8_i32 = arith.constant 8 : i32
    %12 = arith.addi %11, %c8_i32 : i32
    %13 = tpu.assume_multiple %12, 8 : i32
    %c0_6 = arith.constant 0 : index
    %14 = arith.index_cast %13 : i32 to index
    %c0_7 = arith.constant 0 : index
    %15 = vector.load %arg2[%c0_6, %14, %c0_7] : memref<1x48x192xbf16, #tpu.memory_space<vmem>>, vector<1x32x192xbf16>
    %16 = vector.shape_cast %15 : vector<1x32x192xbf16> to vector<32x192xbf16>
    %c1 = arith.constant 1 : index
    %c0_8 = arith.constant 0 : index
    %c0_9 = arith.constant 0 : index
    %17 = vector.load %arg3[%c1, %c0_8, %c0_9] : memref<3x192x64xbf16, #tpu.memory_space<vmem>>, vector<1x192x64xbf16>
    %18 = vector.shape_cast %17 : vector<1x192x64xbf16> to vector<192x64xbf16>
    %cst_10 = arith.constant dense<0.000000e+00> : vector<32x64xf32>
    %19 = tpu.matmul %16, %18, %cst_10 {dimension_numbers = #tpu.dot_dimension_numbers<[1], [0], [0], [1], [0, 0, 1, 1], [], []>} : vector<32x192xbf16>, vector<192x64xbf16>, vector<32x64xf32> -> vector<32x64xf32>
    %20 = arith.addf %10, %19 : vector<32x64xf32>
    %c32_i32_11 = arith.constant 32 : i32
    %21 = arith.muli %arg1, %c32_i32_11 : i32
    %c16_i32 = arith.constant 16 : i32
    %22 = arith.addi %21, %c16_i32 : i32
    %23 = tpu.assume_multiple %22, 8 : i32
    %c0_12 = arith.constant 0 : index
    %24 = arith.index_cast %23 : i32 to index
    %c0_13 = arith.constant 0 : index
    %25 = vector.load %arg2[%c0_12, %24, %c0_13] : memref<1x48x192xbf16, #tpu.memory_space<vmem>>, vector<1x32x192xbf16>
    %26 = vector.shape_cast %25 : vector<1x32x192xbf16> to vector<32x192xbf16>
    %c2 = arith.constant 2 : index
    %c0_14 = arith.constant 0 : index
    %c0_15 = arith.constant 0 : index
    %27 = vector.load %arg3[%c2, %c0_14, %c0_15] : memref<3x192x64xbf16, #tpu.memory_space<vmem>>, vector<1x192x64xbf16>
    %28 = vector.shape_cast %27 : vector<1x192x64xbf16> to vector<192x64xbf16>
    %cst_16 = arith.constant dense<0.000000e+00> : vector<32x64xf32>
    %29 = tpu.matmul %26, %28, %cst_16 {dimension_numbers = #tpu.dot_dimension_numbers<[1], [0], [0], [1], [0, 0, 1, 1], [], []>} : vector<32x192xbf16>, vector<192x64xbf16>, vector<32x64xf32> -> vector<32x64xf32>
    %30 = arith.addf %20, %29 : vector<32x64xf32>
    %c0_17 = arith.constant 0 : index
    %c0_18 = arith.constant 0 : index
    %31 = vector.load %arg4[%c0_17, %c0_18] : memref<1x64xf32, #tpu.memory_space<vmem>>, vector<1x64xf32>
    %32 = vector.broadcast %31 : vector<1x64xf32> to vector<32x64xf32>
    %33 = arith.addf %30, %32 : vector<32x64xf32>
    %cst_19 = arith.constant 0.000000e+00 : f32
    %34 = vector.broadcast %cst_19 : f32 to vector<32x64xf32>
    %35 = arith.maximumf %33, %34 : vector<32x64xf32>
    %36 = vector.shape_cast %35 : vector<32x64xf32> to vector<4x8x64xf32>
    %c0_20 = arith.constant 0 : index
    %c0_21 = arith.constant 0 : index
    %c0_22 = arith.constant 0 : index
    %37 = vector.load %arg6[%c0_20, %c0_21, %c0_22] : memref<4x8x64xf32, #tpu.memory_space<vmem>>, vector<4x8x64xf32>
    tpu.vector_store %arg6[%c0_20, %c0_21, %c0_22], %36 {strides = array<i32>} : memref<4x8x64xf32, #tpu.memory_space<vmem>>, vector<4x8x64xf32>,
    %c0_23 = arith.constant 0 : index
    %c0_24 = arith.constant 0 : index
    %c0_25 = arith.constant 0 : index
    %38 = vector.load %arg6[%c0_23, %c0_24, %c0_25] : memref<4x8x64xf32, #tpu.memory_space<vmem>>, vector<4x4x64xf32>
    %39 = arith.truncf %38 : vector<4x4x64xf32> to vector<4x4x64xbf16>
    %c0_26 = arith.constant 0 : index
    %c0_27 = arith.constant 0 : index
    %c0_28 = arith.constant 0 : index
    %c0_29 = arith.constant 0 : index
    %40 = vector.load %arg5[%c0_26, %c0_27, %c0_28, %c0_29] : memref<1x4x4x64xbf16, #tpu.memory_space<vmem>>, vector<1x4x4x64xbf16>
    %41 = vector.shape_cast %40 : vector<1x4x4x64xbf16> to vector<4x4x64xbf16>
    %42 = vector.shape_cast %39 : vector<4x4x64xbf16> to vector<1x4x4x64xbf16>
    tpu.vector_store %arg5[%c0_26, %c0_27, %c0_28, %c0_29], %42 {strides = array<i32>} : memref<1x4x4x64xbf16, #tpu.memory_space<vmem>>, vector<1x4x4x64xbf16>,
    return
  }
  func.func @transform_0(%arg0: i32, %arg1: i32) -> (i32, i32, i32) {
    %c0_i32 = arith.constant 0 : i32
    %c0_i32_0 = arith.constant 0 : i32
    %c0_i32_1 = arith.constant 0 : i32
    return %arg0, %c0_i32, %c0_i32_0 : i32, i32, i32
  }
  func.func @transform_1(%arg0: i32, %arg1: i32) -> (i32, i32, i32) {
    %c0_i32 = arith.constant 0 : i32
    %c0_i32_0 = arith.constant 0 : i32
    %c0_i32_1 = arith.constant 0 : i32
    %c0_i32_2 = arith.constant 0 : i32
    return %c0_i32, %c0_i32_0, %c0_i32_1 : i32, i32, i32
  }
  func.func @transform_2(%arg0: i32, %arg1: i32) -> (i32, i32) {
    %c0_i32 = arith.constant 0 : i32
    %c0_i32_0 = arith.constant 0 : i32
    %c0_i32_1 = arith.constant 0 : i32
    return %c0_i32, %c0_i32_0 : i32, i32
  }
  func.func @transform_3(%arg0: i32, %arg1: i32) -> (i32, i32, i32, i32) {
    %c0_i32 = arith.constant 0 : i32
    %c0_i32_0 = arith.constant 0 : i32
    %c0_i32_1 = arith.constant 0 : i32
    return %arg0, %arg1, %c0_i32, %c0_i32_0 : i32, i32, i32, i32
  }
}

module attributes {stable_mosaic.version = 11 : i64} {
  func.func @_deconv2x2_kernel(%arg0: i32, %arg1: i32, %arg2: memref<1x1x4x64xbf16, #tpu.memory_space<vmem>>, %arg3: memref<64x256xbf16, #tpu.memory_space<vmem>>, %arg4: memref<1x256xf32, #tpu.memory_space<vmem>>, %arg5: memref<1x1x2x4x128xbf16, #tpu.memory_space<vmem>>) attributes {dimension_semantics = [#tpu.dimension_semantics<parallel>, #tpu.dimension_semantics<parallel>], iteration_bounds = array<i64: 2, 4>, scalar_prefetch = 0 : i64, scratch_operands = 0 : i64, tpu.core_type = #tpu.core_type<tc>, window_params = [{transform_indices = @transform_0, window_bounds = array<i64: 1, 1, 4, 64>}, {pipeline_mode = #tpu.pipeline_mode<synchronous>, transform_indices = @transform_1, window_bounds = array<i64: 64, 256>}, {pipeline_mode = #tpu.pipeline_mode<synchronous>, transform_indices = @transform_2, window_bounds = array<i64: 1, 256>}, {transform_indices = @transform_3, window_bounds = array<i64: 1, 1, 2, 4, 128>}]} {
    %c0 = arith.constant 0 : index
    %c0_0 = arith.constant 0 : index
    %c0_1 = arith.constant 0 : index
    %c0_2 = arith.constant 0 : index
    %0 = vector.load %arg2[%c0, %c0_0, %c0_1, %c0_2] : memref<1x1x4x64xbf16, #tpu.memory_space<vmem>>, vector<1x1x4x64xbf16>
    %1 = vector.shape_cast %0 : vector<1x1x4x64xbf16> to vector<4x64xbf16>
    %c0_3 = arith.constant 0 : index
    %c0_4 = arith.constant 0 : index
    %2 = vector.load %arg3[%c0_3, %c0_4] : memref<64x256xbf16, #tpu.memory_space<vmem>>, vector<64x256xbf16>
    %cst = arith.constant dense<0.000000e+00> : vector<4x256xf32>
    %3 = tpu.matmul %1, %2, %cst {dimension_numbers = #tpu.dot_dimension_numbers<[1], [0], [0], [1], [0, 0, 1, 1], [], []>} : vector<4x64xbf16>, vector<64x256xbf16>, vector<4x256xf32> -> vector<4x256xf32>
    %c0_5 = arith.constant 0 : index
    %c0_6 = arith.constant 0 : index
    %4 = vector.load %arg4[%c0_5, %c0_6] : memref<1x256xf32, #tpu.memory_space<vmem>>, vector<1x256xf32>
    %5 = vector.broadcast %4 : vector<1x256xf32> to vector<4x256xf32>
    %6 = arith.addf %3, %5 : vector<4x256xf32>
    %7 = vector.extract_strided_slice %6 {offsets = [0, 0], sizes = [4, 128], strides = [1, 1]} : vector<4x256xf32> to vector<4x128xf32>
    %8 = arith.truncf %7 : vector<4x128xf32> to vector<4x128xbf16>
    %c0_7 = arith.constant 0 : index
    %c0_8 = arith.constant 0 : index
    %c0_9 = arith.constant 0 : index
    %c0_10 = arith.constant 0 : index
    %c0_11 = arith.constant 0 : index
    %9 = vector.load %arg5[%c0_7, %c0_8, %c0_9, %c0_10, %c0_11] : memref<1x1x2x4x128xbf16, #tpu.memory_space<vmem>>, vector<1x1x1x4x128xbf16>
    %10 = vector.shape_cast %9 : vector<1x1x1x4x128xbf16> to vector<4x128xbf16>
    %11 = vector.shape_cast %8 : vector<4x128xbf16> to vector<1x1x1x4x128xbf16>
    tpu.vector_store %arg5[%c0_7, %c0_8, %c0_9, %c0_10, %c0_11], %11 {strides = array<i32>} : memref<1x1x2x4x128xbf16, #tpu.memory_space<vmem>>, vector<1x1x1x4x128xbf16>,
    %12 = vector.extract_strided_slice %6 {offsets = [0, 128], sizes = [4, 128], strides = [1, 1]} : vector<4x256xf32> to vector<4x128xf32>
    %13 = arith.truncf %12 : vector<4x128xf32> to vector<4x128xbf16>
    %c0_12 = arith.constant 0 : index
    %c0_13 = arith.constant 0 : index
    %c1 = arith.constant 1 : index
    %c0_14 = arith.constant 0 : index
    %c0_15 = arith.constant 0 : index
    %14 = vector.load %arg5[%c0_12, %c0_13, %c1, %c0_14, %c0_15] : memref<1x1x2x4x128xbf16, #tpu.memory_space<vmem>>, vector<1x1x1x4x128xbf16>
    %15 = vector.shape_cast %14 : vector<1x1x1x4x128xbf16> to vector<4x128xbf16>
    %16 = vector.shape_cast %13 : vector<4x128xbf16> to vector<1x1x1x4x128xbf16>
    tpu.vector_store %arg5[%c0_12, %c0_13, %c1, %c0_14, %c0_15], %16 {strides = array<i32>} : memref<1x1x2x4x128xbf16, #tpu.memory_space<vmem>>, vector<1x1x1x4x128xbf16>,
    return
  }
  func.func @transform_0(%arg0: i32, %arg1: i32) -> (i32, i32, i32, i32) {
    %c0_i32 = arith.constant 0 : i32
    %c0_i32_0 = arith.constant 0 : i32
    %c0_i32_1 = arith.constant 0 : i32
    return %arg0, %arg1, %c0_i32, %c0_i32_0 : i32, i32, i32, i32
  }
  func.func @transform_1(%arg0: i32, %arg1: i32) -> (i32, i32) {
    %c0_i32 = arith.constant 0 : i32
    %c0_i32_0 = arith.constant 0 : i32
    %c0_i32_1 = arith.constant 0 : i32
    return %c0_i32, %c0_i32_0 : i32, i32
  }
  func.func @transform_2(%arg0: i32, %arg1: i32) -> (i32, i32) {
    %c0_i32 = arith.constant 0 : i32
    %c0_i32_0 = arith.constant 0 : i32
    %c0_i32_1 = arith.constant 0 : i32
    return %c0_i32, %c0_i32_0 : i32, i32
  }
  func.func @transform_3(%arg0: i32, %arg1: i32) -> (i32, i32, i32, i32, i32) {
    %c0_i32 = arith.constant 0 : i32
    %c0_i32_0 = arith.constant 0 : i32
    %c0_i32_1 = arith.constant 0 : i32
    %c0_i32_2 = arith.constant 0 : i32
    return %arg0, %arg1, %c0_i32, %c0_i32_0, %c0_i32_1 : i32, i32, i32, i32, i32
  }
}

module attributes {stable_mosaic.version = 11 : i64} {
  func.func @_conv3x3_kernel(%arg0: i32, %arg1: i32, %arg2: memref<1x160x192xbf16, #tpu.memory_space<vmem>>, %arg3: memref<3x192x128xbf16, #tpu.memory_space<vmem>>, %arg4: memref<1x128xf32, #tpu.memory_space<vmem>>, %arg5: memref<1x8x8x128xf32, #tpu.memory_space<vmem>>, %arg6: memref<8x16x128xf32, #tpu.memory_space<vmem>>) attributes {dimension_semantics = [#tpu.dimension_semantics<parallel>, #tpu.dimension_semantics<parallel>], iteration_bounds = array<i64: 2, 1>, scalar_prefetch = 0 : i64, scratch_operands = 1 : i64, tpu.core_type = #tpu.core_type<tc>, window_params = [{transform_indices = @transform_0, window_bounds = array<i64: 1, 160, 192>}, {pipeline_mode = #tpu.pipeline_mode<synchronous>, transform_indices = @transform_1, window_bounds = array<i64: 3, 192, 128>}, {pipeline_mode = #tpu.pipeline_mode<synchronous>, transform_indices = @transform_2, window_bounds = array<i64: 1, 128>}, {transform_indices = @transform_3, window_bounds = array<i64: 1, 8, 8, 128>}]} {
    %cst = arith.constant 0.000000e+00 : f32
    %0 = vector.broadcast %cst : f32 to vector<128x128xf32>
    %c128_i32 = arith.constant 128 : i32
    %1 = arith.muli %arg1, %c128_i32 : i32
    %c0_i32 = arith.constant 0 : i32
    %2 = arith.addi %1, %c0_i32 : i32
    %3 = tpu.assume_multiple %2, 8 : i32
    %c0 = arith.constant 0 : index
    %4 = arith.index_cast %3 : i32 to index
    %c0_0 = arith.constant 0 : index
    %5 = vector.load %arg2[%c0, %4, %c0_0] : memref<1x160x192xbf16, #tpu.memory_space<vmem>>, vector<1x128x192xbf16>
    %6 = vector.shape_cast %5 : vector<1x128x192xbf16> to vector<128x192xbf16>
    %c0_1 = arith.constant 0 : index
    %c0_2 = arith.constant 0 : index
    %c0_3 = arith.constant 0 : index
    %7 = vector.load %arg3[%c0_1, %c0_2, %c0_3] : memref<3x192x128xbf16, #tpu.memory_space<vmem>>, vector<1x192x128xbf16>
    %8 = vector.shape_cast %7 : vector<1x192x128xbf16> to vector<192x128xbf16>
    %cst_4 = arith.constant dense<0.000000e+00> : vector<128x128xf32>
    %9 = tpu.matmul %6, %8, %cst_4 {dimension_numbers = #tpu.dot_dimension_numbers<[1], [0], [0], [1], [0, 0, 1, 1], [], []>} : vector<128x192xbf16>, vector<192x128xbf16>, vector<128x128xf32> -> vector<128x128xf32>
    %10 = arith.addf %0, %9 : vector<128x128xf32>
    %c128_i32_5 = arith.constant 128 : i32
    %11 = arith.muli %arg1, %c128_i32_5 : i32
    %c16_i32 = arith.constant 16 : i32
    %12 = arith.addi %11, %c16_i32 : i32
    %13 = tpu.assume_multiple %12, 8 : i32
    %c0_6 = arith.constant 0 : index
    %14 = arith.index_cast %13 : i32 to index
    %c0_7 = arith.constant 0 : index
    %15 = vector.load %arg2[%c0_6, %14, %c0_7] : memref<1x160x192xbf16, #tpu.memory_space<vmem>>, vector<1x128x192xbf16>
    %16 = vector.shape_cast %15 : vector<1x128x192xbf16> to vector<128x192xbf16>
    %c1 = arith.constant 1 : index
    %c0_8 = arith.constant 0 : index
    %c0_9 = arith.constant 0 : index
    %17 = vector.load %arg3[%c1, %c0_8, %c0_9] : memref<3x192x128xbf16, #tpu.memory_space<vmem>>, vector<1x192x128xbf16>
    %18 = vector.shape_cast %17 : vector<1x192x128xbf16> to vector<192x128xbf16>
    %cst_10 = arith.constant dense<0.000000e+00> : vector<128x128xf32>
    %19 = tpu.matmul %16, %18, %cst_10 {dimension_numbers = #tpu.dot_dimension_numbers<[1], [0], [0], [1], [0, 0, 1, 1], [], []>} : vector<128x192xbf16>, vector<192x128xbf16>, vector<128x128xf32> -> vector<128x128xf32>
    %20 = arith.addf %10, %19 : vector<128x128xf32>
    %c128_i32_11 = arith.constant 128 : i32
    %21 = arith.muli %arg1, %c128_i32_11 : i32
    %c32_i32 = arith.constant 32 : i32
    %22 = arith.addi %21, %c32_i32 : i32
    %23 = tpu.assume_multiple %22, 8 : i32
    %c0_12 = arith.constant 0 : index
    %24 = arith.index_cast %23 : i32 to index
    %c0_13 = arith.constant 0 : index
    %25 = vector.load %arg2[%c0_12, %24, %c0_13] : memref<1x160x192xbf16, #tpu.memory_space<vmem>>, vector<1x128x192xbf16>
    %26 = vector.shape_cast %25 : vector<1x128x192xbf16> to vector<128x192xbf16>
    %c2 = arith.constant 2 : index
    %c0_14 = arith.constant 0 : index
    %c0_15 = arith.constant 0 : index
    %27 = vector.load %arg3[%c2, %c0_14, %c0_15] : memref<3x192x128xbf16, #tpu.memory_space<vmem>>, vector<1x192x128xbf16>
    %28 = vector.shape_cast %27 : vector<1x192x128xbf16> to vector<192x128xbf16>
    %cst_16 = arith.constant dense<0.000000e+00> : vector<128x128xf32>
    %29 = tpu.matmul %26, %28, %cst_16 {dimension_numbers = #tpu.dot_dimension_numbers<[1], [0], [0], [1], [0, 0, 1, 1], [], []>} : vector<128x192xbf16>, vector<192x128xbf16>, vector<128x128xf32> -> vector<128x128xf32>
    %30 = arith.addf %20, %29 : vector<128x128xf32>
    %c0_17 = arith.constant 0 : index
    %c0_18 = arith.constant 0 : index
    %31 = vector.load %arg4[%c0_17, %c0_18] : memref<1x128xf32, #tpu.memory_space<vmem>>, vector<1x128xf32>
    %32 = vector.broadcast %31 : vector<1x128xf32> to vector<128x128xf32>
    %33 = arith.addf %30, %32 : vector<128x128xf32>
    %34 = vector.shape_cast %33 : vector<128x128xf32> to vector<8x16x128xf32>
    %c0_19 = arith.constant 0 : index
    %c0_20 = arith.constant 0 : index
    %c0_21 = arith.constant 0 : index
    %35 = vector.load %arg6[%c0_19, %c0_20, %c0_21] : memref<8x16x128xf32, #tpu.memory_space<vmem>>, vector<8x16x128xf32>
    tpu.vector_store %arg6[%c0_19, %c0_20, %c0_21], %34 {strides = array<i32>} : memref<8x16x128xf32, #tpu.memory_space<vmem>>, vector<8x16x128xf32>,
    %c0_22 = arith.constant 0 : index
    %c0_23 = arith.constant 0 : index
    %c0_24 = arith.constant 0 : index
    %36 = vector.load %arg6[%c0_22, %c0_23, %c0_24] : memref<8x16x128xf32, #tpu.memory_space<vmem>>, vector<8x8x128xf32>
    %c0_25 = arith.constant 0 : index
    %c0_26 = arith.constant 0 : index
    %c0_27 = arith.constant 0 : index
    %c0_28 = arith.constant 0 : index
    %37 = vector.load %arg5[%c0_25, %c0_26, %c0_27, %c0_28] : memref<1x8x8x128xf32, #tpu.memory_space<vmem>>, vector<1x8x8x128xf32>
    %38 = vector.shape_cast %37 : vector<1x8x8x128xf32> to vector<8x8x128xf32>
    %39 = vector.shape_cast %36 : vector<8x8x128xf32> to vector<1x8x8x128xf32>
    tpu.vector_store %arg5[%c0_25, %c0_26, %c0_27, %c0_28], %39 {strides = array<i32>} : memref<1x8x8x128xf32, #tpu.memory_space<vmem>>, vector<1x8x8x128xf32>,
    return
  }
  func.func @transform_0(%arg0: i32, %arg1: i32) -> (i32, i32, i32) {
    %c0_i32 = arith.constant 0 : i32
    %c0_i32_0 = arith.constant 0 : i32
    %c0_i32_1 = arith.constant 0 : i32
    return %arg0, %c0_i32, %c0_i32_0 : i32, i32, i32
  }
  func.func @transform_1(%arg0: i32, %arg1: i32) -> (i32, i32, i32) {
    %c0_i32 = arith.constant 0 : i32
    %c0_i32_0 = arith.constant 0 : i32
    %c0_i32_1 = arith.constant 0 : i32
    %c0_i32_2 = arith.constant 0 : i32
    return %c0_i32, %c0_i32_0, %c0_i32_1 : i32, i32, i32
  }
  func.func @transform_2(%arg0: i32, %arg1: i32) -> (i32, i32) {
    %c0_i32 = arith.constant 0 : i32
    %c0_i32_0 = arith.constant 0 : i32
    %c0_i32_1 = arith.constant 0 : i32
    return %c0_i32, %c0_i32_0 : i32, i32
  }
  func.func @transform_3(%arg0: i32, %arg1: i32) -> (i32, i32, i32, i32) {
    %c0_i32 = arith.constant 0 : i32
    %c0_i32_0 = arith.constant 0 : i32
    %c0_i32_1 = arith.constant 0 : i32
    return %arg0, %arg1, %c0_i32, %c0_i32_0 : i32, i32, i32, i32
  }
}

</mosaic_0001>

<bundles_post_ra>
// kernel: _lambda_.8
= control target key start
LH: loop header
LB: loop body
LE: loop exit
PB: predicated region body
PF: predicated region fallthrough
CT: control target
= control target key end

     0   :  { %s1728_s12 = smov 0   ;;  %s1730_s13 = smov 0   ;;  %s1962_s0 = inlined_call_operand.vmem [shape: bf16[2,432,12], index: 0, kind: input, shape index: {}]   ;;  %s1963_s1 = inlined_call_operand.vmem [shape: bf16[3,12,64], index: 1, kind: input, shape index: {}]   ;;  %s1964_s2 = inlined_call_operand.vmem [shape: f32[1,64], index: 2, kind: input, shape index: {}]   ;;  %s1965_s3 = inlined_call_operand.vmem [shape: bf16[2,16,16,64], index: 3, kind: output, shape index: {}]  }
   0x1   :  { %s1732_s14 = smov 0   ;;  %s1734_s15 = smov 0  }
   0x2   :  { %s1736_s16 = smov 0  }
   0x3 LB: > { %s22_s17 = sadd.s32 1, %s1698_s14  ;;  %s25_s18 = sadd.s32 1, %s1702_s15  ;;  %s1706_s16 = sphi %s1736_s16, %s13_s16   ;;  %s1702_s15 = sphi %s1734_s15, %s1969_s15   ;;  %s1698_s14 = sphi %s1732_s14, %s1968_s14   ;;  %s1694_s13 = sphi %s1730_s13, %s1967_s13   ;;  %s1690_s12 = sphi %s1728_s12, %s1966_s12  }
   0x4   : > { %p23_p0 = scmp.ge.s32.totalorder %s22_s17, 2  ;;  %p1294_p1 = scmp.ge.s32.totalorder %s1706_s16, 1 }
   0x5   : > { %p151_p2 = scmp.lt.s32.totalorder %s1706_s16, 5 }
   0x6   : > { %s1971_s17 = smov (%p23_p0, %s22_s17), 0  ;;  %s1973_s18 = smov (!%p23_p0, %s25_s18), %s1702_s15 }
   0x7   : > { %p152_p3 = pnand %p1294_p1, %p151_p2  ;;  %p27_p4 = scmp.ge.s32.totalorder %s1973_s18, 2 }
   0x8   : > { %v1629_v0 = vld [vmem:[%s1963_s1 + $0x8] sm:$0x3f] (!%p152_p3)   ;;  %vm362_vm0 = vcmask (!%p152_p3), 1045504   ;;  %p180_p5 = scmp.lt.s32.totalorder (!%p152_p3), %s1694_s13, 1  ;;  %v1630_v1 = vld [vmem:[%s1963_s1] sm:$0x3f] (!%p152_p3)  }
   0x9   : > { %s1975_s18 = smov (%p27_p4, %s1973_s18), 0  ;;  %155 = sbr.rel (%p152_p3) target bundleno = 322 (0x142), region = 32 }
   0xa   : > { %1584 = vmatprep.subr.msk.bf16.mxu1 (!%p152_p3), %vm362_vm0, %v1629_v0  ;;  %v364_v2 = vsel (!%p152_p3), %vm362_vm0, %v1629_v0, 0  ;;  %s1769_s23 = smul.u32 (!%p152_p3), 192, %s1690_s12  ;;  %1585 = vmatprep.subr.msk.bf16.mxu0 (!%p152_p3), %vm362_vm0, %v1630_v1  ;;  %v597_v3 = vsel (!%p152_p3), %vm362_vm0, %v1630_v1, 0  ;;  %v1633_v4 = vld [vmem:[%s1963_s1 + $0x10] sm:$0x3f] (!%p152_p3)   ;;  %vm325_vm1 = vcmask (!%p152_p3), 97280  }
   0xb   : > { %1457 = vmatpush3.bf16.msra.mxu1 (!%p152_p3), %v364_v2  ;;  %1483 = vmatpush3.bf16.msra.mxu0 (!%p152_p3), %v597_v3  ;;  %v862_v10 = vsel (!%p152_p3), %vm362_vm0, %v1633_v4, 0  ;;  %s1296_s21 = sshll.u32 (!%p152_p3), %s1690_s12, 3  ;;  %v1875_v55 = vld [vmem:[%s1964_s2] ss:$0 sm:$0xff] (!%p152_p3)  ;;  %vm1072_vm2 = vcmask (!%p152_p3), 523264   ;;  %vm1177_vm3 = vcmask (!%p152_p3), 519168  }
   0xc   : > { %s228_s24 = sadd.s32 (!%p152_p3), 24, %s1769_s23  ;;  %1586 = vmatprep.subr.msk.bf16.mxu1 (!%p152_p3), %vm362_vm0, %v1630_v1  ;;  %1587 = vmatprep.subr.msk.bf16.mxu0 (!%p152_p3), %vm362_vm0, %v1633_v4  ;;  %s198_s7 = sshra.s32 (!%p152_p3), %s1769_s23, 3 }
   0xd   : > { %s229_s28 = sshra.s32 (!%p152_p3), %s228_s24, 3  ;;  %s1300_s8 = sshll.u32 (!%p152_p3), %s198_s7, 2 }
   0xe   : > { %s1301_s29 = sshll.u32 (!%p152_p3), %s229_s28, 2  ;;  %s728_s10 = sadd.s32 (!%p152_p3), 48, %s1769_s23 }
   0xf   : > { %s729_s11 = sshra.s32 (!%p152_p3), %s728_s10, 3  ;;  %p188_p6 = scmp.lt.s32.totalorder (!%p152_p3), %s1296_s21, 15 }
  0x10   : > { %s1977_s13 = smov (!%p180_p5, %s1694_s13), 1  ;;  %s1354_s19 = sshll.u32 %s729_s11, 2 }
  0x11   : > { %s1588_s27 = smul.u32 216, %s1977_s13  ;;  %s1979_s21 = smov (!%p188_p6, %s1296_s21), 15 }
  0x12   : > { %s1297_s12 = sshll.u32 %s1979_s21, 1  ;;  %s1298_s24 = sshll.u32 %s1977_s13, 5 }
  0x13   : > { %s1785_s5 = scalar_lea.vmem %s1962_s0, %s1588_s27  ;;  %s192_s25 = sadd.s32 %s1298_s24, %s1297_s12 }
  0x14   : > { %s1788_s6 = scalar_lea.vmem %s1785_s5, %s1301_s29  ;;  %s1795_s9 = scalar_lea.vmem %s1785_s5, %s1300_s8 }
  0x15   : > { %v1631_v5 = vld [vmem:[%s1788_s6] sm:$0xff]   ;;  %v1634_v6 = vld [vmem:[%s1788_s6 + $0x8] sm:$0xff]   ;;  %v1636_v7 = vld [vmem:[%s1788_s6 + $0x10] sm:$0xff]   ;;  %s1814_s20 = scalar_lea.vmem %s1785_s5, %s1354_s19  ;;  %s1299_s13 = sshll.u32 %s192_s25, 2 }
  0x16   : > { %1458 = vmatprep.mubr.msk.bf16.mxu1 %vm325_vm1, %v1631_v5  ;;  %v1632_v8 = vld [vmem:[%s1795_s9] sm:$0xff]   ;;  %v1635_v9 = vld [vmem:[%s1795_s9 + $0x8] sm:$0xff]   ;;  %v1637_v11 = vld [vmem:[%s1795_s9 + $0x10] sm:$0xff]   ;;  %s1890_s28 = scalar_lea.vmem %s1965_s3, %s1299_s13 }
  0x17   : > { %1459 = vmatmul.mubr.msk.bf16.vlgmr.msra.gmra.mrb[0].mxu1 %vm325_vm1, %v1634_v6  ;;  %1484 = vmatprep.mubr.msk.bf16.mxu0 %vm325_vm1, %v1632_v8  ;;  %v1638_v12 = vld [vmem:[%s1788_s6 + $0x18] sm:$0xff]   ;;  %v1640_v13 = vld [vmem:[%s1788_s6 + $0x20] sm:$0xff]   ;;  %v1642_v16 = vld [vmem:[%s1788_s6 + $0x28] sm:$0xff]  }
  0x18   : > { %1535 = vmatpush3.bf16.msra.mxu1 %v597_v3  ;;  %1462 = vmatprep.mubr.msk.bf16.mxu1 %vm325_vm1, %v1636_v7  ;;  %v1639_v14 = vld [vmem:[%s1795_s9 + $0x18] sm:$0xff]   ;;  %v1641_v15 = vld [vmem:[%s1795_s9 + $0x20] sm:$0xff]   ;;  %v1644_v17 = vld [vmem:[%s1788_s6 + $0x30] sm:$0xff]  }
  0x19   : > { %1485 = vmatmul.mubr.msk.bf16.vlgmr.msra.gmra.mrb[0].mxu0 %vm325_vm1, %v1635_v9  ;;  %v1643_v18 = vld [vmem:[%s1795_s9 + $0x28] sm:$0xff]   ;;  %v1645_v19 = vld [vmem:[%s1814_s20] sm:$0xff]   ;;  %v1646_v20 = vld [vmem:[%s1788_s6 + $0x38] sm:$0xff]  }
  0x1a   : > { %1509 = vmatpush3.bf16.msra.mxu0 %v862_v10  ;;  %1488 = vmatprep.mubr.msk.bf16.mxu0 %vm325_vm1, %v1637_v11  ;;  %v1648_v21 = vld [vmem:[%s1788_s6 + $0x40] sm:$0xff]   ;;  %v1647_v22 = vld [vmem:[%s1814_s20 + $0x8] sm:$0xff]   ;;  %v1649_v23 = vld [vmem:[%s1814_s20 + $0x10] sm:$0xff]  }
  0x1b   : > { %v1650_v24 = vld [vmem:[%s1788_s6 + $0x48] sm:$0xff]   ;;  %v1652_v25 = vld [vmem:[%s1788_s6 + $0x50] sm:$0xff]   ;;  %v1651_v26 = vld [vmem:[%s1814_s20 + $0x18] sm:$0xff]  }
  0x1c   : > { %v1653_v27 = vld [vmem:[%s1814_s20 + $0x20] sm:$0xff]   ;;  %v1654_v28 = vld [vmem:[%s1788_s6 + $0x58] sm:$0xff]   ;;  %v1656_v29 = vld [vmem:[%s1795_s9 + $0x30] sm:$0xff]  }
  0x1d   : > { %v1655_v30 = vld [vmem:[%s1814_s20 + $0x28] sm:$0xff]   ;;  %v1657_v31 = vld [vmem:[%s1814_s20 + $0x30] sm:$0xff]   ;;  %v1658_v32 = vld [vmem:[%s1795_s9 + $0x38] sm:$0xff]  }
  0x1e   : > { %v1660_v33 = vld [vmem:[%s1795_s9 + $0x40] sm:$0xff]   ;;  %v1659_v34 = vld [vmem:[%s1814_s20 + $0x38] sm:$0xff]   ;;  %v1662_v36 = vld [vmem:[%s1795_s9 + $0x48] sm:$0xff]  }
  0x1f   : > { %1463 = vmatmul.mubr.msk.bf16.gmra.mrb[4].mxu1 %vm325_vm1, %v1638_v12  ;;  %v1661_v35 = vld [vmem:[%s1814_s20 + $0x40] sm:$0xff]   ;;  %v1664_v37 = vld [vmem:[%s1795_s9 + $0x50] sm:$0xff]   ;;  %v1663_v38 = vld [vmem:[%s1814_s20 + $0x48] sm:$0xff]  }
  0x20   : > { %1466 = vmatprep.mubr.msk.bf16.mxu1 %vm325_vm1, %v1640_v13  ;;  %v1665_v39 = vld [vmem:[%s1814_s20 + $0x50] sm:$0xff]   ;;  %v1666_v40 = vld [vmem:[%s1795_s9 + $0x58] sm:$0xff]  }
  0x21   : > { %1489 = vmatmul.mubr.msk.bf16.gmra.mrb[4].mxu0 %vm325_vm1, %v1639_v14  ;;  %v1667_v41 = vld [vmem:[%s1814_s20 + $0x58] sm:$0xff]  }
  0x22   : > { %1492 = vmatprep.mubr.msk.bf16.mxu0 %vm325_vm1, %v1641_v15 }
  0x27   : > { %1467 = vmatmul.mubr.msk.bf16.gmra.mrb[8].mxu1 %vm325_vm1, %v1642_v16 }
  0x28   : > { %1470 = vmatprep.mubr.msk.bf16.mxu1 %vm325_vm1, %v1644_v17 }
  0x29   : > { %1493 = vmatmul.mubr.msk.bf16.gmra.mrb[8].mxu0 %vm325_vm1, %v1643_v18 }
  0x2a   : > { %1510 = vmatprep.mubr.msk.bf16.mxu0 %vm325_vm1, %v1645_v19 }
  0x2f   : > { %1471 = vmatmul.mubr.msk.bf16.gmra.mrb[12].mxu1 %vm325_vm1, %v1646_v20 }
  0x30   : > { %1474 = vmatprep.mubr.msk.bf16.mxu1 %vm325_vm1, %v1648_v21 }
  0x31   : > { %1511 = vmatmul.mubr.msk.bf16.vlgmr.msra.gmra.mrb[0].mxu0 %vm325_vm1, %v1647_v22 }
  0x32   : > { %1514 = vmatprep.mubr.msk.bf16.mxu0 %vm325_vm1, %v1649_v23 }
  0x37   : > { %1475 = vmatmul.mubr.msk.bf16.gmra.mrb[16].mxu1 %vm325_vm1, %v1650_v24 }
  0x38   : > { %1478 = vmatprep.mubr.msk.bf16.mxu1 %vm325_vm1, %v1652_v25 }
  0x39   : > { %1515 = vmatmul.mubr.msk.bf16.gmra.mrb[4].mxu0 %vm325_vm1, %v1651_v26 }
  0x3a   : > { %1518 = vmatprep.mubr.msk.bf16.mxu0 %vm325_vm1, %v1653_v27 }
  0x3f   : > { %1479 = vmatmul.mubr.msk.bf16.gmra.mrb[20].mxu1 %vm325_vm1, %v1654_v28 }
  0x40   : > { %1496 = vmatprep.mubr.msk.bf16.mxu1 %vm325_vm1, %v1656_v29 }
  0x41   : > { %1519 = vmatmul.mubr.msk.bf16.gmra.mrb[8].mxu0 %vm325_vm1, %v1655_v30 }
  0x42   : > { %1522 = vmatprep.mubr.msk.bf16.mxu0 %vm325_vm1, %v1657_v31 }
  0x47   : > { %1497 = vmatmul.mubr.msk.bf16.vlgmr.msra.gmra.mrb[12].mxu1 %vm325_vm1, %v1658_v32 }
  0x48   : > { %1500 = vmatprep.mubr.msk.bf16.mxu1 %vm325_vm1, %v1660_v33 }
  0x49   : > { %1523 = vmatmul.mubr.msk.bf16.gmra.mrb[12].mxu0 %vm325_vm1, %v1659_v34 }
  0x4a   : > { %1526 = vmatprep.mubr.msk.bf16.mxu0 %vm325_vm1, %v1661_v35 }
  0x4f   : > { %1501 = vmatmul.mubr.msk.bf16.gmra.mrb[16].mxu1 %vm325_vm1, %v1662_v36 }
  0x50   : > { %1504 = vmatprep.mubr.msk.bf16.mxu1 %vm325_vm1, %v1664_v37 }
  0x51   : > { %1527 = vmatmul.mubr.msk.bf16.gmra.mrb[16].mxu0 %vm325_vm1, %v1663_v38 }
  0x52   : > { %1530 = vmatprep.mubr.msk.bf16.mxu0 %vm325_vm1, %v1665_v39 }
  0x57   : > { %1505 = vmatmul.mubr.msk.bf16.gmra.mrb[20].mxu1 %vm325_vm1, %v1666_v40 }
  0x59   : > { %1531 = vmatmul.mubr.msk.bf16.gmra.mrb[20].mxu0 %vm325_vm1, %v1667_v41 }
  0xea   : > { %v1460_v42 = vpop.f32.mrb[0].mxu1 }
  0xeb   : > { %v400_v43 = vpop.f32.mrb[1].mxu1 }
  0xec   : > { %v1461_v44 = vpop.f32.mrb[2].mxu1 }
  0xed   : > { %v403_v45 = vpop.f32.mrb[3].mxu1 }
  0xf2   : > { %v1464_v46 = vpop.f32.mrb[4].mxu1 }
  0xf3   : > { %v416_v47 = vpop.f32.mrb[5].mxu1 }
  0xf4   : > { %v1465_v48 = vpop.f32.mrb[6].mxu1 }
  0xf5   : > { %v419_v49 = vpop.f32.mrb[7].mxu1 }
  0xfa   : > { %v1468_v50 = vpop.f32.mrb[8].mxu1 }
  0xfb   : > { %v432_v51 = vpop.f32.mrb[9].mxu1 }
  0xfc   : > { %v1469_v52 = vpop.f32.mrb[10].mxu1 }
  0xfd   : > { %v435_v53 = vpop.f32.mrb[11].mxu1 }
 0x104   : > { %v1512_v54 = vpop.f32.mrb[0].mxu0 }
 0x105   : > { %v898_v56 = vpop.f32.mrb[1].mxu0 }
 0x106   : > { %v1537_v57 = vadd.f32 %v898_v56, %v400_v43  ;;  %v1513_v58 = vpop.f32.mrb[2].mxu0 }
 0x107   : > { %v1538_v59 = vadd.f32 %v1513_v58, %v1461_v44  ;;  %v901_v60 = vpop.f32.mrb[3].mxu0 }
 0x108   : > { %v1024_v61 = vadd.f32 %v1537_v57, %v1875_v55  ;;  %v1539_v62 = vadd.f32 %v901_v60, %v403_v45 }
 0x109   : > { %v1027_v63 = vadd.f32 %v1538_v59, %v1875_v55 }
 0x10a   : > { %v1048_v0 = vmax.f32 %v1024_v61, 0.0  ;;  %v1025_v1 = vadd.f32 %v1539_v62, %v1875_v55 }
 0x10b   : > { %v1051_v2 = vmax.f32 %v1027_v63, 0.0 }
 0x10c   : > { %1073 = vst.msk [vmem:[#allocation2] sm:$0xff] %vm1072_vm2, %v1048_v0  ;;  %v1049_v3 = vmax.f32 %v1025_v1, 0.0  ;;  %v1516_v4 = vpop.f32.mrb[4].mxu0 }
 0x10d   : > { %1076 = vst.msk [vmem:[#allocation2 + $0x18] sm:$0xff] %vm1072_vm2, %v1051_v2  ;;  %v1540_v5 = vadd.f32 %v1516_v4, %v1464_v46  ;;  %v914_v6 = vpop.f32.mrb[5].mxu0 }
 0x10e   : > { %1074 = vst.msk [vmem:[#allocation2 + $0x8] sm:$0xff] %vm1072_vm2, %v1049_v3  ;;  %v1541_v7 = vadd.f32 %v914_v6, %v416_v47  ;;  %v1517_v8 = vpop.f32.mrb[6].mxu0 }
 0x10f   : > { %v1030_v9 = vadd.f32 %v1540_v5, %v1875_v55  ;;  %v1542_v10 = vadd.f32 %v1517_v8, %v1465_v48  ;;  %v917_v11 = vpop.f32.mrb[7].mxu0 }
 0x110   : > { %v1028_v12 = vadd.f32 %v1541_v7, %v1875_v55 }
 0x111   : > { %v1054_v13 = vmax.f32 %v1030_v9, 0.0  ;;  %v1031_v14 = vadd.f32 %v1542_v10, %v1875_v55 }
 0x112   : > { %v1052_v15 = vmax.f32 %v1028_v12, 0.0 }
 0x113   : > { %v1097_v16 = vld [vmem:[#allocation2] sm:$0xff]  ;;  %1079 = vst.msk [vmem:[#allocation2 + $0x30] sm:$0xff] %vm1072_vm2, %v1054_v13  ;;  %v1055_v17 = vmax.f32 %v1031_v14, 0.0 }
 0x114   : > { %v1401_v18 = vpack.c.bf16 %v1097_v16, %v1097_v16  ;;  %v1099_v19 = vld [vmem:[#allocation2 + $0x18] sm:$0xff]  ;;  %1077 = vst.msk [vmem:[#allocation2 + $0x20] sm:$0xff] %vm1072_vm2, %v1052_v15  ;;  %v1520_v20 = vpop.f32.mrb[8].mxu0 }
 0x115   : > { %v1403_v21 = vpack.c.bf16 %v1099_v19, %v1099_v19  ;;  %v1098_v22 = vld [vmem:[#allocation2 + $0x8] sm:$0xff]  ;;  %1080 = vst.msk [vmem:[#allocation2 + $0x38] sm:$0xff] %vm1072_vm2, %v1055_v17  ;;  %v1544_v23 = vadd.f32 %v1520_v20, %v1468_v50  ;;  %v930_v24 = vpop.f32.mrb[9].mxu0 }
 0x116   : > { %1178 = vst.msk [vmem:[%s1890_s28] sm:$0xf] %vm1177_vm3, %v1401_v18  ;;  %v1402_v25 = vpack.c.bf16 %v1098_v22, %v1098_v22  ;;  %v1521_v26 = vpop.f32.mrb[10].mxu0 }
 0x117   : > { %1180 = vst.msk [vmem:[%s1890_s28 + $0x8] sm:$0xf] %vm1177_vm3, %v1403_v21  ;;  %v1034_v27 = vadd.f32 %v1544_v23, %v1875_v55  ;;  %v933_v28 = vpop.f32.mrb[11].mxu0 }
 0x118   : > { %1179 = vst.msk [vmem:[%s1890_s28 + $0x4] sm:$0xf] %vm1177_vm3, %v1402_v25  ;;  %v1547_v29 = vadd.f32 %v933_v28, %v435_v53 }
 0x119   : > { %v1058_v30 = vmax.f32 %v1034_v27, 0.0 }
 0x11a   : > { %v1498_v31 = vpop.f32.mrb[12].mxu1  ;;  %v1101_v32 = vld [vmem:[#allocation2 + $0x30] sm:$0xff]  ;;  %v1033_v33 = vadd.f32 %v1547_v29, %v1875_v55 }
 0x11b   : > { %v681_v34 = vpop.f32.mrb[13].mxu1  ;;  %v1405_v35 = vpack.c.bf16 %v1101_v32, %v1101_v32  ;;  %v1100_v36 = vld [vmem:[#allocation2 + $0x20] sm:$0xff]  ;;  %1083 = vst.msk [vmem:[#allocation2 + $0x50] sm:$0xff] %vm1072_vm2, %v1058_v30 }
 0x11c   : > { %v1499_v37 = vpop.f32.mrb[14].mxu1  ;;  %v1404_v38 = vpack.c.bf16 %v1100_v36, %v1100_v36  ;;  %v1102_v39 = vld [vmem:[#allocation2 + $0x38] sm:$0xff]  ;;  %v1057_v40 = vmax.f32 %v1033_v33, 0.0  ;;  %v1524_v41 = vpop.f32.mrb[12].mxu0 }
 0x11d   : > { %v684_v42 = vpop.f32.mrb[15].mxu1  ;;  %1182 = vst.msk [vmem:[%s1890_s28 + $0x10] sm:$0xf] %vm1177_vm3, %v1405_v35  ;;  %v1406_v43 = vpack.c.bf16 %v1102_v39, %v1102_v39  ;;  %v946_v44 = vpop.f32.mrb[13].mxu0 }
 0x11e   : > { %1181 = vst.msk [vmem:[%s1890_s28 + $0xc] sm:$0xf] %vm1177_vm3, %v1404_v38  ;;  %v1549_v45 = vadd.f32 %v946_v44, %v681_v34  ;;  %v1525_v46 = vpop.f32.mrb[14].mxu0 }
 0x11f   : > { %1082 = vst.msk [vmem:[#allocation2 + $0x48] sm:$0xff] %vm1072_vm2, %v1057_v40  ;;  %v1550_v47 = vadd.f32 %v1525_v46, %v1499_v37  ;;  %v949_v48 = vpop.f32.mrb[15].mxu0 }
 0x120   : > { %1183 = vst.msk [vmem:[%s1890_s28 + $0x14] sm:$0xf] %vm1177_vm3, %v1406_v43  ;;  %v1036_v49 = vadd.f32 %v1549_v45, %v1875_v55  ;;  %v1551_v50 = vadd.f32 %v949_v48, %v684_v42 }
 0x121   : > { %v1039_v51 = vadd.f32 %v1550_v47, %v1875_v55 }
 0x122   : > { %v1502_v52 = vpop.f32.mrb[16].mxu1  ;;  %v1104_v53 = vld [vmem:[#allocation2 + $0x50] sm:$0xff]  ;;  %v1060_v54 = vmax.f32 %v1036_v49, 0.0  ;;  %v1037_v56 = vadd.f32 %v1551_v50, %v1875_v55 }
 0x123   : > { %v697_v57 = vpop.f32.mrb[17].mxu1  ;;  %v1408_v58 = vpack.c.bf16 %v1104_v53, %v1104_v53  ;;  %v1063_v59 = vmax.f32 %v1039_v51, 0.0 }
 0x124   : > { %v1503_v60 = vpop.f32.mrb[18].mxu1  ;;  %1085 = vst.msk [vmem:[#allocation2 + $0x60] sm:$0xff] %vm1072_vm2, %v1060_v54  ;;  %v1061_v61 = vmax.f32 %v1037_v56, 0.0  ;;  %v1528_v62 = vpop.f32.mrb[16].mxu0 }
 0x125   : > { %v700_v63 = vpop.f32.mrb[19].mxu1  ;;  %1185 = vst.msk [vmem:[%s1890_s28 + $0x1c] sm:$0xf] %vm1177_vm3, %v1408_v58  ;;  %v1552_v1 = vadd.f32 %v1528_v62, %v1502_v52  ;;  %v962_v2 = vpop.f32.mrb[17].mxu0 }
 0x126   : > { %v1103_v0 = vld [vmem:[#allocation2 + $0x48] sm:$0xff]  ;;  %1088 = vst.msk [vmem:[#allocation2 + $0x78] sm:$0xff] %vm1072_vm2, %v1063_v59  ;;  %1086 = vst.msk [vmem:[#allocation2 + $0x68] sm:$0xff] %vm1072_vm2, %v1061_v61  ;;  %v1553_v4 = vadd.f32 %v962_v2, %v697_v57  ;;  %v1529_v5 = vpop.f32.mrb[18].mxu0 }
 0x127   : > { %v1407_v3 = vpack.c.bf16 %v1103_v0, %v1103_v0  ;;  %v1042_v6 = vadd.f32 %v1552_v1, %v1875_v55  ;;  %v1554_v7 = vadd.f32 %v1529_v5, %v1503_v60  ;;  %v965_v8 = vpop.f32.mrb[19].mxu0 }
 0x128   : > { %v1040_v9 = vadd.f32 %v1553_v4, %v1875_v55 }
 0x129   : > { %1184 = vst.msk [vmem:[%s1890_s28 + $0x18] sm:$0xf] %vm1177_vm3, %v1407_v3  ;;  %v1066_v10 = vmax.f32 %v1042_v6, 0.0  ;;  %v1043_v11 = vadd.f32 %v1554_v7, %v1875_v55 }
 0x12a   : > { %v1506_v12 = vpop.f32.mrb[20].mxu1  ;;  %v1064_v13 = vmax.f32 %v1040_v9, 0.0 }
 0x12b   : > { %v713_v14 = vpop.f32.mrb[21].mxu1  ;;  %v1105_v15 = vld [vmem:[#allocation2 + $0x60] sm:$0xff]  ;;  %1091 = vst.msk [vmem:[#allocation2 + $0x90] sm:$0xff] %vm1072_vm2, %v1066_v10  ;;  %v1067_v16 = vmax.f32 %v1043_v11, 0.0 }
 0x12c   : > { %v1507_v17 = vpop.f32.mrb[22].mxu1  ;;  %v1409_v18 = vpack.c.bf16 %v1105_v15, %v1105_v15  ;;  %1089 = vst.msk [vmem:[#allocation2 + $0x80] sm:$0xff] %vm1072_vm2, %v1064_v13  ;;  %v1532_v20 = vpop.f32.mrb[20].mxu0 }
 0x12d   : > { %v1107_v19 = vld [vmem:[#allocation2 + $0x78] sm:$0xff]  ;;  %v716_v21 = vpop.f32.mrb[23].mxu1  ;;  %v1106_v23 = vld [vmem:[#allocation2 + $0x68] sm:$0xff]  ;;  %1092 = vst.msk [vmem:[#allocation2 + $0x98] sm:$0xff] %vm1072_vm2, %v1067_v16  ;;  %v1556_v24 = vadd.f32 %v1532_v20, %v1506_v12  ;;  %v978_v25 = vpop.f32.mrb[21].mxu0 }
 0x12e   : > { %v1411_v22 = vpack.c.bf16 %v1107_v19, %v1107_v19  ;;  %1186 = vst.msk [vmem:[%s1890_s28 + $0x20] sm:$0xf] %vm1177_vm3, %v1409_v18  ;;  %v1410_v26 = vpack.c.bf16 %v1106_v23, %v1106_v23  ;;  %v1533_v27 = vpop.f32.mrb[22].mxu0 }
 0x12f   : > { %v1046_v28 = vadd.f32 %v1556_v24, %v1875_v55  ;;  %v981_v29 = vpop.f32.mrb[23].mxu0 }
 0x130   : > { %1188 = vst.msk [vmem:[%s1890_s28 + $0x28] sm:$0xf] %vm1177_vm3, %v1411_v22  ;;  %1187 = vst.msk [vmem:[%s1890_s28 + $0x24] sm:$0xf] %vm1177_vm3, %v1410_v26  ;;  %v1559_v30 = vadd.f32 %v981_v29, %v716_v21 }
 0x131   : > { %v1070_v31 = vmax.f32 %v1046_v28, 0.0 }
 0x132   : > { %v1109_v32 = vld [vmem:[#allocation2 + $0x90] sm:$0xff]  ;;  %v1045_v33 = vadd.f32 %v1559_v30, %v1875_v55 }
 0x133   : > { %v1413_v34 = vpack.c.bf16 %v1109_v32, %v1109_v32  ;;  %v1108_v35 = vld [vmem:[#allocation2 + $0x80] sm:$0xff]  ;;  %1095 = vst.msk [vmem:[#allocation2 + $0xb0] sm:$0xff] %vm1072_vm2, %v1070_v31 }
 0x134   : > { %v1412_v36 = vpack.c.bf16 %v1108_v35, %v1108_v35  ;;  %v1110_v37 = vld [vmem:[#allocation2 + $0x98] sm:$0xff]  ;;  %v1069_v38 = vmax.f32 %v1045_v33, 0.0 }
 0x135   : > { %1190 = vst.msk [vmem:[%s1890_s28 + $0x30] sm:$0xf] %vm1177_vm3, %v1413_v34  ;;  %v1414_v39 = vpack.c.bf16 %v1110_v37, %v1110_v37 }
 0x136   : > { %1189 = vst.msk [vmem:[%s1890_s28 + $0x2c] sm:$0xf] %vm1177_vm3, %v1412_v36 }
 0x137   : > { %1094 = vst.msk [vmem:[#allocation2 + $0xa8] sm:$0xff] %vm1072_vm2, %v1069_v38 }
 0x138   : > { %1191 = vst.msk [vmem:[%s1890_s28 + $0x34] sm:$0xf] %vm1177_vm3, %v1414_v39 }
 0x13a   : > { %v1112_v40 = vld [vmem:[#allocation2 + $0xb0] sm:$0xff] }
 0x13b   : > { %v1416_v41 = vpack.c.bf16 %v1112_v40, %v1112_v40 }
 0x13d   : > { %1193 = vst.msk [vmem:[%s1890_s28 + $0x3c] sm:$0xf] %vm1177_vm3, %v1416_v41 }
 0x13e   : > { %v1111_v55 = vld [vmem:[#allocation2 + $0xa8] sm:$0xff] }
 0x13f   : > { %v1415_v42 = vpack.c.bf16 %v1111_v55, %v1111_v55 }
 0x141   : > { %1192 = vst.msk [vmem:[%s1890_s28 + $0x38] sm:$0xf] %vm1177_vm3, %v1415_v42 }
 0x142 PF: > { %s13_s16 = sadd.s32 1, %s1706_s16   ;;  %s1966_s12 = smov %s1698_s14 }
 0x143   : > { %p10_p7 = scmp.ge.s32.totalorder %s13_s16, 6   ;;  %s1967_s13 = smov %s1702_s15 }
 0x144   : > { %s1968_s14 = smov %s1971_s17  ;;  %s1969_s15 = smov %s1975_s18 }
 0x145   :  { %12 = sbr.rel (!%p10_p7) target bundleno = 3 (0x3), region = 67 }

// kernel: _lambda_.9
= control target key start
LH: loop header
LB: loop body
LE: loop exit
PB: predicated region body
PF: predicated region fallthrough
CT: control target
= control target key end

     0   :  { %s2124_s12 = smov 0   ;;  %s2126_s13 = smov 0   ;;  %s2549_s0 = inlined_call_operand.vmem [shape: bf16[2,432,192], index: 0, kind: input, shape index: {}]   ;;  %s2550_s1 = inlined_call_operand.vmem [shape: bf16[3,192,64], index: 1, kind: input, shape index: {}]   ;;  %s2551_s2 = inlined_call_operand.vmem [shape: f32[1,64], index: 2, kind: input, shape index: {}]   ;;  %s2552_s3 = inlined_call_operand.vmem [shape: bf16[2,8,8,64], index: 3, kind: output, shape index: {}]  }
   0x1   :  { %s2128_s14 = smov 0   ;;  %s2130_s15 = smov 0  }
   0x2   :  { %s2132_s16 = smov 0  }
   0x3 LB: > { %s22_s17 = sadd.s32 1, %s2093_s14  ;;  %s25_s18 = sadd.s32 1, %s2097_s15  ;;  %s2101_s16 = sphi %s2132_s16, %s13_s16   ;;  %s2097_s15 = sphi %s2130_s15, %s2556_s15   ;;  %s2093_s14 = sphi %s2128_s14, %s2555_s14   ;;  %s2089_s13 = sphi %s2126_s13, %s2554_s13   ;;  %s2085_s12 = sphi %s2124_s12, %s2553_s12  }
   0x4   : > { %p23_p0 = scmp.ge.s32.totalorder %s22_s17, 2  ;;  %p1644_p1 = scmp.ge.s32.totalorder %s2101_s16, 1 }
   0x5   : > { %p151_p2 = scmp.lt.s32.totalorder %s2101_s16, 5 }
   0x6   : > { %s2558_s17 = smov (%p23_p0, %s22_s17), 0  ;;  %s2560_s18 = smov (!%p23_p0, %s25_s18), %s2097_s15 }
   0x7   : > { %p152_p3 = pnand %p1644_p1, %p151_p2  ;;  %p27_p4 = scmp.ge.s32.totalorder %s2560_s18, 2 }
   0x8   : > { %v1919_v0 = vld [vmem:[%s2550_s1 + $0x60] sm:$0xff] (!%p152_p3)   ;;  %v2103_v1 = vmov (!%p152_p3), 0   ;;  %p179_p5 = scmp.lt.s32.totalorder (!%p152_p3), %s2089_s13, 1  ;;  %v1920_v2 = vld [vmem:[%s2550_s1 + $0x68] sm:$0xff] (!%p152_p3)   ;;  %s2165_s23 = smul.u32 (!%p152_p3), 192, %s2085_s12  ;;  %v1921_v3 = vld [vmem:[%s2550_s1 + $0x70] sm:$0xff] (!%p152_p3)  }
   0x9   : > { %s2562_s18 = smov (%p27_p4, %s2560_s18), 0  ;;  %155 = sbr.rel (%p152_p3) target bundleno = 429 (0x1ad), region = 32 }
   0xa   : > { %521 = vmatprep.subr.bf16.mxu0 (!%p152_p3), %v2103_v1  ;;  %1853 = vmatprep.subr.bf16.mxu1 (!%p152_p3), %v2103_v1  ;;  %s249_s30 = sadd.s32 (!%p152_p3), 24, %s2165_s23  ;;  %v1922_v4 = vld [vmem:[%s2550_s1 + $0x78] sm:$0xff] (!%p152_p3)   ;;  %vm484_vm0 = vcmask (!%p152_p3), 523264   ;;  %v1923_v6 = vld [vmem:[%s2550_s1 + $0x80] sm:$0xff] (!%p152_p3)   ;;  %v1924_v8 = vld [vmem:[%s2550_s1 + $0x88] sm:$0xff] (!%p152_p3)   ;;  %s995_s9 = sadd.s32 (!%p152_p3), 48, %s2165_s23 }
   0xb   : > { %522 = vmatpush1.bf16.msra.mxu0 (!%p152_p3), %v1919_v0  ;;  %1865 = vmatpush1.bf16.msra.mxu1 (!%p152_p3), %v1919_v0  ;;  %s250_s4 = sshra.s32 (!%p152_p3), %s249_s30, 3  ;;  %v1925_v9 = vld [vmem:[%s2550_s1 + $0x90] sm:$0xff] (!%p152_p3)   ;;  %v1926_v10 = vld [vmem:[%s2550_s1 + $0x98] sm:$0xff] (!%p152_p3)   ;;  %v1927_v11 = vld [vmem:[%s2550_s1 + $0xa0] sm:$0xff] (!%p152_p3)   ;;  %s996_s19 = sshra.s32 (!%p152_p3), %s995_s9, 3  ;;  %vm1545_vm1 = vcmask (!%p152_p3), 519168  }
   0xc   : > { %523 = vmatprep.subr.bf16.mxu0 (!%p152_p3), %v2103_v1  ;;  %1854 = vmatprep.subr.bf16.mxu1 (!%p152_p3), %v2103_v1  ;;  %s1851_s5 = sshll.u32 (!%p152_p3), %s250_s4, 3  ;;  %v1928_v12 = vld [vmem:[%s2550_s1 + $0xa8] sm:$0xff] (!%p152_p3)   ;;  %v1929_v13 = vld [vmem:[%s2550_s1 + $0xb0] sm:$0xff] (!%p152_p3)   ;;  %v1930_v14 = vld [vmem:[%s2550_s1 + $0xb8] sm:$0xff] (!%p152_p3)   ;;  %s1852_s22 = sshll.u32 (!%p152_p3), %s996_s19, 3 }
   0xd   : > { %v1937_v17 = vld [vmem:[%s2550_s1] sm:$0xff] (!%p152_p3)   ;;  %v1939_v21 = vld [vmem:[%s2550_s1 + $0x8] sm:$0xff] (!%p152_p3)   ;;  %v1947_v25 = vld [vmem:[%s2550_s1 + $0x10] sm:$0xff] (!%p152_p3)   ;;  %s1646_s9 = sshll.u32 (!%p152_p3), %s2085_s12, 2 }
   0xe   : > { %v1938_v18 = vld [vmem:[%s2550_s1 + $0xc0] sm:$0xff] (!%p152_p3)   ;;  %v1940_v22 = vld [vmem:[%s2550_s1 + $0xc8] sm:$0xff] (!%p152_p3)   ;;  %v1948_v26 = vld [vmem:[%s2550_s1 + $0xd0] sm:$0xff] (!%p152_p3)   ;;  %p187_p6 = scmp.lt.s32.totalorder (!%p152_p3), %s1646_s9, 7 }
   0xf   : > { %524 = vmatpush1.bf16.msra.mxu0 (!%p152_p3), %v1920_v2  ;;  %1866 = vmatpush1.bf16.msra.mxu1 (!%p152_p3), %v1920_v2  ;;  %v1949_v29 = vld [vmem:[%s2550_s1 + $0x18] sm:$0xff] (!%p152_p3)   ;;  %v1957_v33 = vld [vmem:[%s2550_s1 + $0x20] sm:$0xff] (!%p152_p3)   ;;  %v1959_v37 = vld [vmem:[%s2550_s1 + $0x28] sm:$0xff] (!%p152_p3)  }
  0x10   : > { %s2564_s13 = smov (!%p179_p5, %s2089_s13), 1  ;;  %525 = vmatprep.subr.bf16.mxu0 %v2103_v1  ;;  %1855 = vmatprep.subr.bf16.mxu1 %v2103_v1  ;;  %v1950_v30 = vld [vmem:[%s2550_s1 + $0xd8] sm:$0xff]   ;;  %v1958_v34 = vld [vmem:[%s2550_s1 + $0xe0] sm:$0xff]   ;;  %v1960_v38 = vld [vmem:[%s2550_s1 + $0xe8] sm:$0xff]   ;;  %s2566_s9 = smov (!%p187_p6, %s1646_s9), 7 }
  0x11   : > { %s1877_s24 = smul.u32 432, %s2564_s13  ;;  %v1967_v41 = vld [vmem:[%s2550_s1 + $0x30] sm:$0xff]   ;;  %v1969_v45 = vld [vmem:[%s2550_s1 + $0x38] sm:$0xff]   ;;  %v1977_v49 = vld [vmem:[%s2550_s1 + $0x40] sm:$0xff]   ;;  %s1647_s12 = sshll.u32 %s2564_s13, 3 }
  0x12   : > { %v1968_v42 = vld [vmem:[%s2550_s1 + $0xf0] sm:$0xff]   ;;  %v1970_v46 = vld [vmem:[%s2550_s1 + $0xf8] sm:$0xff]   ;;  %v1978_v50 = vld [vmem:[%s2550_s1 + $0x100] sm:$0xff]   ;;  %s190_s10 = sadd.s32 %s1647_s12, %s2566_s9 }
  0x13   : > { %s2180_s29 = scalar_lea.vmem %s2549_s0, %s1877_s24  ;;  %526 = vmatpush1.bf16.msra.mxu0 %v1921_v3  ;;  %1867 = vmatpush1.bf16.msra.mxu1 %v1921_v3  ;;  %v1979_v53 = vld [vmem:[%s2550_s1 + $0x48] sm:$0xff]   ;;  %v1987_v57 = vld [vmem:[%s2550_s1 + $0x50] sm:$0xff]   ;;  %v1989_v61 = vld [vmem:[%s2550_s1 + $0x58] sm:$0xff]   ;;  %s1648_s13 = sshll.u32 %s190_s10, 2 }
  0x14   : > { %s2187_s8 = scalar_lea.vmem %s2180_s29, %s1851_s5  ;;  %527 = vmatprep.subr.bf16.mxu0 %v2103_v1  ;;  %1856 = vmatprep.subr.bf16.mxu1 %v2103_v1  ;;  %s196_s5 = sshra.s32 %s2165_s23, 3  ;;  %v1980_v54 = vld [vmem:[%s2550_s1 + $0x108] sm:$0xff]   ;;  %v1988_v58 = vld [vmem:[%s2550_s1 + $0x110] sm:$0xff]   ;;  %v1990_v62 = vld [vmem:[%s2550_s1 + $0x118] sm:$0xff]  }
  0x15   : > { %v1933_v5 = vld [vmem:[%s2187_s8 + $0x4] ss:$8 sps:$4 sm:$0xff]   ;;  %v1931_v15 = vld [vmem:[%s2187_s8] ss:$8 sps:$4 sm:$0xff]   ;;  %s1850_s23 = sshll.u32 %s196_s5, 3  ;;  %s2261_s30 = scalar_lea.vmem %s2180_s29, %s1852_s22 }
  0x16   : > { %v1936_v7 = vld [vmem:[%s2187_s8 + $0x64] ss:$8 sps:$4 sm:$0xff]   ;;  %1713 = vmatprep.mubr.msk.bf16.mxu0 %vm484_vm0, %v1933_v5  ;;  %v1934_v16 = vld [vmem:[%s2187_s8 + $0x60] ss:$8 sps:$4 sm:$0xff]   ;;  %v1941_v19 = vld [vmem:[%s2187_s8 + $0x14] ss:$8 sps:$4 sm:$0xff]   ;;  %s2256_s28 = scalar_lea.vmem %s2180_s29, %s1850_s23  ;;  %s2495_s20 = scalar_lea.vmem %s2552_s3, %s1648_s13 }
  0x17   : > { %528 = vmatpush1.bf16.msra.mxu0 %v1922_v4  ;;  %1868 = vmatpush1.bf16.msra.mxu1 %v1922_v4  ;;  %v1943_v20 = vld [vmem:[%s2187_s8 + $0x74] ss:$8 sps:$4 sm:$0xff]   ;;  %v1945_v23 = vld [vmem:[%s2187_s8 + $0x10] ss:$8 sps:$4 sm:$0xff]   ;;  %v1951_v27 = vld [vmem:[%s2187_s8 + $0x24] ss:$8 sps:$4 sm:$0xff]  }
  0x18   : > { %529 = vmatprep.subr.bf16.mxu0 %v2103_v1  ;;  %1857 = vmatprep.subr.bf16.mxu1 %v2103_v1  ;;  %v1946_v24 = vld [vmem:[%s2187_s8 + $0x70] ss:$8 sps:$4 sm:$0xff]   ;;  %v1953_v28 = vld [vmem:[%s2187_s8 + $0x84] ss:$8 sps:$4 sm:$0xff]   ;;  %v1955_v31 = vld [vmem:[%s2187_s8 + $0x20] ss:$8 sps:$4 sm:$0xff]  }
  0x19   : > { %1719 = vmatprep.mubr.msk.bf16.mxu1 %vm484_vm0, %v1936_v7  ;;  %v1956_v32 = vld [vmem:[%s2187_s8 + $0x80] ss:$8 sps:$4 sm:$0xff]   ;;  %v1961_v35 = vld [vmem:[%s2187_s8 + $0x34] ss:$8 sps:$4 sm:$0xff]   ;;  %v1965_v39 = vld [vmem:[%s2187_s8 + $0x30] ss:$8 sps:$4 sm:$0xff]  }
  0x1a   : > { %v1963_v36 = vld [vmem:[%s2187_s8 + $0x94] ss:$8 sps:$4 sm:$0xff]   ;;  %v1966_v40 = vld [vmem:[%s2187_s8 + $0x90] ss:$8 sps:$4 sm:$0xff]   ;;  %v1971_v43 = vld [vmem:[%s2187_s8 + $0x44] ss:$8 sps:$4 sm:$0xff]  }
  0x1b   : > { %530 = vmatpush1.bf16.msra.mxu0 %v1923_v6  ;;  %1869 = vmatpush1.bf16.msra.mxu1 %v1923_v6  ;;  %v1973_v44 = vld [vmem:[%s2187_s8 + $0xa4] ss:$8 sps:$4 sm:$0xff]   ;;  %v1975_v47 = vld [vmem:[%s2187_s8 + $0x40] ss:$8 sps:$4 sm:$0xff]   ;;  %v1981_v51 = vld [vmem:[%s2187_s8 + $0x54] ss:$8 sps:$4 sm:$0xff]  }
  0x1c   : > { %531 = vmatprep.subr.bf16.mxu0 %v2103_v1  ;;  %1858 = vmatprep.subr.bf16.mxu1 %v2103_v1  ;;  %v1976_v48 = vld [vmem:[%s2187_s8 + $0xa0] ss:$8 sps:$4 sm:$0xff]   ;;  %v1983_v52 = vld [vmem:[%s2187_s8 + $0xb4] ss:$8 sps:$4 sm:$0xff]   ;;  %v1985_v55 = vld [vmem:[%s2187_s8 + $0x50] ss:$8 sps:$4 sm:$0xff]  }
  0x1d   : > { %v1986_v56 = vld [vmem:[%s2187_s8 + $0xb0] ss:$8 sps:$4 sm:$0xff]   ;;  %v1993_v59 = vld [vmem:[%s2256_s28 + $0x4] ss:$8 sps:$4 sm:$0xff]   ;;  %v1991_v63 = vld [vmem:[%s2256_s28] ss:$8 sps:$4 sm:$0xff]  }
  0x1e   : > { %v1996_v60 = vld [vmem:[%s2261_s30 + $0x4] ss:$8 sps:$4 sm:$0xff]   ;;  %v1994_v0 = vld [vmem:[%s2261_s30] ss:$8 sps:$4 sm:$0xff]   ;;  %v1997_v2 = vld [vmem:[%s2256_s28 + $0x14] ss:$8 sps:$4 sm:$0xff]  }
  0x1f   : > { %532 = vmatpush1.bf16.msra.mxu0 %v1924_v8  ;;  %1870 = vmatpush1.bf16.msra.mxu1 %v1924_v8  ;;  %v1999_v3 = vld [vmem:[%s2261_s30 + $0x14] ss:$8 sps:$4 sm:$0xff]   ;;  %v2002_v4 = vld [vmem:[%s2261_s30 + $0x10] ss:$8 sps:$4 sm:$0xff]   ;;  %v2003_v5 = vld [vmem:[%s2256_s28 + $0x24] ss:$8 sps:$4 sm:$0xff]  }
  0x20   : > { %533 = vmatprep.subr.bf16.mxu0 %v2103_v1  ;;  %1859 = vmatprep.subr.bf16.mxu1 %v2103_v1  ;;  %v2005_v6 = vld [vmem:[%s2261_s30 + $0x24] ss:$8 sps:$4 sm:$0xff]   ;;  %v2007_v7 = vld [vmem:[%s2256_s28 + $0x20] ss:$8 sps:$4 sm:$0xff]  }
  0x21   : > { %v2008_v8 = vld [vmem:[%s2261_s30 + $0x20] ss:$8 sps:$4 sm:$0xff]  }
  0x23   : > { %534 = vmatpush1.bf16.msra.mxu0 %v1925_v9  ;;  %1871 = vmatpush1.bf16.msra.mxu1 %v1925_v9  ;;  %v2009_v9 = vld [vmem:[%s2256_s28 + $0x34] ss:$8 sps:$4 sm:$0xff]  }
  0x24   : > { %535 = vmatprep.subr.bf16.mxu0 %v2103_v1  ;;  %1860 = vmatprep.subr.bf16.mxu1 %v2103_v1 }
  0x27   : > { %536 = vmatpush1.bf16.msra.mxu0 %v1926_v10  ;;  %1872 = vmatpush1.bf16.msra.mxu1 %v1926_v10  ;;  %v2011_v10 = vld [vmem:[%s2261_s30 + $0x34] ss:$8 sps:$4 sm:$0xff]  }
  0x28   : > { %537 = vmatprep.subr.bf16.mxu0 %v2103_v1  ;;  %1861 = vmatprep.subr.bf16.mxu1 %v2103_v1 }
  0x2b   : > { %538 = vmatpush1.bf16.msra.mxu0 %v1927_v11  ;;  %1873 = vmatpush1.bf16.msra.mxu1 %v1927_v11  ;;  %v2013_v11 = vld [vmem:[%s2256_s28 + $0x30] ss:$8 sps:$4 sm:$0xff]  }
  0x2c   : > { %539 = vmatprep.subr.bf16.mxu0 %v2103_v1  ;;  %1862 = vmatprep.subr.bf16.mxu1 %v2103_v1 }
  0x2f   : > { %540 = vmatpush1.bf16.msra.mxu0 %v1928_v12  ;;  %1874 = vmatpush1.bf16.msra.mxu1 %v1928_v12  ;;  %v2014_v12 = vld [vmem:[%s2261_s30 + $0x30] ss:$8 sps:$4 sm:$0xff]  }
  0x30   : > { %541 = vmatprep.subr.bf16.mxu0 %v2103_v1  ;;  %1863 = vmatprep.subr.bf16.mxu1 %v2103_v1 }
  0x33   : > { %542 = vmatpush1.bf16.msra.mxu0 %v1929_v13  ;;  %1875 = vmatpush1.bf16.msra.mxu1 %v1929_v13  ;;  %v2015_v13 = vld [vmem:[%s2256_s28 + $0x44] ss:$8 sps:$4 sm:$0xff]  }
  0x34   : > { %543 = vmatprep.subr.bf16.mxu0 %v2103_v1  ;;  %1864 = vmatprep.subr.bf16.mxu1 %v2103_v1 }
  0x37   : > { %544 = vmatpush1.bf16.msra.mxu0 %v1930_v14  ;;  %1876 = vmatpush1.bf16.msra.mxu1 %v1930_v14  ;;  %v2017_v14 = vld [vmem:[%s2261_s30 + $0x44] ss:$8 sps:$4 sm:$0xff]  }
  0x38   : > { %866 = vmatprep.subr.bf16.mxu1 %v2103_v1  ;;  %1266 = vmatprep.subr.bf16.mxu0 %v2103_v1 }
  0x3a   : > { %554 = vmatmul.mubr.bf16.vlgmr.msra.gmra.mrb[0].mxu0 %v1931_v15  ;;  %602 = vmatmul.mubr.bf16.vlgmr.msra.gmra.mrb[0].mxu1 %v1934_v16  ;;  %v2019_v15 = vld [vmem:[%s2256_s28 + $0x40] ss:$8 sps:$4 sm:$0xff]  }
  0x3b   : > { %867 = vmatpush1.bf16.msra.mxu1 %v1937_v17  ;;  %1267 = vmatpush1.bf16.msra.mxu0 %v1938_v18  ;;  %v2020_v16 = vld [vmem:[%s2261_s30 + $0x40] ss:$8 sps:$4 sm:$0xff]   ;;  %v2021_v17 = vld [vmem:[%s2256_s28 + $0x54] ss:$8 sps:$4 sm:$0xff]  }
  0x3c   : > { %868 = vmatprep.subr.bf16.mxu1 %v2103_v1  ;;  %1268 = vmatprep.subr.bf16.mxu0 %v2103_v1  ;;  %v2023_v18 = vld [vmem:[%s2261_s30 + $0x54] ss:$8 sps:$4 sm:$0xff]  }
  0x3d   : > { %1714 = vmatprep.mubr.msk.bf16.mxu0 %vm484_vm0, %v1941_v19  ;;  %1720 = vmatprep.mubr.msk.bf16.mxu1 %vm484_vm0, %v1943_v20  ;;  %v2025_v19 = vld [vmem:[%s2256_s28 + $0x50] ss:$8 sps:$4 sm:$0xff]  }
  0x3e   : > { %v2026_v20 = vld [vmem:[%s2261_s30 + $0x50] ss:$8 sps:$4 sm:$0xff]  }
  0x3f   : > { %869 = vmatpush1.bf16.msra.mxu1 %v1939_v21  ;;  %1269 = vmatpush1.bf16.msra.mxu0 %v1940_v22  ;;  %v2027_v21 = vld [vmem:[%s2256_s28 + $0x64] ss:$8 sps:$4 sm:$0xff]  }
  0x40   : > { %870 = vmatprep.subr.bf16.mxu1 %v2103_v1  ;;  %1270 = vmatprep.subr.bf16.mxu0 %v2103_v1  ;;  %v2029_v22 = vld [vmem:[%s2261_s30 + $0x64] ss:$8 sps:$4 sm:$0xff]  }
  0x42   : > { %562 = vmatmul.mubr.bf16.gmra.mrb[4].mxu0 %v1945_v23  ;;  %610 = vmatmul.mubr.bf16.gmra.mrb[4].mxu1 %v1946_v24  ;;  %v2031_v23 = vld [vmem:[%s2256_s28 + $0x60] ss:$8 sps:$4 sm:$0xff]  }
  0x43   : > { %871 = vmatpush1.bf16.msra.mxu1 %v1947_v25  ;;  %1271 = vmatpush1.bf16.msra.mxu0 %v1948_v26  ;;  %v2032_v24 = vld [vmem:[%s2261_s30 + $0x60] ss:$8 sps:$4 sm:$0xff]   ;;  %v2033_v25 = vld [vmem:[%s2256_s28 + $0x74] ss:$8 sps:$4 sm:$0xff]  }
  0x44   : > { %872 = vmatprep.subr.bf16.mxu1 %v2103_v1  ;;  %1272 = vmatprep.subr.bf16.mxu0 %v2103_v1  ;;  %v2035_v26 = vld [vmem:[%s2261_s30 + $0x74] ss:$8 sps:$4 sm:$0xff]  }
  0x45   : > { %1715 = vmatprep.mubr.msk.bf16.mxu0 %vm484_vm0, %v1951_v27  ;;  %1721 = vmatprep.mubr.msk.bf16.mxu1 %vm484_vm0, %v1953_v28  ;;  %v2037_v27 = vld [vmem:[%s2256_s28 + $0x70] ss:$8 sps:$4 sm:$0xff]  }
  0x46   : > { %v2038_v28 = vld [vmem:[%s2261_s30 + $0x70] ss:$8 sps:$4 sm:$0xff]  }
  0x47   : > { %873 = vmatpush1.bf16.msra.mxu1 %v1949_v29  ;;  %1273 = vmatpush1.bf16.msra.mxu0 %v1950_v30  ;;  %v2039_v29 = vld [vmem:[%s2256_s28 + $0x84] ss:$8 sps:$4 sm:$0xff]  }
  0x48   : > { %874 = vmatprep.subr.bf16.mxu1 %v2103_v1  ;;  %1274 = vmatprep.subr.bf16.mxu0 %v2103_v1  ;;  %v2041_v30 = vld [vmem:[%s2261_s30 + $0x84] ss:$8 sps:$4 sm:$0xff]  }
  0x4a   : > { %570 = vmatmul.mubr.bf16.gmra.mrb[8].mxu0 %v1955_v31  ;;  %618 = vmatmul.mubr.bf16.gmra.mrb[8].mxu1 %v1956_v32  ;;  %v2043_v31 = vld [vmem:[%s2256_s28 + $0x80] ss:$8 sps:$4 sm:$0xff]  }
  0x4b   : > { %875 = vmatpush1.bf16.msra.mxu1 %v1957_v33  ;;  %1275 = vmatpush1.bf16.msra.mxu0 %v1958_v34  ;;  %v2044_v32 = vld [vmem:[%s2261_s30 + $0x80] ss:$8 sps:$4 sm:$0xff]   ;;  %v2045_v33 = vld [vmem:[%s2256_s28 + $0x94] ss:$8 sps:$4 sm:$0xff]  }
  0x4c   : > { %876 = vmatprep.subr.bf16.mxu1 %v2103_v1  ;;  %1276 = vmatprep.subr.bf16.mxu0 %v2103_v1  ;;  %v2047_v34 = vld [vmem:[%s2261_s30 + $0x94] ss:$8 sps:$4 sm:$0xff]  }
  0x4d   : > { %1716 = vmatprep.mubr.msk.bf16.mxu0 %vm484_vm0, %v1961_v35  ;;  %1722 = vmatprep.mubr.msk.bf16.mxu1 %vm484_vm0, %v1963_v36  ;;  %v2049_v35 = vld [vmem:[%s2256_s28 + $0x90] ss:$8 sps:$4 sm:$0xff]  }
  0x4e   : > { %v2050_v36 = vld [vmem:[%s2261_s30 + $0x90] ss:$8 sps:$4 sm:$0xff]  }
  0x4f   : > { %877 = vmatpush1.bf16.msra.mxu1 %v1959_v37  ;;  %1277 = vmatpush1.bf16.msra.mxu0 %v1960_v38  ;;  %v2051_v37 = vld [vmem:[%s2256_s28 + $0xa4] ss:$8 sps:$4 sm:$0xff]  }
  0x50   : > { %878 = vmatprep.subr.bf16.mxu1 %v2103_v1  ;;  %1278 = vmatprep.subr.bf16.mxu0 %v2103_v1  ;;  %v2053_v38 = vld [vmem:[%s2261_s30 + $0xa4] ss:$8 sps:$4 sm:$0xff]  }
  0x52   : > { %578 = vmatmul.mubr.bf16.gmra.mrb[12].mxu0 %v1965_v39  ;;  %626 = vmatmul.mubr.bf16.gmra.mrb[12].mxu1 %v1966_v40  ;;  %v2055_v39 = vld [vmem:[%s2256_s28 + $0xa0] ss:$8 sps:$4 sm:$0xff]  }
  0x53   : > { %879 = vmatpush1.bf16.msra.mxu1 %v1967_v41  ;;  %1279 = vmatpush1.bf16.msra.mxu0 %v1968_v42  ;;  %v2056_v40 = vld [vmem:[%s2261_s30 + $0xa0] ss:$8 sps:$4 sm:$0xff]   ;;  %v2057_v41 = vld [vmem:[%s2256_s28 + $0xb4] ss:$8 sps:$4 sm:$0xff]  }
  0x54   : > { %880 = vmatprep.subr.bf16.mxu1 %v2103_v1  ;;  %1280 = vmatprep.subr.bf16.mxu0 %v2103_v1  ;;  %v2059_v42 = vld [vmem:[%s2261_s30 + $0xb4] ss:$8 sps:$4 sm:$0xff]  }
  0x55   : > { %1717 = vmatprep.mubr.msk.bf16.mxu0 %vm484_vm0, %v1971_v43  ;;  %1723 = vmatprep.mubr.msk.bf16.mxu1 %vm484_vm0, %v1973_v44  ;;  %v2061_v43 = vld [vmem:[%s2256_s28 + $0xb0] ss:$8 sps:$4 sm:$0xff]  }
  0x56   : > { %v2062_v44 = vld [vmem:[%s2261_s30 + $0xb0] ss:$8 sps:$4 sm:$0xff]  }
  0x57   : > { %881 = vmatpush1.bf16.msra.mxu1 %v1969_v45  ;;  %1281 = vmatpush1.bf16.msra.mxu0 %v1970_v46 }
  0x58   : > { %882 = vmatprep.subr.bf16.mxu1 %v2103_v1  ;;  %1282 = vmatprep.subr.bf16.mxu0 %v2103_v1 }
  0x5a   : > { %586 = vmatmul.mubr.bf16.gmra.mrb[16].mxu0 %v1975_v47  ;;  %634 = vmatmul.mubr.bf16.gmra.mrb[16].mxu1 %v1976_v48 }
  0x5b   : > { %883 = vmatpush1.bf16.msra.mxu1 %v1977_v49  ;;  %1283 = vmatpush1.bf16.msra.mxu0 %v1978_v50 }
  0x5c   : > { %884 = vmatprep.subr.bf16.mxu1 %v2103_v1  ;;  %1284 = vmatprep.subr.bf16.mxu0 %v2103_v1 }
  0x5d   : > { %1718 = vmatprep.mubr.msk.bf16.mxu0 %vm484_vm0, %v1981_v51  ;;  %1724 = vmatprep.mubr.msk.bf16.mxu1 %vm484_vm0, %v1983_v52 }
  0x5f   : > { %885 = vmatpush1.bf16.msra.mxu1 %v1979_v53  ;;  %1285 = vmatpush1.bf16.msra.mxu0 %v1980_v54 }
  0x60   : > { %886 = vmatprep.subr.bf16.mxu1 %v2103_v1  ;;  %1286 = vmatprep.subr.bf16.mxu0 %v2103_v1 }
  0x62   : > { %594 = vmatmul.mubr.bf16.gmra.mrb[20].mxu0 %v1985_v55  ;;  %642 = vmatmul.mubr.bf16.gmra.mrb[20].mxu1 %v1986_v56 }
  0x63   : > { %887 = vmatpush1.bf16.msra.mxu1 %v1987_v57  ;;  %1287 = vmatpush1.bf16.msra.mxu0 %v1988_v58 }
  0x64   : > { %888 = vmatprep.subr.bf16.mxu1 %v2103_v1  ;;  %1288 = vmatprep.subr.bf16.mxu0 %v2103_v1  ;;  %v2001_v1 = vld [vmem:[%s2256_s28 + $0x10] ss:$8 sps:$4 sm:$0xff]  }
  0x65   : > { %1761 = vmatprep.mubr.msk.bf16.mxu1 %vm484_vm0, %v1993_v59  ;;  %1835 = vmatprep.mubr.msk.bf16.mxu0 %vm484_vm0, %v1996_v60 }
  0x67   : > { %889 = vmatpush1.bf16.msra.mxu1 %v1989_v61  ;;  %1289 = vmatpush1.bf16.msra.mxu0 %v1990_v62 }
  0x6a   : > { %899 = vmatmul.mubr.bf16.vlgmr.msra.gmra.mrb[24].mxu1 %v1991_v63  ;;  %1299 = vmatmul.mubr.bf16.vlgmr.msra.gmra.mrb[24].mxu0 %v1994_v0 }
  0x6b   : > { %1762 = vmatprep.mubr.msk.bf16.mxu1 %vm484_vm0, %v1997_v2  ;;  %1836 = vmatprep.mubr.msk.bf16.mxu0 %vm484_vm0, %v1999_v3 }
  0x72   : > { %907 = vmatmul.mubr.bf16.gmra.mrb[28].mxu1 %v2001_v1  ;;  %1307 = vmatmul.mubr.bf16.gmra.mrb[28].mxu0 %v2002_v4 }
  0x73   : > { %1763 = vmatprep.mubr.msk.bf16.mxu1 %vm484_vm0, %v2003_v5  ;;  %1837 = vmatprep.mubr.msk.bf16.mxu0 %vm484_vm0, %v2005_v6 }
  0x7a   : > { %915 = vmatmul.mubr.bf16.gmra.mrb[32].mxu1 %v2007_v7  ;;  %1315 = vmatmul.mubr.bf16.gmra.mrb[32].mxu0 %v2008_v8 }
  0x7b   : > { %1764 = vmatprep.mubr.msk.bf16.mxu1 %vm484_vm0, %v2009_v9  ;;  %1838 = vmatprep.mubr.msk.bf16.mxu0 %vm484_vm0, %v2011_v10 }
  0x82   : > { %923 = vmatmul.mubr.bf16.gmra.mrb[36].mxu1 %v2013_v11  ;;  %1323 = vmatmul.mubr.bf16.gmra.mrb[36].mxu0 %v2014_v12 }
  0x83   : > { %1765 = vmatprep.mubr.msk.bf16.mxu1 %vm484_vm0, %v2015_v13  ;;  %1839 = vmatprep.mubr.msk.bf16.mxu0 %vm484_vm0, %v2017_v14 }
  0x8a   : > { %931 = vmatmul.mubr.bf16.gmra.mrb[40].mxu1 %v2019_v15  ;;  %1331 = vmatmul.mubr.bf16.gmra.mrb[40].mxu0 %v2020_v16 }
  0x8b   : > { %1766 = vmatprep.mubr.msk.bf16.mxu1 %vm484_vm0, %v2021_v17  ;;  %1840 = vmatprep.mubr.msk.bf16.mxu0 %vm484_vm0, %v2023_v18 }
  0x92   : > { %939 = vmatmul.mubr.bf16.gmra.mrb[44].mxu1 %v2025_v19  ;;  %1339 = vmatmul.mubr.bf16.gmra.mrb[44].mxu0 %v2026_v20 }
  0x93   : > { %1767 = vmatprep.mubr.msk.bf16.mxu1 %vm484_vm0, %v2027_v21  ;;  %1841 = vmatprep.mubr.msk.bf16.mxu0 %vm484_vm0, %v2029_v22 }
  0x9a   : > { %947 = vmatmul.mubr.bf16.gmra.mrb[48].mxu1 %v2031_v23  ;;  %1347 = vmatmul.mubr.bf16.gmra.mrb[48].mxu0 %v2032_v24 }
  0x9b   : > { %1768 = vmatprep.mubr.msk.bf16.mxu1 %vm484_vm0, %v2033_v25  ;;  %1842 = vmatprep.mubr.msk.bf16.mxu0 %vm484_vm0, %v2035_v26 }
  0xa2   : > { %955 = vmatmul.mubr.bf16.gmra.mrb[52].mxu1 %v2037_v27  ;;  %1355 = vmatmul.mubr.bf16.gmra.mrb[52].mxu0 %v2038_v28 }
  0xa3   : > { %1769 = vmatprep.mubr.msk.bf16.mxu1 %vm484_vm0, %v2039_v29  ;;  %1843 = vmatprep.mubr.msk.bf16.mxu0 %vm484_vm0, %v2041_v30 }
  0xaa   : > { %963 = vmatmul.mubr.bf16.gmra.mrb[56].mxu1 %v2043_v31  ;;  %1363 = vmatmul.mubr.bf16.gmra.mrb[56].mxu0 %v2044_v32 }
  0xab   : > { %1770 = vmatprep.mubr.msk.bf16.mxu1 %vm484_vm0, %v2045_v33  ;;  %1844 = vmatprep.mubr.msk.bf16.mxu0 %vm484_vm0, %v2047_v34  ;;  %v2472_v34 = vld [vmem:[%s2551_s2] ss:$0 sm:$0xff] }
  0xb2   : > { %971 = vmatmul.mubr.bf16.gmra.mrb[60].mxu1 %v2049_v35  ;;  %1371 = vmatmul.mubr.bf16.gmra.mrb[60].mxu0 %v2050_v36 }
  0xb3   : > { %1771 = vmatprep.mubr.msk.bf16.mxu1 %vm484_vm0, %v2051_v37  ;;  %1845 = vmatprep.mubr.msk.bf16.mxu0 %vm484_vm0, %v2053_v38 }
  0xba   : > { %979 = vmatmul.mubr.bf16.gmra.mrb[64].mxu1 %v2055_v39  ;;  %1379 = vmatmul.mubr.bf16.gmra.mrb[64].mxu0 %v2056_v40 }
  0xbb   : > { %1772 = vmatprep.mubr.msk.bf16.mxu1 %vm484_vm0, %v2057_v41  ;;  %1846 = vmatprep.mubr.msk.bf16.mxu0 %vm484_vm0, %v2059_v42 }
  0xc2   : > { %987 = vmatmul.mubr.bf16.gmra.mrb[68].mxu1 %v2061_v43  ;;  %1387 = vmatmul.mubr.bf16.gmra.mrb[68].mxu0 %v2062_v44 }
 0x10d   : > { %v555_v45 = vpop.f32.mrb[0].mxu0  ;;  %v2443_v46 = vpop.f32.mrb[0].mxu1 }
 0x10e   : > { %v557_v47 = vpop.f32.mrb[1].mxu0  ;;  %v605_v48 = vpop.f32.mrb[1].mxu1 }
 0x10f   : > { %v558_v49 = vpop.f32.mrb[2].mxu0  ;;  %v2445_v50 = vpop.f32.mrb[2].mxu1 }
 0x110   : > { %v560_v51 = vpop.f32.mrb[3].mxu0  ;;  %v608_v52 = vpop.f32.mrb[3].mxu1 }
 0x115   : > { %v563_v53 = vpop.f32.mrb[4].mxu0  ;;  %v611_v54 = vpop.f32.mrb[4].mxu1 }
 0x116   : > { %v565_v55 = vpop.f32.mrb[5].mxu0  ;;  %v613_v56 = vpop.f32.mrb[5].mxu1 }
 0x117   : > { %v566_v57 = vpop.f32.mrb[6].mxu0  ;;  %v2447_v58 = vpop.f32.mrb[6].mxu1 }
 0x118   : > { %v568_v59 = vpop.f32.mrb[7].mxu0  ;;  %v616_v60 = vpop.f32.mrb[7].mxu1 }
 0x11d   : > { %v2449_v61 = vpop.f32.mrb[8].mxu0  ;;  %v2451_v62 = vpop.f32.mrb[8].mxu1 }
 0x11e   : > { %v573_v63 = vpop.f32.mrb[9].mxu0  ;;  %v621_v0 = vpop.f32.mrb[9].mxu1 }
 0x11f   : > { %v574_v2 = vpop.f32.mrb[10].mxu0  ;;  %v622_v3 = vpop.f32.mrb[10].mxu1 }
 0x120   : > { %v576_v1 = vpop.f32.mrb[11].mxu0  ;;  %v624_v4 = vpop.f32.mrb[11].mxu1 }
 0x125   : > { %v2453_v5 = vpop.f32.mrb[12].mxu0  ;;  %v2455_v6 = vpop.f32.mrb[12].mxu1 }
 0x126   : > { %v581_v7 = vpop.f32.mrb[13].mxu0  ;;  %v629_v8 = vpop.f32.mrb[13].mxu1 }
 0x127   : > { %v2457_v9 = vpop.f32.mrb[14].mxu0  ;;  %v2459_v10 = vpop.f32.mrb[14].mxu1 }
 0x128   : > { %v584_v11 = vpop.f32.mrb[15].mxu0  ;;  %v632_v12 = vpop.f32.mrb[15].mxu1 }
 0x12d   : > { %v587_v13 = vpop.f32.mrb[16].mxu0  ;;  %v635_v14 = vpop.f32.mrb[16].mxu1 }
 0x12e   : > { %v589_v15 = vpop.f32.mrb[17].mxu0  ;;  %v637_v16 = vpop.f32.mrb[17].mxu1 }
 0x12f   : > { %v2461_v17 = vpop.f32.mrb[18].mxu0  ;;  %v2463_v18 = vpop.f32.mrb[18].mxu1 }
 0x130   : > { %v592_v19 = vpop.f32.mrb[19].mxu0  ;;  %v640_v20 = vpop.f32.mrb[19].mxu1 }
 0x135   : > { %v2465_v21 = vpop.f32.mrb[20].mxu0  ;;  %v2467_v22 = vpop.f32.mrb[20].mxu1 }
 0x136   : > { %v597_v23 = vpop.f32.mrb[21].mxu0  ;;  %v645_v24 = vpop.f32.mrb[21].mxu1 }
 0x137   : > { %v598_v25 = vpop.f32.mrb[22].mxu0  ;;  %v646_v26 = vpop.f32.mrb[22].mxu1 }
 0x138   : > { %v600_v27 = vpop.f32.mrb[23].mxu0  ;;  %v648_v28 = vpop.f32.mrb[23].mxu1 }
 0x13d   : > { %v900_v29 = vpop.f32.mrb[24].mxu1  ;;  %v1300_v30 = vpop.f32.mrb[24].mxu0 }
 0x13e   : > { %v901_v31 = vadd.f32 %v900_v29, %v555_v45  ;;  %v902_v32 = vpop.f32.mrb[25].mxu1  ;;  %v1302_v33 = vpop.f32.mrb[25].mxu0 }
 0x13f   : > { %v903_v35 = vpop.f32.mrb[26].mxu1  ;;  %v1303_v36 = vpop.f32.mrb[26].mxu0 }
 0x140   : > { %v1395_v37 = vadd.f32 %v1300_v30, %v901_v31  ;;  %v904_v38 = vadd.f32 %v903_v35, %v558_v49  ;;  %v905_v39 = vpop.f32.mrb[27].mxu1  ;;  %v1305_v40 = vpop.f32.mrb[27].mxu0 }
 0x142   : > { %v1426_v41 = vadd.f32 %v2472_v34, %v1395_v37  ;;  %v1396_v42 = vadd.f32 %v1303_v36, %v904_v38 }
 0x144   : > { %v1450_v43 = vmax.f32 %v1426_v41, 0.0  ;;  %v1427_v44 = vadd.f32 %v2472_v34, %v1396_v42 }
 0x145   : > { %v908_v45 = vpop.f32.mrb[28].mxu1  ;;  %v1308_v47 = vpop.f32.mrb[28].mxu0 }
 0x146   : > { %1474 = vst.msk [vmem:[#allocation2] sm:$0xff] %vm484_vm0, %v1450_v43  ;;  %v1451_v48 = vmax.f32 %v1427_v44, 0.0  ;;  %v910_v51 = vpop.f32.mrb[29].mxu1  ;;  %v1310_v52 = vpop.f32.mrb[29].mxu0 }
 0x147   : > { %v911_v53 = vpop.f32.mrb[30].mxu1  ;;  %v1311_v54 = vpop.f32.mrb[30].mxu0 }
 0x148   : > { %1475 = vst.msk [vmem:[#allocation2 + $0x8] sm:$0xff] %vm484_vm0, %v1451_v48  ;;  %v912_v49 = vadd.f32 %v911_v53, %v566_v57  ;;  %v913_v55 = vpop.f32.mrb[31].mxu1  ;;  %v1313_v56 = vpop.f32.mrb[31].mxu0 }
 0x14a   : > { %v1398_v59 = vadd.f32 %v1311_v54, %v912_v49 }
 0x14c   : > { %v1429_v60 = vadd.f32 %v2472_v34, %v1398_v59 }
 0x14d   : > { %v916_v63 = vpop.f32.mrb[32].mxu1  ;;  %v1316_v0 = vpop.f32.mrb[32].mxu0 }
 0x14e   : > { %v1453_v2 = vmax.f32 %v1429_v60, 0.0  ;;  %v917_v3 = vadd.f32 %v916_v63, %v2449_v61  ;;  %v918_v1 = vpop.f32.mrb[33].mxu1  ;;  %v1318_v4 = vpop.f32.mrb[33].mxu0 }
 0x14f   : > { %v919_v7 = vpop.f32.mrb[34].mxu1  ;;  %v1319_v8 = vpop.f32.mrb[34].mxu0  ;;  %v1498_v31 = vld [vmem:[#allocation2] ss:$2 sm:$0xff]  ;;  %v1514_v32 = vld [vmem:[#allocation2 + $0x1] ss:$2 sm:$0xff] }
 0x150   : > { %1477 = vst.msk [vmem:[#allocation2 + $0x18] sm:$0xff] %vm484_vm0, %v1453_v2  ;;  %v1399_v11 = vadd.f32 %v1316_v0, %v917_v3  ;;  %v921_v57 = vpop.f32.mrb[35].mxu1  ;;  %v1321_v12 = vpop.f32.mrb[35].mxu0  ;;  %v1529_v39 = vmax.f32 %v1498_v31, %v1514_v32 }
 0x152   : > { %v1430_v13 = vadd.f32 %v2472_v34, %v1399_v11 }
 0x154   : > { %v1454_v14 = vmax.f32 %v1430_v13, 0.0 }
 0x155   : > { %v924_v15 = vpop.f32.mrb[36].mxu1  ;;  %v1324_v16 = vpop.f32.mrb[36].mxu0 }
 0x156   : > { %1478 = vst.msk [vmem:[#allocation2 + $0x20] sm:$0xff] %vm484_vm0, %v1454_v14  ;;  %v925_v61 = vadd.f32 %v924_v15, %v2453_v5  ;;  %v926_v19 = vpop.f32.mrb[37].mxu1  ;;  %v1326_v20 = vpop.f32.mrb[37].mxu0 }
 0x157   : > { %v927_v23 = vpop.f32.mrb[38].mxu1  ;;  %v1327_v24 = vpop.f32.mrb[38].mxu0 }
 0x158   : > { %v1401_v25 = vadd.f32 %v1324_v16, %v925_v61  ;;  %v928_v26 = vadd.f32 %v927_v23, %v2457_v9  ;;  %v929_v27 = vpop.f32.mrb[39].mxu1  ;;  %v1329_v28 = vpop.f32.mrb[39].mxu0 }
 0x15a   : > { %v1432_v29 = vadd.f32 %v2472_v34, %v1401_v25  ;;  %v1402_v30 = vadd.f32 %v1327_v24, %v928_v26 }
 0x15c   : > { %v1456_v33 = vmax.f32 %v1432_v29, 0.0  ;;  %v1433_v5 = vadd.f32 %v2472_v34, %v1402_v30 }
 0x15d   : > { %v1500_v35 = vld [vmem:[#allocation2 + $0x18] ss:$2 sm:$0xff]  ;;  %v1516_v36 = vld [vmem:[#allocation2 + $0x19] ss:$2 sm:$0xff]  ;;  %v932_v37 = vpop.f32.mrb[40].mxu1  ;;  %v1332_v38 = vpop.f32.mrb[40].mxu0 }
 0x15e   : > { %v1530_v40 = vmax.f32 %v1500_v35, %v1516_v36  ;;  %1480 = vst.msk [vmem:[#allocation2 + $0x30] sm:$0xff] %vm484_vm0, %v1456_v33  ;;  %v1457_v9 = vmax.f32 %v1433_v5, 0.0  ;;  %v934_v41 = vpop.f32.mrb[41].mxu1  ;;  %v1334_v42 = vpop.f32.mrb[41].mxu0 }
 0x15f   : > { %v935_v43 = vpop.f32.mrb[42].mxu1  ;;  %v1335_v44 = vpop.f32.mrb[42].mxu0 }
 0x160   : > { %v1537_v45 = vmax.f32 %v1529_v39, %v1530_v40  ;;  %1481 = vst.msk [vmem:[#allocation2 + $0x38] sm:$0xff] %vm484_vm0, %v1457_v9  ;;  %v936_v47 = vadd.f32 %v935_v43, %v2461_v17  ;;  %v937_v48 = vpop.f32.mrb[43].mxu1  ;;  %v1337_v51 = vpop.f32.mrb[43].mxu0 }
 0x162   : > { %v1541_v52 = vpack.c.bf16 %v1537_v45, %v1537_v45  ;;  %v1404_v53 = vadd.f32 %v1335_v44, %v936_v47 }
 0x164   : > { %1546 = vst.msk [vmem:[%s2495_s20] sm:$0xf] %vm1545_vm1, %v1541_v52  ;;  %v1435_v54 = vadd.f32 %v2472_v34, %v1404_v53 }
 0x165   : > { %v940_v49 = vpop.f32.mrb[44].mxu1  ;;  %v1340_v55 = vpop.f32.mrb[44].mxu0 }
 0x166   : > { %v1459_v56 = vmax.f32 %v1435_v54, 0.0  ;;  %v941_v17 = vadd.f32 %v940_v49, %v2465_v21  ;;  %v942_v59 = vpop.f32.mrb[45].mxu1  ;;  %v1342_v60 = vpop.f32.mrb[45].mxu0 }
 0x167   : > { %v943_v63 = vpop.f32.mrb[46].mxu1  ;;  %v1343_v0 = vpop.f32.mrb[46].mxu0  ;;  %v1502_v24 = vld [vmem:[#allocation2 + $0x30] ss:$2 sm:$0xff]  ;;  %v1518_v25 = vld [vmem:[#allocation2 + $0x31] ss:$2 sm:$0xff] }
 0x168   : > { %1483 = vst.msk [vmem:[#allocation2 + $0x48] sm:$0xff] %vm484_vm0, %v1459_v56  ;;  %v1405_v2 = vadd.f32 %v1340_v55, %v941_v17  ;;  %v945_v3 = vpop.f32.mrb[47].mxu1  ;;  %v1345_v1 = vpop.f32.mrb[47].mxu0  ;;  %v1531_v31 = vmax.f32 %v1502_v24, %v1518_v25 }
 0x16a   : > { %v1436_v4 = vadd.f32 %v2472_v34, %v1405_v2 }
 0x16c   : > { %v1460_v7 = vmax.f32 %v1436_v4, 0.0 }
 0x16d   : > { %v948_v8 = vpop.f32.mrb[48].mxu1  ;;  %v1348_v11 = vpop.f32.mrb[48].mxu0 }
 0x16e   : > { %1484 = vst.msk [vmem:[#allocation2 + $0x50] sm:$0xff] %vm484_vm0, %v1460_v7  ;;  %v949_v57 = vadd.f32 %v948_v8, %v2443_v46  ;;  %v950_v12 = vpop.f32.mrb[49].mxu1  ;;  %v1350_v21 = vpop.f32.mrb[49].mxu0 }
 0x16f   : > { %v951_v13 = vpop.f32.mrb[50].mxu1  ;;  %v1351_v14 = vpop.f32.mrb[50].mxu0 }
 0x170   : > { %v1407_v15 = vadd.f32 %v1348_v11, %v949_v57  ;;  %v952_v16 = vadd.f32 %v951_v13, %v2445_v50  ;;  %v953_v61 = vpop.f32.mrb[51].mxu1  ;;  %v1353_v19 = vpop.f32.mrb[51].mxu0 }
 0x172   : > { %v1438_v20 = vadd.f32 %v2472_v34, %v1407_v15  ;;  %v1408_v23 = vadd.f32 %v1351_v14, %v952_v16 }
 0x174   : > { %v1462_v26 = vmax.f32 %v1438_v20, 0.0  ;;  %v1439_v27 = vadd.f32 %v2472_v34, %v1408_v23 }
 0x175   : > { %v1504_v28 = vld [vmem:[#allocation2 + $0x48] ss:$2 sm:$0xff]  ;;  %v1520_v29 = vld [vmem:[#allocation2 + $0x49] ss:$2 sm:$0xff]  ;;  %v956_v46 = vpop.f32.mrb[52].mxu1  ;;  %v1356_v30 = vpop.f32.mrb[52].mxu0 }
 0x176   : > { %v1532_v32 = vmax.f32 %v1504_v28, %v1520_v29  ;;  %1486 = vst.msk [vmem:[#allocation2 + $0x60] sm:$0xff] %vm484_vm0, %v1462_v26  ;;  %v1463_v50 = vmax.f32 %v1439_v27, 0.0  ;;  %v958_v33 = vpop.f32.mrb[53].mxu1  ;;  %v1358_v5 = vpop.f32.mrb[53].mxu0 }
 0x177   : > { %v959_v35 = vpop.f32.mrb[54].mxu1  ;;  %v1359_v36 = vpop.f32.mrb[54].mxu0 }
 0x178   : > { %v1538_v37 = vmax.f32 %v1531_v31, %v1532_v32  ;;  %1487 = vst.msk [vmem:[#allocation2 + $0x68] sm:$0xff] %vm484_vm0, %v1463_v50  ;;  %v960_v38 = vadd.f32 %v959_v35, %v2447_v58  ;;  %v961_v39 = vpop.f32.mrb[55].mxu1  ;;  %v1361_v40 = vpop.f32.mrb[55].mxu0 }
 0x17a   : > { %v1542_v9 = vpack.c.bf16 %v1538_v37, %v1538_v37  ;;  %v1410_v41 = vadd.f32 %v1359_v36, %v960_v38 }
 0x17c   : > { %1547 = vst.msk [vmem:[%s2495_s20 + $0x4] sm:$0xf] %vm1545_vm1, %v1542_v9  ;;  %v1441_v42 = vadd.f32 %v2472_v34, %v1410_v41 }
 0x17d   : > { %v964_v43 = vpop.f32.mrb[56].mxu1  ;;  %v1364_v44 = vpop.f32.mrb[56].mxu0 }
 0x17e   : > { %v1465_v45 = vmax.f32 %v1441_v42, 0.0  ;;  %v965_v47 = vadd.f32 %v964_v43, %v2451_v62  ;;  %v966_v48 = vpop.f32.mrb[57].mxu1  ;;  %v1366_v51 = vpop.f32.mrb[57].mxu0 }
 0x17f   : > { %v967_v52 = vpop.f32.mrb[58].mxu1  ;;  %v1367_v53 = vpop.f32.mrb[58].mxu0  ;;  %v1506_v57 = vld [vmem:[#allocation2 + $0x60] ss:$2 sm:$0xff]  ;;  %v1522_v12 = vld [vmem:[#allocation2 + $0x61] ss:$2 sm:$0xff] }
 0x180   : > { %1489 = vst.msk [vmem:[#allocation2 + $0x78] sm:$0xff] %vm484_vm0, %v1465_v45  ;;  %v1411_v58 = vadd.f32 %v1364_v44, %v965_v47  ;;  %v969_v54 = vpop.f32.mrb[59].mxu1  ;;  %v1369_v49 = vpop.f32.mrb[59].mxu0  ;;  %v1533_v61 = vmax.f32 %v1506_v57, %v1522_v12 }
 0x182   : > { %v1442_v55 = vadd.f32 %v2472_v34, %v1411_v58 }
 0x184   : > { %v1466_v56 = vmax.f32 %v1442_v55, 0.0 }
 0x185   : > { %v972_v17 = vpop.f32.mrb[60].mxu1  ;;  %v1372_v59 = vpop.f32.mrb[60].mxu0 }
 0x186   : > { %1490 = vst.msk [vmem:[#allocation2 + $0x80] sm:$0xff] %vm484_vm0, %v1466_v56  ;;  %v973_v60 = vadd.f32 %v972_v17, %v2455_v6  ;;  %v974_v63 = vpop.f32.mrb[61].mxu1  ;;  %v1374_v62 = vpop.f32.mrb[61].mxu0 }
 0x187   : > { %v975_v0 = vpop.f32.mrb[62].mxu1  ;;  %v1375_v2 = vpop.f32.mrb[62].mxu0 }
 0x188   : > { %v1413_v3 = vadd.f32 %v1372_v59, %v973_v60  ;;  %v976_v1 = vadd.f32 %v975_v0, %v2459_v10  ;;  %v977_v4 = vpop.f32.mrb[63].mxu1  ;;  %v1377_v7 = vpop.f32.mrb[63].mxu0 }
 0x18a   : > { %v1444_v8 = vadd.f32 %v2472_v34, %v1413_v3  ;;  %v1414_v11 = vadd.f32 %v1375_v2, %v976_v1 }
 0x18c   : > { %v1468_v21 = vmax.f32 %v1444_v8, 0.0  ;;  %v1445_v13 = vadd.f32 %v2472_v34, %v1414_v11 }
 0x18d   : > { %v1508_v14 = vld [vmem:[#allocation2 + $0x78] ss:$2 sm:$0xff]  ;;  %v1524_v15 = vld [vmem:[#allocation2 + $0x79] ss:$2 sm:$0xff]  ;;  %v980_v6 = vpop.f32.mrb[64].mxu1  ;;  %v1380_v16 = vpop.f32.mrb[64].mxu0 }
 0x18e   : > { %v1534_v19 = vmax.f32 %v1508_v14, %v1524_v15  ;;  %1492 = vst.msk [vmem:[#allocation2 + $0x90] sm:$0xff] %vm484_vm0, %v1468_v21  ;;  %v1469_v10 = vmax.f32 %v1445_v13, 0.0  ;;  %v982_v20 = vpop.f32.mrb[65].mxu1  ;;  %v1382_v23 = vpop.f32.mrb[65].mxu0 }
 0x18f   : > { %v983_v24 = vpop.f32.mrb[66].mxu1  ;;  %v1383_v25 = vpop.f32.mrb[66].mxu0 }
 0x190   : > { %v1539_v26 = vmax.f32 %v1533_v61, %v1534_v19  ;;  %1493 = vst.msk [vmem:[#allocation2 + $0x98] sm:$0xff] %vm484_vm0, %v1469_v10  ;;  %v984_v27 = vadd.f32 %v983_v24, %v2463_v18  ;;  %v985_v28 = vpop.f32.mrb[67].mxu1  ;;  %v1385_v29 = vpop.f32.mrb[67].mxu0 }
 0x192   : > { %v1543_v46 = vpack.c.bf16 %v1539_v26, %v1539_v26  ;;  %v1416_v30 = vadd.f32 %v1383_v25, %v984_v27 }
 0x194   : > { %1548 = vst.msk [vmem:[%s2495_s20 + $0x8] sm:$0xf] %vm1545_vm1, %v1543_v46  ;;  %v1447_v31 = vadd.f32 %v2472_v34, %v1416_v30 }
 0x195   : > { %v988_v32 = vpop.f32.mrb[68].mxu1  ;;  %v1388_v50 = vpop.f32.mrb[68].mxu0 }
 0x196   : > { %v1471_v33 = vmax.f32 %v1447_v31, 0.0  ;;  %v989_v5 = vadd.f32 %v988_v32, %v2467_v22  ;;  %v990_v35 = vpop.f32.mrb[69].mxu1  ;;  %v1390_v36 = vpop.f32.mrb[69].mxu0 }
 0x197   : > { %v991_v37 = vpop.f32.mrb[70].mxu1  ;;  %v1391_v38 = vpop.f32.mrb[70].mxu0  ;;  %v1510_v42 = vld [vmem:[#allocation2 + $0x90] ss:$2 sm:$0xff]  ;;  %v1526_v43 = vld [vmem:[#allocation2 + $0x91] ss:$2 sm:$0xff] }
 0x198   : > { %1495 = vst.msk [vmem:[#allocation2 + $0xa8] sm:$0xff] %vm484_vm0, %v1471_v33  ;;  %v1417_v18 = vadd.f32 %v1388_v50, %v989_v5  ;;  %v993_v39 = vpop.f32.mrb[71].mxu1  ;;  %v1393_v40 = vpop.f32.mrb[71].mxu0  ;;  %v1535_v22 = vmax.f32 %v1510_v42, %v1526_v43 }
 0x19a   : > { %v1448_v9 = vadd.f32 %v2472_v34, %v1417_v18 }
 0x19c   : > { %v1472_v41 = vmax.f32 %v1448_v9, 0.0 }
 0x19e   : > { %1496 = vst.msk [vmem:[#allocation2 + $0xb0] sm:$0xff] %vm484_vm0, %v1472_v41 }
 0x1a5   : > { %v1512_v44 = vld [vmem:[#allocation2 + $0xa8] ss:$2 sm:$0xff]  ;;  %v1528_v45 = vld [vmem:[#allocation2 + $0xa9] ss:$2 sm:$0xff] }
 0x1a6   : > { %v1536_v47 = vmax.f32 %v1512_v44, %v1528_v45 }
 0x1a8   : > { %v1540_v48 = vmax.f32 %v1535_v22, %v1536_v47 }
 0x1aa   : > { %v1544_v51 = vpack.c.bf16 %v1540_v48, %v1540_v48 }
 0x1ac   : > { %1549 = vst.msk [vmem:[%s2495_s20 + $0xc] sm:$0xf] %vm1545_vm1, %v1544_v51 }
 0x1ad PF: > { %s13_s16 = sadd.s32 1, %s2101_s16   ;;  %s2553_s12 = smov %s2093_s14 }
 0x1ae   : > { %p10_p7 = scmp.ge.s32.totalorder %s13_s16, 6   ;;  %s2554_s13 = smov %s2097_s15 }
 0x1af   : > { %s2555_s14 = smov %s2558_s17  ;;  %s2556_s15 = smov %s2562_s18 }
 0x1b0   :  { %12 = sbr.rel (!%p10_p7) target bundleno = 3 (0x3), region = 82 }

// kernel: _lambda_.10
= control target key start
LH: loop header
LB: loop body
LE: loop exit
PB: predicated region body
PF: predicated region fallthrough
CT: control target
= control target key end

     0   :  { %s1697_s12 = smov 0   ;;  %s1699_s13 = smov 0   ;;  %s1996_s0 = inlined_call_operand.vmem [shape: bf16[2,160,192], index: 0, kind: input, shape index: {}]   ;;  %s1997_s1 = inlined_call_operand.vmem [shape: bf16[3,192,128], index: 1, kind: input, shape index: {}]   ;;  %s1998_s2 = inlined_call_operand.vmem [shape: f32[1,128], index: 2, kind: input, shape index: {}]   ;;  %s1999_s3 = inlined_call_operand.vmem [shape: bf16[2,8,8,128], index: 3, kind: output, shape index: {}]  }
   0x1   :  { %s1701_s14 = smov 0  }
   0x2 LB: > { %s25_s15 = sadd.s32 1, %s1670_s13  ;;  %p1317_p0 = scmp.ge.s32.totalorder %s1674_s14, 1  ;;  %s1674_s14 = sphi %s1701_s14, %s13_s14   ;;  %s1670_s13 = sphi %s1699_s13, %s2001_s13   ;;  %s1666_s12 = sphi %s1697_s12, %s2000_s12  }
   0x3   : > { %p27_p1 = scmp.ge.s32.totalorder %s25_s15, 2  ;;  %p151_p2 = scmp.lt.s32.totalorder %s1674_s14, 3 }
   0x5   : > { %s2003_s15 = smov (%p27_p1, %s25_s15), 0  ;;  %p152_p3 = pnand %p1317_p0, %p151_p2 }
   0x6   : > { %v1586_v0 = vld [vmem:[%s1997_s1 + $0x60] sm:$0xff] (!%p152_p3)   ;;  %v1676_v1 = vmov (!%p152_p3), 0   ;;  %v1588_v3 = vld [vmem:[%s1997_s1 + $0x68] sm:$0xff] (!%p152_p3)   ;;  %v1590_v5 = vld [vmem:[%s1997_s1 + $0x70] sm:$0xff] (!%p152_p3)   ;;  %p179_p4 = scmp.lt.s32.totalorder (!%p152_p3), %s1666_s12, 1  ;;  %vm432_vm0 = vcmask (!%p152_p3), 523264  }
   0x7   : > { %155 = sbr.rel (%p152_p3) target bundleno = 364 (0x16c), region = 32  ;;  %457 = vmatprep.subr.bf16.mxu0 (!%p152_p3), %v1676_v1  ;;  %722 = vmatprep.subr.bf16.mxu1 (!%p152_p3), %v1676_v1  ;;  %v1587_v2 = vld [vmem:[%s1997_s1] sm:$0xff] (!%p152_p3)   ;;  %v1589_v4 = vld [vmem:[%s1997_s1 + $0x8] sm:$0xff] (!%p152_p3)   ;;  %v1591_v6 = vld [vmem:[%s1997_s1 + $0x10] sm:$0xff] (!%p152_p3)  }
   0x8   : > { %458 = vmatpush1.bf16.msra.mxu0 (!%p152_p3), %v1586_v0  ;;  %723 = vmatpush1.bf16.msra.mxu1 (!%p152_p3), %v1587_v2  ;;  %v1592_v7 = vld [vmem:[%s1997_s1 + $0x78] sm:$0xff] (!%p152_p3)   ;;  %v1594_v9 = vld [vmem:[%s1997_s1 + $0x80] sm:$0xff] (!%p152_p3)   ;;  %v1596_v11 = vld [vmem:[%s1997_s1 + $0x88] sm:$0xff] (!%p152_p3)  }
   0x9   : > { %459 = vmatprep.subr.bf16.mxu0 (!%p152_p3), %v1676_v1  ;;  %724 = vmatprep.subr.bf16.mxu1 (!%p152_p3), %v1676_v1  ;;  %v1593_v8 = vld [vmem:[%s1997_s1 + $0x18] sm:$0xff] (!%p152_p3)   ;;  %v1595_v10 = vld [vmem:[%s1997_s1 + $0x20] sm:$0xff] (!%p152_p3)   ;;  %v1597_v12 = vld [vmem:[%s1997_s1 + $0x28] sm:$0xff] (!%p152_p3)  }
   0xa   : > { %v1598_v13 = vld [vmem:[%s1997_s1 + $0x90] sm:$0xff] (!%p152_p3)   ;;  %v1600_v16 = vld [vmem:[%s1997_s1 + $0x98] sm:$0xff] (!%p152_p3)   ;;  %v1602_v19 = vld [vmem:[%s1997_s1 + $0xa0] sm:$0xff] (!%p152_p3)  }
   0xb   : > { %v1599_v14 = vld [vmem:[%s1997_s1 + $0x30] sm:$0xff] (!%p152_p3)   ;;  %v1601_v18 = vld [vmem:[%s1997_s1 + $0x38] sm:$0xff] (!%p152_p3)   ;;  %v1603_v20 = vld [vmem:[%s1997_s1 + $0x40] sm:$0xff] (!%p152_p3)  }
   0xc   : > { %460 = vmatpush1.bf16.msra.mxu0 (!%p152_p3), %v1588_v3  ;;  %725 = vmatpush1.bf16.msra.mxu1 (!%p152_p3), %v1589_v4  ;;  %v1604_v21 = vld [vmem:[%s1997_s1 + $0xa8] sm:$0xff] (!%p152_p3)   ;;  %v1606_v23 = vld [vmem:[%s1997_s1 + $0xb0] sm:$0xff] (!%p152_p3)   ;;  %v1608_v25 = vld [vmem:[%s1997_s1 + $0xb8] sm:$0xff] (!%p152_p3)  }
   0xd   : > { %461 = vmatprep.subr.bf16.mxu0 (!%p152_p3), %v1676_v1  ;;  %726 = vmatprep.subr.bf16.mxu1 (!%p152_p3), %v1676_v1  ;;  %v1605_v22 = vld [vmem:[%s1997_s1 + $0x48] sm:$0xff] (!%p152_p3)   ;;  %v1607_v24 = vld [vmem:[%s1997_s1 + $0x50] sm:$0xff] (!%p152_p3)   ;;  %v1609_v26 = vld [vmem:[%s1997_s1 + $0x58] sm:$0xff] (!%p152_p3)  }
   0xe   : > { %s2005_s12 = smov (!%p179_p4, %s1666_s12), 1  ;;  %v1616_v29 = vld [vmem:[%s1997_s1 + $0xc0] sm:$0xff]   ;;  %v1619_v31 = vld [vmem:[%s1997_s1 + $0xc8] sm:$0xff]   ;;  %v1621_v33 = vld [vmem:[%s1997_s1 + $0xd0] sm:$0xff]  }
   0xf   : > { %s1560_s11 = smul.u32 160, %s2005_s12  ;;  %v1625_v35 = vld [vmem:[%s1997_s1 + $0xd8] sm:$0xff]   ;;  %v1628_v38 = vld [vmem:[%s1997_s1 + $0xe0] sm:$0xff]   ;;  %v1630_v39 = vld [vmem:[%s1997_s1 + $0xe8] sm:$0xff]   ;;  %s1512_s26 = sshll.u32 %s2005_s12, 5 }
  0x10   : > { %462 = vmatpush1.bf16.msra.mxu0 %v1590_v5  ;;  %727 = vmatpush1.bf16.msra.mxu1 %v1591_v6  ;;  %v1634_v42 = vld [vmem:[%s1997_s1 + $0xf0] sm:$0xff]   ;;  %v1637_v43 = vld [vmem:[%s1997_s1 + $0xf8] sm:$0xff]   ;;  %v1639_v46 = vld [vmem:[%s1997_s1 + $0x100] sm:$0xff]   ;;  %s1979_s29 = scalar_lea.vmem %s1999_s3, %s1512_s26 }
  0x11   : > { %463 = vmatprep.subr.bf16.mxu0 %v1676_v1  ;;  %728 = vmatprep.subr.bf16.mxu1 %v1676_v1  ;;  %s1776_s22 = scalar_lea.vmem %s1996_s0, %s1560_s11  ;;  %v1643_v47 = vld [vmem:[%s1997_s1 + $0x108] sm:$0xff]   ;;  %v1646_v50 = vld [vmem:[%s1997_s1 + $0x110] sm:$0xff]   ;;  %v1648_v51 = vld [vmem:[%s1997_s1 + $0x118] sm:$0xff]  }
  0x12   : > { %v1612_v15 = vld [vmem:[%s1776_s22 + $0x14] ss:$8 sps:$4 sm:$0xff]   ;;  %v1615_v17 = vld [vmem:[%s1776_s22 + $0x4] ss:$8 sps:$4 sm:$0xff]   ;;  %v1610_v27 = vld [vmem:[%s1776_s22 + $0x10] ss:$8 sps:$4 sm:$0xff]  }
  0x13   : > { %1389 = vmatprep.mubr.msk.bf16.mxu0 %vm432_vm0, %v1612_v15  ;;  %1425 = vmatprep.mubr.msk.bf16.mxu1 %vm432_vm0, %v1615_v17  ;;  %v1613_v28 = vld [vmem:[%s1776_s22] ss:$8 sps:$4 sm:$0xff]   ;;  %v1835_v30 = vld [vmem:[%s1776_s22 + $0x24] ss:$8 sps:$4 sm:$0xff]   ;;  %v1853_v34 = vld [vmem:[%s1776_s22 + $0x34] ss:$8 sps:$4 sm:$0xff]  }
  0x14   : > { %464 = vmatpush1.bf16.msra.mxu0 %v1592_v7  ;;  %729 = vmatpush1.bf16.msra.mxu1 %v1593_v8  ;;  %v1846_v32 = vld [vmem:[%s1776_s22 + $0x20] ss:$8 sps:$4 sm:$0xff]   ;;  %v1866_v36 = vld [vmem:[%s1776_s22 + $0x30] ss:$8 sps:$4 sm:$0xff]   ;;  %v1870_v37 = vld [vmem:[%s1776_s22 + $0x44] ss:$8 sps:$4 sm:$0xff]  }
  0x15   : > { %465 = vmatprep.subr.bf16.mxu0 %v1676_v1  ;;  %730 = vmatprep.subr.bf16.mxu1 %v1676_v1  ;;  %v1888_v40 = vld [vmem:[%s1776_s22 + $0x40] ss:$8 sps:$4 sm:$0xff]   ;;  %v1892_v41 = vld [vmem:[%s1776_s22 + $0x54] ss:$8 sps:$4 sm:$0xff]   ;;  %v1633_v44 = vld [vmem:[%s1776_s22 + $0x50] ss:$8 sps:$4 sm:$0xff]  }
  0x16   : > { %v1635_v45 = vld [vmem:[%s1776_s22 + $0x64] ss:$8 sps:$4 sm:$0xff]   ;;  %v1638_v48 = vld [vmem:[%s1776_s22 + $0x60] ss:$8 sps:$4 sm:$0xff]   ;;  %v1640_v49 = vld [vmem:[%s1776_s22 + $0x74] ss:$8 sps:$4 sm:$0xff]  }
  0x17   : > { %v1642_v52 = vld [vmem:[%s1776_s22 + $0x70] ss:$8 sps:$4 sm:$0xff]   ;;  %v1644_v53 = vld [vmem:[%s1776_s22 + $0x84] ss:$8 sps:$4 sm:$0xff]   ;;  %v1647_v54 = vld [vmem:[%s1776_s22 + $0x80] ss:$8 sps:$4 sm:$0xff]  }
  0x18   : > { %466 = vmatpush1.bf16.msra.mxu0 %v1594_v9  ;;  %731 = vmatpush1.bf16.msra.mxu1 %v1595_v10  ;;  %v1649_v55 = vld [vmem:[%s1776_s22 + $0x94] ss:$8 sps:$4 sm:$0xff]   ;;  %v1651_v56 = vld [vmem:[%s1776_s22 + $0x90] ss:$8 sps:$4 sm:$0xff]  }
  0x19   : > { %467 = vmatprep.subr.bf16.mxu0 %v1676_v1  ;;  %732 = vmatprep.subr.bf16.mxu1 %v1676_v1 }
  0x1c   : > { %468 = vmatpush1.bf16.msra.mxu0 %v1596_v11  ;;  %733 = vmatpush1.bf16.msra.mxu1 %v1597_v12 }
  0x1d   : > { %469 = vmatprep.subr.bf16.mxu0 %v1676_v1  ;;  %734 = vmatprep.subr.bf16.mxu1 %v1676_v1 }
  0x20   : > { %470 = vmatpush1.bf16.msra.mxu0 %v1598_v13  ;;  %735 = vmatpush1.bf16.msra.mxu1 %v1599_v14 }
  0x21   : > { %471 = vmatprep.subr.bf16.mxu0 %v1676_v1  ;;  %736 = vmatprep.subr.bf16.mxu1 %v1676_v1 }
  0x24   : > { %472 = vmatpush1.bf16.msra.mxu0 %v1600_v16  ;;  %737 = vmatpush1.bf16.msra.mxu1 %v1601_v18 }
  0x25   : > { %473 = vmatprep.subr.bf16.mxu0 %v1676_v1  ;;  %738 = vmatprep.subr.bf16.mxu1 %v1676_v1 }
  0x28   : > { %474 = vmatpush1.bf16.msra.mxu0 %v1602_v19  ;;  %739 = vmatpush1.bf16.msra.mxu1 %v1603_v20 }
  0x29   : > { %475 = vmatprep.subr.bf16.mxu0 %v1676_v1  ;;  %740 = vmatprep.subr.bf16.mxu1 %v1676_v1 }
  0x2c   : > { %476 = vmatpush1.bf16.msra.mxu0 %v1604_v21  ;;  %741 = vmatpush1.bf16.msra.mxu1 %v1605_v22 }
  0x2d   : > { %477 = vmatprep.subr.bf16.mxu0 %v1676_v1  ;;  %742 = vmatprep.subr.bf16.mxu1 %v1676_v1 }
  0x30   : > { %478 = vmatpush1.bf16.msra.mxu0 %v1606_v23  ;;  %743 = vmatpush1.bf16.msra.mxu1 %v1607_v24 }
  0x31   : > { %479 = vmatprep.subr.bf16.mxu0 %v1676_v1  ;;  %744 = vmatprep.subr.bf16.mxu1 %v1676_v1 }
  0x34   : > { %480 = vmatpush1.bf16.msra.mxu0 %v1608_v25  ;;  %745 = vmatpush1.bf16.msra.mxu1 %v1609_v26 }
  0x35   : > { %1034 = vmatprep.subr.bf16.mxu0 %v1676_v1  ;;  %1536 = vmatprep.subr.bf16.mxu1 %v1676_v1 }
  0x37   : > { %490 = vmatmul.mubr.bf16.vlgmr.msra.gmra.mrb[0].mxu0 %v1610_v27  ;;  %755 = vmatmul.mubr.bf16.vlgmr.msra.gmra.mrb[0].mxu1 %v1613_v28 }
  0x38   : > { %1035 = vmatpush1.bf16.msra.mxu0 %v1616_v29  ;;  %1548 = vmatpush1.bf16.msra.mxu1 %v1616_v29 }
  0x39   : > { %1036 = vmatprep.subr.bf16.mxu0 %v1676_v1  ;;  %1537 = vmatprep.subr.bf16.mxu1 %v1676_v1 }
  0x3a   : > { %1390 = vmatprep.mubr.msk.bf16.mxu0 %vm432_vm0, %v1835_v30  ;;  %1426 = vmatprep.mubr.msk.bf16.mxu1 %vm432_vm0, %v1612_v15 }
  0x3c   : > { %1037 = vmatpush1.bf16.msra.mxu0 %v1619_v31  ;;  %1549 = vmatpush1.bf16.msra.mxu1 %v1619_v31 }
  0x3d   : > { %1038 = vmatprep.subr.bf16.mxu0 %v1676_v1  ;;  %1538 = vmatprep.subr.bf16.mxu1 %v1676_v1 }
  0x3f   : > { %498 = vmatmul.mubr.bf16.gmra.mrb[4].mxu0 %v1846_v32  ;;  %763 = vmatmul.mubr.bf16.gmra.mrb[4].mxu1 %v1610_v27 }
  0x40   : > { %1039 = vmatpush1.bf16.msra.mxu0 %v1621_v33  ;;  %1550 = vmatpush1.bf16.msra.mxu1 %v1621_v33 }
  0x41   : > { %1391 = vmatprep.mubr.msk.bf16.mxu0 %vm432_vm0, %v1853_v34  ;;  %1427 = vmatprep.mubr.msk.bf16.mxu1 %vm432_vm0, %v1835_v30 }
  0x42   : > { %1040 = vmatprep.subr.bf16.mxu0 %v1676_v1  ;;  %1539 = vmatprep.subr.bf16.mxu1 %v1676_v1 }
  0x44   : > { %1041 = vmatpush1.bf16.msra.mxu0 %v1625_v35  ;;  %1551 = vmatpush1.bf16.msra.mxu1 %v1625_v35 }
  0x45   : > { %1042 = vmatprep.subr.bf16.mxu0 %v1676_v1  ;;  %1540 = vmatprep.subr.bf16.mxu1 %v1676_v1 }
  0x47   : > { %506 = vmatmul.mubr.bf16.gmra.mrb[8].mxu0 %v1866_v36  ;;  %771 = vmatmul.mubr.bf16.gmra.mrb[8].mxu1 %v1846_v32 }
  0x48   : > { %1392 = vmatprep.mubr.msk.bf16.mxu0 %vm432_vm0, %v1870_v37  ;;  %1428 = vmatprep.mubr.msk.bf16.mxu1 %vm432_vm0, %v1853_v34 }
  0x49   : > { %1043 = vmatpush1.bf16.msra.mxu0 %v1628_v38  ;;  %1552 = vmatpush1.bf16.msra.mxu1 %v1628_v38 }
  0x4a   : > { %1044 = vmatprep.subr.bf16.mxu0 %v1676_v1  ;;  %1541 = vmatprep.subr.bf16.mxu1 %v1676_v1 }
  0x4d   : > { %1045 = vmatpush1.bf16.msra.mxu0 %v1630_v39  ;;  %1553 = vmatpush1.bf16.msra.mxu1 %v1630_v39 }
  0x4e   : > { %1046 = vmatprep.subr.bf16.mxu0 %v1676_v1  ;;  %1542 = vmatprep.subr.bf16.mxu1 %v1676_v1 }
  0x4f   : > { %514 = vmatmul.mubr.bf16.gmra.mrb[12].mxu0 %v1888_v40  ;;  %779 = vmatmul.mubr.bf16.gmra.mrb[12].mxu1 %v1866_v36 }
  0x50   : > { %1393 = vmatprep.mubr.msk.bf16.mxu0 %vm432_vm0, %v1892_v41  ;;  %1429 = vmatprep.mubr.msk.bf16.mxu1 %vm432_vm0, %v1870_v37 }
  0x51   : > { %1047 = vmatpush1.bf16.msra.mxu0 %v1634_v42  ;;  %1554 = vmatpush1.bf16.msra.mxu1 %v1634_v42 }
  0x52   : > { %1048 = vmatprep.subr.bf16.mxu0 %v1676_v1  ;;  %1543 = vmatprep.subr.bf16.mxu1 %v1676_v1 }
  0x55   : > { %1049 = vmatpush1.bf16.msra.mxu0 %v1637_v43  ;;  %1555 = vmatpush1.bf16.msra.mxu1 %v1637_v43 }
  0x56   : > { %1050 = vmatprep.subr.bf16.mxu0 %v1676_v1  ;;  %1544 = vmatprep.subr.bf16.mxu1 %v1676_v1 }
  0x57   : > { %522 = vmatmul.mubr.bf16.gmra.mrb[16].mxu0 %v1633_v44  ;;  %787 = vmatmul.mubr.bf16.gmra.mrb[16].mxu1 %v1888_v40 }
  0x58   : > { %1394 = vmatprep.mubr.msk.bf16.mxu0 %vm432_vm0, %v1635_v45  ;;  %1430 = vmatprep.mubr.msk.bf16.mxu1 %vm432_vm0, %v1892_v41 }
  0x59   : > { %1051 = vmatpush1.bf16.msra.mxu0 %v1639_v46  ;;  %1556 = vmatpush1.bf16.msra.mxu1 %v1639_v46 }
  0x5a   : > { %1052 = vmatprep.subr.bf16.mxu0 %v1676_v1  ;;  %1545 = vmatprep.subr.bf16.mxu1 %v1676_v1 }
  0x5d   : > { %1053 = vmatpush1.bf16.msra.mxu0 %v1643_v47  ;;  %1557 = vmatpush1.bf16.msra.mxu1 %v1643_v47 }
  0x5e   : > { %1054 = vmatprep.subr.bf16.mxu0 %v1676_v1  ;;  %1546 = vmatprep.subr.bf16.mxu1 %v1676_v1 }
  0x5f   : > { %530 = vmatmul.mubr.bf16.gmra.mrb[20].mxu0 %v1638_v48  ;;  %795 = vmatmul.mubr.bf16.gmra.mrb[20].mxu1 %v1633_v44 }
  0x60   : > { %1395 = vmatprep.mubr.msk.bf16.mxu0 %vm432_vm0, %v1640_v49  ;;  %1431 = vmatprep.mubr.msk.bf16.mxu1 %vm432_vm0, %v1635_v45 }
  0x61   : > { %1055 = vmatpush1.bf16.msra.mxu0 %v1646_v50  ;;  %1558 = vmatpush1.bf16.msra.mxu1 %v1646_v50 }
  0x62   : > { %1056 = vmatprep.subr.bf16.mxu0 %v1676_v1  ;;  %1547 = vmatprep.subr.bf16.mxu1 %v1676_v1 }
  0x65   : > { %1057 = vmatpush1.bf16.msra.mxu0 %v1648_v51  ;;  %1559 = vmatpush1.bf16.msra.mxu1 %v1648_v51 }
  0x67   : > { %538 = vmatmul.mubr.bf16.gmra.mrb[24].mxu0 %v1642_v52  ;;  %803 = vmatmul.mubr.bf16.gmra.mrb[24].mxu1 %v1638_v48 }
  0x68   : > { %1396 = vmatprep.mubr.msk.bf16.mxu0 %vm432_vm0, %v1644_v53  ;;  %1432 = vmatprep.mubr.msk.bf16.mxu1 %vm432_vm0, %v1640_v49 }
  0x6f   : > { %546 = vmatmul.mubr.bf16.gmra.mrb[28].mxu0 %v1647_v54  ;;  %811 = vmatmul.mubr.bf16.gmra.mrb[28].mxu1 %v1642_v52 }
  0x70   : > { %1501 = vmatprep.mubr.msk.bf16.mxu0 %vm432_vm0, %v1835_v30  ;;  %1505 = vmatprep.mubr.msk.bf16.mxu1 %vm432_vm0, %v1635_v45 }
  0x77   : > { %1067 = vmatmul.mubr.bf16.vlgmr.msra.gmra.mrb[32].mxu0 %v1846_v32  ;;  %1099 = vmatmul.mubr.bf16.vlgmr.msra.gmra.mrb[32].mxu1 %v1638_v48 }
  0x78   : > { %1502 = vmatprep.mubr.msk.bf16.mxu0 %vm432_vm0, %v1853_v34  ;;  %1506 = vmatprep.mubr.msk.bf16.mxu1 %vm432_vm0, %v1640_v49 }
  0x7f   : > { %1075 = vmatmul.mubr.bf16.gmra.mrb[36].mxu0 %v1866_v36  ;;  %1107 = vmatmul.mubr.bf16.gmra.mrb[36].mxu1 %v1642_v52 }
  0x80   : > { %1503 = vmatprep.mubr.msk.bf16.mxu0 %vm432_vm0, %v1870_v37  ;;  %1507 = vmatprep.mubr.msk.bf16.mxu1 %vm432_vm0, %v1644_v53 }
  0x87   : > { %1083 = vmatmul.mubr.bf16.gmra.mrb[40].mxu0 %v1888_v40  ;;  %1115 = vmatmul.mubr.bf16.gmra.mrb[40].mxu1 %v1647_v54 }
  0x88   : > { %1504 = vmatprep.mubr.msk.bf16.mxu0 %vm432_vm0, %v1892_v41  ;;  %1508 = vmatprep.mubr.msk.bf16.mxu1 %vm432_vm0, %v1649_v55 }
  0x8f   : > { %1091 = vmatmul.mubr.bf16.gmra.mrb[44].mxu0 %v1633_v44  ;;  %1123 = vmatmul.mubr.bf16.gmra.mrb[44].mxu1 %v1651_v56 }
 0x10a   : > { %v491_v57 = vpop.f32.mrb[0].mxu0  ;;  %v756_v58 = vpop.f32.mrb[0].mxu1 }
 0x10b   : > { %v493_v59 = vpop.f32.mrb[1].mxu0  ;;  %v1962_v60 = vadd.f32 %v756_v58, %v491_v57  ;;  %v758_v61 = vpop.f32.mrb[1].mxu1 }
 0x10c   : > { %v494_v62 = vpop.f32.mrb[2].mxu0  ;;  %v759_v63 = vpop.f32.mrb[2].mxu1 }
 0x10d   : > { %v496_v0 = vpop.f32.mrb[3].mxu0  ;;  %v761_v1 = vpop.f32.mrb[3].mxu1 }
 0x112   : > { %v499_v2 = vpop.f32.mrb[4].mxu0  ;;  %v764_v3 = vpop.f32.mrb[4].mxu1 }
 0x113   : > { %v501_v4 = vpop.f32.mrb[5].mxu0  ;;  %v1964_v5 = vadd.f32 %v764_v3, %v499_v2  ;;  %v766_v6 = vpop.f32.mrb[5].mxu1 }
 0x114   : > { %v502_v7 = vpop.f32.mrb[6].mxu0  ;;  %v767_v8 = vpop.f32.mrb[6].mxu1 }
 0x115   : > { %v504_v9 = vpop.f32.mrb[7].mxu0  ;;  %v769_v10 = vpop.f32.mrb[7].mxu1 }
 0x11a   : > { %v507_v11 = vpop.f32.mrb[8].mxu0  ;;  %v772_v12 = vpop.f32.mrb[8].mxu1 }
 0x11b   : > { %v509_v13 = vpop.f32.mrb[9].mxu0  ;;  %v1966_v14 = vadd.f32 %v772_v12, %v507_v11  ;;  %v774_v15 = vpop.f32.mrb[9].mxu1 }
 0x11c   : > { %v510_v16 = vpop.f32.mrb[10].mxu0  ;;  %v775_v17 = vpop.f32.mrb[10].mxu1  ;;  %v1509_v13 = vld [vmem:[%s1998_s2] ss:$0 sm:$0xff] }
 0x11d   : > { %v512_v18 = vpop.f32.mrb[11].mxu0  ;;  %v777_v19 = vpop.f32.mrb[11].mxu1 }
 0x122   : > { %v515_v20 = vpop.f32.mrb[12].mxu0  ;;  %v780_v21 = vpop.f32.mrb[12].mxu1 }
 0x123   : > { %v517_v22 = vpop.f32.mrb[13].mxu0  ;;  %v1968_v23 = vadd.f32 %v780_v21, %v515_v20  ;;  %v782_v24 = vpop.f32.mrb[13].mxu1 }
 0x124   : > { %v518_v25 = vpop.f32.mrb[14].mxu0  ;;  %v783_v26 = vpop.f32.mrb[14].mxu1 }
 0x125   : > { %v520_v27 = vpop.f32.mrb[15].mxu0  ;;  %v785_v28 = vpop.f32.mrb[15].mxu1 }
 0x12a   : > { %v523_v29 = vpop.f32.mrb[16].mxu0  ;;  %v788_v30 = vpop.f32.mrb[16].mxu1 }
 0x12b   : > { %v525_v31 = vpop.f32.mrb[17].mxu0  ;;  %v789_v32 = vadd.f32 %v788_v30, %v523_v29  ;;  %v790_v33 = vpop.f32.mrb[17].mxu1 }
 0x12c   : > { %v526_v34 = vpop.f32.mrb[18].mxu0  ;;  %v791_v35 = vpop.f32.mrb[18].mxu1 }
 0x12d   : > { %v528_v36 = vpop.f32.mrb[19].mxu0  ;;  %v793_v37 = vpop.f32.mrb[19].mxu1 }
 0x132   : > { %v531_v38 = vpop.f32.mrb[20].mxu0  ;;  %v796_v39 = vpop.f32.mrb[20].mxu1 }
 0x133   : > { %v533_v40 = vpop.f32.mrb[21].mxu0  ;;  %v797_v41 = vadd.f32 %v796_v39, %v531_v38  ;;  %v798_v42 = vpop.f32.mrb[21].mxu1 }
 0x134   : > { %v534_v43 = vpop.f32.mrb[22].mxu0  ;;  %v799_v44 = vpop.f32.mrb[22].mxu1 }
 0x135   : > { %v536_v45 = vpop.f32.mrb[23].mxu0  ;;  %v801_v46 = vpop.f32.mrb[23].mxu1 }
 0x13a   : > { %v539_v47 = vpop.f32.mrb[24].mxu0  ;;  %v804_v48 = vpop.f32.mrb[24].mxu1 }
 0x13b   : > { %v541_v49 = vpop.f32.mrb[25].mxu0  ;;  %v805_v50 = vadd.f32 %v804_v48, %v539_v47  ;;  %v806_v51 = vpop.f32.mrb[25].mxu1 }
 0x13c   : > { %v542_v52 = vpop.f32.mrb[26].mxu0  ;;  %v807_v53 = vpop.f32.mrb[26].mxu1 }
 0x13d   : > { %v544_v54 = vpop.f32.mrb[27].mxu0  ;;  %v809_v55 = vpop.f32.mrb[27].mxu1 }
 0x142   : > { %v547_v56 = vpop.f32.mrb[28].mxu0  ;;  %v812_v57 = vpop.f32.mrb[28].mxu1 }
 0x143   : > { %v549_v58 = vpop.f32.mrb[29].mxu0  ;;  %v813_v59 = vadd.f32 %v812_v57, %v547_v56  ;;  %v814_v61 = vpop.f32.mrb[29].mxu1 }
 0x144   : > { %v550_v62 = vpop.f32.mrb[30].mxu0  ;;  %v815_v63 = vpop.f32.mrb[30].mxu1 }
 0x145   : > { %v552_v0 = vpop.f32.mrb[31].mxu0  ;;  %v817_v1 = vpop.f32.mrb[31].mxu1 }
 0x14a   : > { %v1068_v2 = vpop.f32.mrb[32].mxu0  ;;  %v1100_v4 = vpop.f32.mrb[32].mxu1 }
 0x14b   : > { %v1131_v3 = vadd.f32 %v1068_v2, %v1962_v60  ;;  %v1070_v6 = vpop.f32.mrb[33].mxu0  ;;  %v1139_v7 = vadd.f32 %v1100_v4, %v789_v32  ;;  %v1102_v8 = vpop.f32.mrb[33].mxu1 }
 0x14c   : > { %v1071_v9 = vpop.f32.mrb[34].mxu0  ;;  %v1103_v10 = vpop.f32.mrb[34].mxu1 }
 0x14d   : > { %v1073_v11 = vpop.f32.mrb[35].mxu0  ;;  %v1105_v12 = vpop.f32.mrb[35].mxu1  ;;  %v1154_v16 = vadd.f32 %v1509_v13, %v1131_v3  ;;  %v1162_v60 = vadd.f32 %v1509_v13, %v1139_v7 }
 0x14f   : > { %v1170_v29 = vmax.f32 %v1154_v16, 0.0  ;;  %v1178_v31 = vmax.f32 %v1162_v60, 0.0 }
 0x152   : > { %v1076_v15 = vpop.f32.mrb[36].mxu0  ;;  %v1108_v18 = vpop.f32.mrb[36].mxu1 }
 0x153   : > { %v1133_v17 = vadd.f32 %v1076_v15, %v1964_v5  ;;  %v1078_v19 = vpop.f32.mrb[37].mxu0  ;;  %v1141_v20 = vadd.f32 %v1108_v18, %v797_v41  ;;  %v1110_v21 = vpop.f32.mrb[37].mxu1 }
 0x154   : > { %v1079_v22 = vpop.f32.mrb[38].mxu0  ;;  %v1111_v25 = vpop.f32.mrb[38].mxu1 }
 0x155   : > { %v1156_v24 = vadd.f32 %v1509_v13, %v1133_v17  ;;  %v1081_v26 = vpop.f32.mrb[39].mxu0  ;;  %v1164_v27 = vadd.f32 %v1509_v13, %v1141_v20  ;;  %v1113_v28 = vpop.f32.mrb[39].mxu1 }
 0x157   : > { %v1172_v30 = vmax.f32 %v1156_v24, 0.0  ;;  %v1180_v5 = vmax.f32 %v1164_v27, 0.0 }
 0x159   : > { %v1516_v32 = vpack.c.bf16 %v1172_v30, %v1170_v29  ;;  %v1526_v33 = vpack.c.bf16 %v1180_v5, %v1178_v31 }
 0x15a   : > { %v1084_v34 = vpop.f32.mrb[40].mxu0  ;;  %v1116_v36 = vpop.f32.mrb[40].mxu1 }
 0x15b   : > { %1517 = vst [vmem:[%s1979_s29] sm:$0xff] %v1516_v32   ;;  %v1135_v35 = vadd.f32 %v1084_v34, %v1966_v14  ;;  %v1086_v37 = vpop.f32.mrb[41].mxu0  ;;  %1534 = vst [vmem:[%s1979_s29 + $0x10] sm:$0xff] %v1526_v33   ;;  %v1143_v38 = vadd.f32 %v1116_v36, %v805_v50  ;;  %v1118_v39 = vpop.f32.mrb[41].mxu1 }
 0x15c   : > { %v1087_v40 = vpop.f32.mrb[42].mxu0  ;;  %v1119_v41 = vpop.f32.mrb[42].mxu1 }
 0x15d   : > { %v1089_v42 = vpop.f32.mrb[43].mxu0  ;;  %v1121_v43 = vpop.f32.mrb[43].mxu1  ;;  %v1158_v45 = vadd.f32 %v1509_v13, %v1135_v35  ;;  %v1166_v49 = vadd.f32 %v1509_v13, %v1143_v38 }
 0x15f   : > { %v1174_v57 = vmax.f32 %v1158_v45, 0.0  ;;  %v1182_v61 = vmax.f32 %v1166_v49, 0.0 }
 0x162   : > { %v1092_v44 = vpop.f32.mrb[44].mxu0  ;;  %v1124_v47 = vpop.f32.mrb[44].mxu1 }
 0x163   : > { %v1137_v46 = vadd.f32 %v1092_v44, %v1968_v23  ;;  %v1094_v48 = vpop.f32.mrb[45].mxu0  ;;  %v1145_v51 = vadd.f32 %v1124_v47, %v813_v59  ;;  %v1126_v14 = vpop.f32.mrb[45].mxu1 }
 0x164   : > { %v1095_v52 = vpop.f32.mrb[46].mxu0  ;;  %v1127_v54 = vpop.f32.mrb[46].mxu1 }
 0x165   : > { %v1160_v53 = vadd.f32 %v1509_v13, %v1137_v46  ;;  %v1097_v50 = vpop.f32.mrb[47].mxu0  ;;  %v1168_v55 = vadd.f32 %v1509_v13, %v1145_v51  ;;  %v1129_v56 = vpop.f32.mrb[47].mxu1 }
 0x167   : > { %v1176_v58 = vmax.f32 %v1160_v53, 0.0  ;;  %v1184_v62 = vmax.f32 %v1168_v55, 0.0 }
 0x169   : > { %v1521_v63 = vpack.c.bf16 %v1176_v58, %v1174_v57  ;;  %v1531_v0 = vpack.c.bf16 %v1184_v62, %v1182_v61 }
 0x16b   : > { %1533 = vst [vmem:[%s1979_s29 + $0x8] sm:$0xff] %v1521_v63   ;;  %1535 = vst [vmem:[%s1979_s29 + $0x18] sm:$0xff] %v1531_v0  }
 0x16c PF: > { %s13_s14 = sadd.s32 1, %s1674_s14   ;;  %s2000_s12 = smov %s1670_s13 }
 0x16d   : > { %p10_p5 = scmp.ge.s32.totalorder %s13_s14, 4   ;;  %s2001_s13 = smov %s2003_s15 }
 0x16f   :  { %12 = sbr.rel (!%p10_p5) target bundleno = 2 (0x2), region = 67 }

// kernel: tile.6
= control target key start
LH: loop header
LB: loop body
LE: loop exit
PB: predicated region body
PF: predicated region fallthrough
CT: control target
= control target key end

     0   :  { %s22_s0 = inlined_call_operand.vmem [shape: f32[64], index: 0, kind: input, shape index: {}]   ;;  %s23_s1 = inlined_call_operand.vmem [shape: f32[4,64], index: 1, kind: output, shape index: {}]  }
   0x1   :  { %v4_v0 = vld [vmem:[%s22_s0] ss:$0 sm:$0xff] }
   0x2   :  { %5 = vst [vmem:[%s23_s1] sm:$0xf] %v4_v0 }

// kernel: tile.7
= control target key start
LH: loop header
LB: loop body
LE: loop exit
PB: predicated region body
PF: predicated region fallthrough
CT: control target
= control target key end

     0   :  { %s6_s8 = smov 3  ;;  %vm8_vm0 = vcmask 523264   ;;  %s30_s9 = smov 64   ;;  %vm15_vm1 = vcmask 1048064   ;;  %s50_s0 = inlined_call_operand.vmem [shape: f32[4,64], index: 0, kind: input, shape index: {}]   ;;  %s51_s1 = inlined_call_operand.vmem [shape: f32[1,256], index: 1, kind: output, shape index: {}]  }
   0x1   :  { %v4_v0 = vld [vmem:[%s50_s0] sm:$0xf]  ;;  %s11_s0 = smov 3 }
   0x2   :  { %5 = vst [vmem:[#allocation1] sm:$0xf] %v4_v0 }
   0x9   :  { %v12_v1 = vld [vmem:[#allocation1 + $0x1] ss:$2 sm:%s11_s0]   ;;  %v7_v2 = vld [vmem:[#allocation1] ss:$2 sm:%s6_s8]  }
   0xa   :  { %13 = vrot.lane.b32.xlu0 %v12_v1, %s30_s9  ;;  %9 = vst.msk [vmem:[#allocation0] ss:$8 sm:$0x3] %vm8_vm0, %v7_v2  }
  0x7c   :  { %v14_v3 = vpop.permute.xlu0 %13  }
  0x7d   :  { %16 = vst.msk [vmem:[#allocation0] ss:$8 sm:$0x3] %vm15_vm1, %v14_v3  }
  0x84   :  { %v20_v4 = vld [vmem:[#allocation0] sm:$0x1]  ;;  %v24_v5 = vld [vmem:[#allocation0 + $0x8] sm:$0x1] }
  0x85   :  { %22 = vst [vmem:[%s51_s1] sm:$0x1] %v20_v4  ;;  %28 = vst [vmem:[%s51_s1 + $0x1] sm:$0x1] %v24_v5 }

// kernel: _lambda_.11
= control target key start
LH: loop header
LB: loop body
LE: loop exit
PB: predicated region body
PF: predicated region fallthrough
CT: control target
= control target key end

     0   :  { %s3005_s12 = smov 0   ;;  %s3007_s13 = smov 0   ;;  %s3402_s0 = inlined_call_operand.vmem [shape: bf16[2,160,384], index: 0, kind: input, shape index: {}]   ;;  %s3403_s1 = inlined_call_operand.vmem [shape: bf16[3,384,128], index: 1, kind: input, shape index: {}]   ;;  %s3404_s2 = inlined_call_operand.vmem [shape: f32[1,128], index: 2, kind: input, shape index: {}]   ;;  %s3405_s3 = inlined_call_operand.vmem [shape: bf16[2,4,4,128], index: 3, kind: output, shape index: {}]  }
   0x1   :  { %s3009_s14 = smov 0  }
   0x2 LB: > { %s25_s15 = sadd.s32 1, %s2979_s13  ;;  %p2066_p0 = scmp.ge.s32.totalorder %s2983_s14, 1  ;;  %s2983_s14 = sphi %s3009_s14, %s13_s14   ;;  %s2979_s13 = sphi %s3007_s13, %s3407_s13   ;;  %s2975_s12 = sphi %s3005_s12, %s3406_s12  }
   0x3   : > { %p27_p1 = scmp.ge.s32.totalorder %s25_s15, 2  ;;  %p151_p2 = scmp.lt.s32.totalorder %s2983_s14, 3 }
   0x5   : > { %s3409_s15 = smov (%p27_p1, %s25_s15), 0  ;;  %p152_p3 = pnand %p2066_p0, %p151_p2 }
   0x6   : > { %v2835_v0 = vld [vmem:[%s3403_s1 + $0x100] sm:$0xff] (!%p152_p3)   ;;  %v2838_v3 = vld [vmem:[%s3403_s1 + $0x108] sm:$0xff] (!%p152_p3)   ;;  %v2841_v6 = vld [vmem:[%s3403_s1 + $0x110] sm:$0xff] (!%p152_p3)   ;;  %p179_p4 = scmp.lt.s32.totalorder (!%p152_p3), %s2975_s12, 1 }
   0x7   : > { %155 = sbr.rel (%p152_p3) target bundleno = 414 (0x19e), region = 32  ;;  %v2836_v1 = vld [vmem:[%s3403_s1 + $0x140] sm:$0xff] (!%p152_p3)   ;;  %2378 = vmatprep.subr.bf16.mxu0 (!%p152_p3), %v2835_v0  ;;  %v2839_v4 = vld [vmem:[%s3403_s1 + $0x148] sm:$0xff] (!%p152_p3)   ;;  %v2842_v7 = vld [vmem:[%s3403_s1 + $0x150] sm:$0xff] (!%p152_p3)  }
   0x8   : > { %v2837_v2 = vld [vmem:[%s3403_s1 + $0xc0] sm:$0xff] (!%p152_p3)   ;;  %2618 = vmatprep.subr.bf16.mxu1 (!%p152_p3), %v2836_v1  ;;  %v2840_v5 = vld [vmem:[%s3403_s1 + $0xc8] sm:$0xff] (!%p152_p3)   ;;  %v2843_v8 = vld [vmem:[%s3403_s1 + $0xd0] sm:$0xff] (!%p152_p3)  }
   0x9   : > { %2379 = vmatpush3.bf16.msra.mxu0 (!%p152_p3), %v2837_v2  ;;  %2619 = vmatpush3.bf16.msra.mxu1 (!%p152_p3), %v2836_v1  ;;  %v2844_v9 = vld [vmem:[%s3403_s1 + $0x118] sm:$0xff] (!%p152_p3)   ;;  %v2847_v12 = vld [vmem:[%s3403_s1 + $0x120] sm:$0xff] (!%p152_p3)   ;;  %v2850_v15 = vld [vmem:[%s3403_s1 + $0x128] sm:$0xff] (!%p152_p3)  }
   0xa   : > { %2380 = vmatprep.subr.bf16.mxu0 (!%p152_p3), %v2838_v3  ;;  %2620 = vmatprep.subr.bf16.mxu1 (!%p152_p3), %v2839_v4  ;;  %v2845_v10 = vld [vmem:[%s3403_s1 + $0x158] sm:$0xff] (!%p152_p3)   ;;  %v2848_v13 = vld [vmem:[%s3403_s1 + $0x160] sm:$0xff] (!%p152_p3)   ;;  %v2851_v16 = vld [vmem:[%s3403_s1 + $0x168] sm:$0xff] (!%p152_p3)  }
   0xb   : > { %v2846_v11 = vld [vmem:[%s3403_s1 + $0xd8] sm:$0xff] (!%p152_p3)   ;;  %v2849_v14 = vld [vmem:[%s3403_s1 + $0xe0] sm:$0xff] (!%p152_p3)   ;;  %v2852_v17 = vld [vmem:[%s3403_s1 + $0xe8] sm:$0xff] (!%p152_p3)  }
   0xc   : > { %v2853_v18 = vld [vmem:[%s3403_s1 + $0x130] sm:$0xff] (!%p152_p3)   ;;  %v2856_v21 = vld [vmem:[%s3403_s1 + $0x138] sm:$0xff] (!%p152_p3)   ;;  %v2864_v26 = vld [vmem:[%s3403_s1 + $0x40] sm:$0xff] (!%p152_p3)  }
   0xd   : > { %2381 = vmatpush3.bf16.msra.mxu0 (!%p152_p3), %v2840_v5  ;;  %2621 = vmatpush3.bf16.msra.mxu1 (!%p152_p3), %v2839_v4  ;;  %v2854_v19 = vld [vmem:[%s3403_s1 + $0x170] sm:$0xff] (!%p152_p3)   ;;  %v2857_v22 = vld [vmem:[%s3403_s1 + $0x178] sm:$0xff] (!%p152_p3)   ;;  %v2865_v28 = vld [vmem:[%s3403_s1 + $0x1c0] sm:$0xff] (!%p152_p3)  }
   0xe   : > { %2382 = vmatprep.subr.bf16.mxu0 %v2841_v6  ;;  %2622 = vmatprep.subr.bf16.mxu1 %v2842_v7  ;;  %s3411_s12 = smov (!%p179_p4, %s2975_s12), 1  ;;  %v2855_v20 = vld [vmem:[%s3403_s1 + $0xf0] sm:$0xff]   ;;  %v2858_v25 = vld [vmem:[%s3403_s1 + $0xf8] sm:$0xff]   ;;  %v2866_v30 = vld [vmem:[%s3403_s1] sm:$0xff]  }
   0xf   : > { %s2810_s27 = smul.u32 240, %s3411_s12  ;;  %v2867_v31 = vld [vmem:[%s3403_s1 + $0x180] sm:$0xff]   ;;  %v2868_v32 = vld [vmem:[%s3403_s1 + $0x48] sm:$0xff]   ;;  %v2875_v38 = vld [vmem:[%s3403_s1 + $0x50] sm:$0xff]   ;;  %s2377_s4 = sshll.u32 %s3411_s12, 3 }
  0x10   : > { %v2869_v35 = vld [vmem:[%s3403_s1 + $0x8] sm:$0xff]   ;;  %v2877_v40 = vld [vmem:[%s3403_s1 + $0x10] sm:$0xff]   ;;  %v2879_v42 = vld [vmem:[%s3403_s1 + $0x58] sm:$0xff]   ;;  %s192_s6 = scalar_lea.vmem %s3405_s3, %s2377_s4 }
  0x11   : > { %2383 = vmatpush3.bf16.msra.mxu0 %v2843_v8  ;;  %2623 = vmatpush3.bf16.msra.mxu1 %v2842_v7  ;;  %s3096_s11 = scalar_lea.vmem %s3402_s0, %s2810_s27  ;;  %v2876_v39 = vld [vmem:[%s3403_s1 + $0x1c8] sm:$0xff]   ;;  %v2880_v44 = vld [vmem:[%s3403_s1 + $0x18] sm:$0xff]   ;;  %v2886_v48 = vld [vmem:[%s3403_s1 + $0x60] sm:$0xff]  }
  0x12   : > { %2384 = vmatprep.subr.bf16.mxu0 %v2844_v9  ;;  %2624 = vmatprep.subr.bf16.mxu1 %v2845_v10  ;;  %v3105_v23 = vld [vmem:[%s3096_s11 + $0x1c] ss:$12 sps:$4 sm:$0xff]   ;;  %v2862_v24 = vld [vmem:[%s3096_s11 + $0x20] ss:$12 sps:$4 sm:$0xff]   ;;  %v3116_v27 = vld [vmem:[%s3096_s11 + $0x18] ss:$12 sps:$4 sm:$0xff]  }
  0x13   : > { %672 = vmatprep.mubr.bf16.mxu0 %v3105_v23  ;;  %2634 = vmatprep.mubr.bf16.mxu1 %v2862_v24  ;;  %v2863_v29 = vld [vmem:[%s3096_s11 + $0x38] ss:$12 sps:$4 sm:$0xff]   ;;  %v3132_v33 = vld [vmem:[%s3096_s11 + $0x34] ss:$12 sps:$4 sm:$0xff]   ;;  %v2872_v34 = vld [vmem:[%s3096_s11 + $0x50] ss:$12 sps:$4 sm:$0xff]  }
  0x14   : > { %v3141_v36 = vld [vmem:[%s3096_s11 + $0x30] ss:$12 sps:$4 sm:$0xff]   ;;  %v2874_v37 = vld [vmem:[%s3096_s11 + $0x68] ss:$12 sps:$4 sm:$0xff]   ;;  %v3161_v43 = vld [vmem:[%s3096_s11 + $0x4c] ss:$12 sps:$4 sm:$0xff]  }
  0x15   : > { %2385 = vmatpush3.bf16.msra.mxu0 %v2846_v11  ;;  %2625 = vmatpush3.bf16.msra.mxu1 %v2845_v10  ;;  %v2878_v41 = vld [vmem:[%s3403_s1 + $0x188] sm:$0xff]   ;;  %v2885_v47 = vld [vmem:[%s3096_s11 + $0x98] ss:$12 sps:$4 sm:$0xff]   ;;  %v2887_v49 = vld [vmem:[%s3403_s1 + $0x1d0] sm:$0xff]  }
  0x16   : > { %2386 = vmatprep.subr.bf16.mxu0 %v2847_v12  ;;  %2626 = vmatprep.subr.bf16.mxu1 %v2848_v13  ;;  %v2883_v45 = vld [vmem:[%s3096_s11 + $0x80] ss:$12 sps:$4 sm:$0xff]   ;;  %v3169_v46 = vld [vmem:[%s3096_s11 + $0x48] ss:$12 sps:$4 sm:$0xff]   ;;  %v3192_v54 = vld [vmem:[%s3096_s11 + $0x64] ss:$12 sps:$4 sm:$0xff]  }
  0x17   : > { %v2888_v50 = vld [vmem:[%s3403_s1 + $0x20] sm:$0xff]   ;;  %v2889_v51 = vld [vmem:[%s3403_s1 + $0x190] sm:$0xff]   ;;  %v2890_v52 = vld [vmem:[%s3403_s1 + $0x68] sm:$0xff]  }
  0x18   : > { %v2891_v53 = vld [vmem:[%s3403_s1 + $0x28] sm:$0xff]   ;;  %v2894_v55 = vld [vmem:[%s3096_s11 + $0xb0] ss:$12 sps:$4 sm:$0xff]   ;;  %v3225_v3 = vld [vmem:[%s3096_s11 + $0x78] ss:$12 sps:$4 sm:$0xff]  }
  0x19   : > { %2387 = vmatpush3.bf16.msra.mxu0 %v2849_v14  ;;  %2627 = vmatpush3.bf16.msra.mxu1 %v2848_v13  ;;  %v3197_v56 = vld [vmem:[%s3096_s11 + $0x60] ss:$12 sps:$4 sm:$0xff]   ;;  %v2896_v57 = vld [vmem:[%s3096_s11 + $0xc8] ss:$12 sps:$4 sm:$0xff]   ;;  %v2898_v59 = vld [vmem:[%s3403_s1 + $0x1d8] sm:$0xff]  }
  0x1a   : > { %2388 = vmatprep.subr.bf16.mxu0 %v2850_v15  ;;  %2628 = vmatprep.subr.bf16.mxu1 %v2851_v16  ;;  %v2897_v58 = vld [vmem:[%s3403_s1 + $0x70] sm:$0xff]   ;;  %v2900_v61 = vld [vmem:[%s3403_s1 + $0x198] sm:$0xff]   ;;  %v2905_v1 = vld [vmem:[%s3096_s11] ss:$12 sps:$4 sm:$0xff]  }
  0x1b   : > { %v2899_v60 = vld [vmem:[%s3403_s1 + $0x30] sm:$0xff]   ;;  %v2901_v62 = vld [vmem:[%s3403_s1 + $0x78] sm:$0xff]   ;;  %v2909_v4 = vld [vmem:[%s3403_s1 + $0x80] sm:$0xff]  }
  0x1c   : > { %v2902_v63 = vld [vmem:[%s3403_s1 + $0x38] sm:$0xff]   ;;  %v2907_v2 = vld [vmem:[%s3096_s11 + $0x4] ss:$12 sps:$4 sm:$0xff]   ;;  %v3239_v7 = vld [vmem:[%s3096_s11 + $0x94] ss:$12 sps:$4 sm:$0xff]  }
  0x1d   : > { %2389 = vmatpush3.bf16.msra.mxu0 %v2852_v17  ;;  %2629 = vmatpush3.bf16.msra.mxu1 %v2851_v16  ;;  %v3220_v0 = vld [vmem:[%s3096_s11 + $0x7c] ss:$12 sps:$4 sm:$0xff]   ;;  %v2910_v5 = vld [vmem:[%s3403_s1 + $0x1e0] sm:$0xff]   ;;  %v3256_v12 = vld [vmem:[%s3096_s11 + $0xac] ss:$12 sps:$4 sm:$0xff]  }
  0x1e   : > { %2390 = vmatprep.subr.bf16.mxu0 %v2853_v18  ;;  %2630 = vmatprep.subr.bf16.mxu1 %v2854_v19  ;;  %v2911_v6 = vld [vmem:[%s3403_s1 + $0x1a0] sm:$0xff]   ;;  %v3243_v8 = vld [vmem:[%s3096_s11 + $0x90] ss:$12 sps:$4 sm:$0xff]   ;;  %v2915_v9 = vld [vmem:[%s3403_s1 + $0x88] sm:$0xff]  }
  0x1f   : > { %v2916_v10 = vld [vmem:[%s3403_s1 + $0x1e8] sm:$0xff]   ;;  %v2921_v13 = vld [vmem:[%s3403_s1 + $0x90] sm:$0xff]   ;;  %v2927_v17 = vld [vmem:[%s3403_s1 + $0x98] sm:$0xff]  }
  0x20   : > { %v2917_v11 = vld [vmem:[%s3403_s1 + $0x1a8] sm:$0xff]   ;;  %v2922_v14 = vld [vmem:[%s3403_s1 + $0x1f0] sm:$0xff]  }
  0x21   : > { %2391 = vmatpush3.bf16.msra.mxu0 %v2855_v20  ;;  %2631 = vmatpush3.bf16.msra.mxu1 %v2854_v19  ;;  %v2923_v15 = vld [vmem:[%s3403_s1 + $0x1b0] sm:$0xff]   ;;  %v2928_v19 = vld [vmem:[%s3403_s1 + $0x1f8] sm:$0xff]   ;;  %v3303_v24 = vld [vmem:[%s3096_s11 + $0xc0] ss:$12 sps:$4 sm:$0xff]  }
  0x22   : > { %2392 = vmatprep.subr.bf16.mxu0 %v2856_v21  ;;  %2632 = vmatprep.subr.bf16.mxu1 %v2857_v22  ;;  %v3272_v16 = vld [vmem:[%s3096_s11 + $0xa8] ss:$12 sps:$4 sm:$0xff]   ;;  %v3278_v18 = vld [vmem:[%s3096_s11 + $0xc4] ss:$12 sps:$4 sm:$0xff]   ;;  %v2929_v20 = vld [vmem:[%s3403_s1 + $0x1b8] sm:$0xff]  }
  0x23   : > { %v2930_v21 = vld [vmem:[%s3403_s1 + $0xa0] sm:$0xff]  }
  0x25   : > { %2393 = vmatpush3.bf16.msra.mxu0 %v2858_v25  ;;  %2633 = vmatpush3.bf16.msra.mxu1 %v2857_v22  ;;  %v3292_v22 = vld [vmem:[%s3403_s1 + $0x200] sm:$0xff]   ;;  %v2934_v25 = vld [vmem:[%s3403_s1 + $0xb0] sm:$0xff]  }
  0x26   : > { %2458 = vmatprep.subr.bf16.mxu1 %v2864_v26  ;;  %2538 = vmatprep.subr.bf16.mxu0 %v2865_v28  ;;  %v2936_v26 = vld [vmem:[%s3403_s1 + $0xb8] sm:$0xff]   ;;  %v2935_v28 = vld [vmem:[%s3403_s1 + $0x210] sm:$0xff]  }
  0x28   : > { %673 = vmatmul.mubr.bf16.vlgmr.msra.gmra.mrb[0].mxu0 %v3116_v27  ;;  %2635 = vmatmul.mubr.bf16.vlgmr.msra.gmra.mrb[0].mxu1 %v2863_v29  ;;  %v2937_v29 = vld [vmem:[%s3403_s1 + $0x218] sm:$0xff]  }
  0x29   : > { %2459 = vmatpush3.bf16.msra.mxu1 %v2866_v30  ;;  %2539 = vmatpush3.bf16.msra.mxu0 %v2867_v31  ;;  %v2940_v30 = vld [vmem:[%s3403_s1 + $0x220] sm:$0xff]   ;;  %v2943_v31 = vld [vmem:[%s3403_s1 + $0x228] sm:$0xff]  }
  0x2a   : > { %2460 = vmatprep.subr.bf16.mxu1 %v2868_v32  ;;  %680 = vmatprep.mubr.bf16.mxu0 %v3132_v33  ;;  %v2946_v32 = vld [vmem:[%s3403_s1 + $0x230] sm:$0xff]  }
  0x2b   : > { %2638 = vmatprep.mubr.bf16.mxu1 %v2872_v34  ;;  %2540 = vmatprep.subr.bf16.mxu0 %v2876_v39  ;;  %v2952_v34 = vld [vmem:[%s3403_s1 + $0x238] sm:$0xff]   ;;  %v2945_v39 = vld [vmem:[%s3096_s11 + $0x80] ss:$12 sps:$4 sm:$0xff]  }
  0x2d   : > { %2461 = vmatpush3.bf16.msra.mxu1 %v2869_v35  ;;  %2541 = vmatpush3.bf16.msra.mxu0 %v2878_v41  ;;  %v2939_v35 = vld [vmem:[%s3096_s11 + $0x20] ss:$12 sps:$4 sm:$0xff]   ;;  %v2948_v41 = vld [vmem:[%s3096_s11 + $0xdc] ss:$12 sps:$4 sm:$0xff]  }
  0x2e   : > { %2462 = vmatprep.subr.bf16.mxu1 %v2875_v38  ;;  %2542 = vmatprep.subr.bf16.mxu0 %v2887_v49  ;;  %v2944_v38 = vld [vmem:[%s3096_s11 + $0x68] ss:$12 sps:$4 sm:$0xff]  }
  0x2f   : > { %v2958_v49 = vld [vmem:[%s3096_s11 + $0xc8] ss:$12 sps:$4 sm:$0xff]  }
  0x30   : > { %681 = vmatmul.mubr.bf16.gmra.mrb[4].mxu0 %v3141_v36  ;;  %2639 = vmatmul.mubr.bf16.gmra.mrb[4].mxu1 %v2874_v37  ;;  %v2942_v37 = vld [vmem:[%s3096_s11 + $0x50] ss:$12 sps:$4 sm:$0xff]  }
  0x31   : > { %2463 = vmatpush3.bf16.msra.mxu1 %v2877_v40  ;;  %688 = vmatprep.mubr.bf16.mxu0 %v3161_v43  ;;  %v2947_v40 = vld [vmem:[%s3096_s11 + $0x98] ss:$12 sps:$4 sm:$0xff]  }
  0x32   : > { %2464 = vmatprep.subr.bf16.mxu1 %v2879_v42  ;;  %2642 = vmatprep.mubr.bf16.mxu1 %v2883_v45  ;;  %v2950_v42 = vld [vmem:[%s3096_s11 + $0xb0] ss:$12 sps:$4 sm:$0xff]   ;;  %v2954_v45 = vld [vmem:[%s3096_s11 + $0x98] ss:$12 sps:$4 sm:$0xff]  }
  0x33   : > { %2543 = vmatpush3.bf16.msra.mxu0 %v2889_v51  ;;  %v2960_v51 = vld [vmem:[%s3096_s11 + $0xe0] ss:$12 sps:$4 sm:$0xff]  }
  0x34   : > { %2544 = vmatprep.subr.bf16.mxu0 %v2898_v59 }
  0x35   : > { %2465 = vmatpush3.bf16.msra.mxu1 %v2880_v44  ;;  %v2953_v44 = vld [vmem:[%s3096_s11 + $0x38] ss:$12 sps:$4 sm:$0xff]  }
  0x36   : > { %2466 = vmatprep.subr.bf16.mxu1 %v2886_v48  ;;  %v2957_v48 = vld [vmem:[%s3096_s11 + $0x68] ss:$12 sps:$4 sm:$0xff]  }
  0x37   : > { %2545 = vmatpush3.bf16.msra.mxu0 %v2900_v61 }
  0x38   : > { %689 = vmatmul.mubr.bf16.gmra.mrb[8].mxu0 %v3169_v46  ;;  %2643 = vmatmul.mubr.bf16.gmra.mrb[8].mxu1 %v2885_v47  ;;  %v2956_v47 = vld [vmem:[%s3096_s11 + $0xb0] ss:$12 sps:$4 sm:$0xff]  }
  0x39   : > { %2467 = vmatpush3.bf16.msra.mxu1 %v2888_v50  ;;  %696 = vmatprep.mubr.bf16.mxu0 %v3192_v54  ;;  %v2959_v50 = vld [vmem:[%s3096_s11 + $0x80] ss:$12 sps:$4 sm:$0xff]  }
  0x3a   : > { %2468 = vmatprep.subr.bf16.mxu1 %v2890_v52  ;;  %2646 = vmatprep.mubr.bf16.mxu1 %v2894_v55 }
  0x3b   : > { %2546 = vmatprep.subr.bf16.mxu0 %v2910_v5 }
  0x3c   : > { %2547 = vmatpush3.bf16.msra.mxu0 %v2911_v6 }
  0x3d   : > { %2469 = vmatpush3.bf16.msra.mxu1 %v2891_v53  ;;  %2548 = vmatprep.subr.bf16.mxu0 %v2916_v10 }
  0x3e   : > { %2470 = vmatprep.subr.bf16.mxu1 %v2897_v58 }
  0x40   : > { %697 = vmatmul.mubr.bf16.gmra.mrb[12].mxu0 %v3197_v56  ;;  %2647 = vmatmul.mubr.bf16.gmra.mrb[12].mxu1 %v2896_v57 }
  0x41   : > { %2471 = vmatpush3.bf16.msra.mxu1 %v2899_v60  ;;  %704 = vmatprep.mubr.bf16.mxu0 %v3220_v0 }
  0x42   : > { %2472 = vmatprep.subr.bf16.mxu1 %v2901_v62  ;;  %1138 = vmatprep.mubr.bf16.mxu1 %v2907_v2 }
  0x43   : > { %2549 = vmatpush3.bf16.msra.mxu0 %v2917_v11 }
  0x44   : > { %2550 = vmatprep.subr.bf16.mxu0 %v2922_v14 }
  0x45   : > { %2473 = vmatpush3.bf16.msra.mxu1 %v2902_v63 }
  0x46   : > { %2650 = vmatprep.subr.bf16.mxu1 %v2909_v4 }
  0x47   : > { %2551 = vmatpush3.bf16.msra.mxu0 %v2923_v15 }
  0x48   : > { %705 = vmatmul.mubr.bf16.gmra.mrb[16].mxu0 %v3225_v3  ;;  %1139 = vmatmul.mubr.bf16.vlgmr.msra.gmra.mrb[16].mxu1 %v2905_v1 }
  0x49   : > { %2651 = vmatpush3.bf16.msra.mxu1 %v2909_v4  ;;  %712 = vmatprep.mubr.bf16.mxu0 %v3239_v7 }
  0x4a   : > { %1146 = vmatprep.mubr.bf16.mxu1 %v3105_v23  ;;  %2652 = vmatprep.subr.bf16.mxu1 %v2915_v9  ;;  %v2932_v23 = vld [vmem:[%s3403_s1 + $0xa8] sm:$0xff]  }
  0x4b   : > { %2552 = vmatprep.subr.bf16.mxu0 %v2928_v19 }
  0x4c   : > { %2553 = vmatpush3.bf16.msra.mxu0 %v2929_v20 }
  0x4d   : > { %2653 = vmatpush3.bf16.msra.mxu1 %v2915_v9  ;;  %2682 = vmatprep.subr.bf16.mxu0 %v3292_v22 }
  0x4e   : > { %2654 = vmatprep.subr.bf16.mxu1 %v2921_v13 }
  0x50   : > { %713 = vmatmul.mubr.bf16.gmra.mrb[20].mxu0 %v3243_v8  ;;  %1147 = vmatmul.mubr.bf16.gmra.mrb[20].mxu1 %v3116_v27  ;;  %v2933_v27 = vld [vmem:[%s3403_s1 + $0x208] sm:$0xff]  }
  0x51   : > { %720 = vmatprep.mubr.bf16.mxu0 %v3256_v12  ;;  %1154 = vmatprep.mubr.bf16.mxu1 %v3132_v33 }
  0x52   : > { %2655 = vmatpush3.bf16.msra.mxu1 %v2921_v13 }
  0x53   : > { %2656 = vmatprep.subr.bf16.mxu1 %v2927_v17 }
  0x56   : > { %2657 = vmatpush3.bf16.msra.mxu1 %v2927_v17 }
  0x57   : > { %2658 = vmatprep.subr.bf16.mxu1 %v2930_v21 }
  0x58   : > { %721 = vmatmul.mubr.bf16.gmra.mrb[24].mxu0 %v3272_v16  ;;  %1155 = vmatmul.mubr.bf16.gmra.mrb[24].mxu1 %v3141_v36 }
  0x59   : > { %728 = vmatprep.mubr.bf16.mxu0 %v3278_v18  ;;  %1162 = vmatprep.mubr.bf16.mxu1 %v3161_v43 }
  0x5a   : > { %2659 = vmatpush3.bf16.msra.mxu1 %v2930_v21 }
  0x5b   : > { %2660 = vmatprep.subr.bf16.mxu1 %v2932_v23 }
  0x5e   : > { %2661 = vmatpush3.bf16.msra.mxu1 %v2932_v23 }
  0x5f   : > { %2662 = vmatprep.subr.bf16.mxu1 %v2934_v25 }
  0x60   : > { %729 = vmatmul.mubr.bf16.gmra.mrb[28].mxu0 %v3303_v24  ;;  %1163 = vmatmul.mubr.bf16.gmra.mrb[28].mxu1 %v3169_v46 }
  0x61   : > { %1170 = vmatprep.mubr.bf16.mxu1 %v3192_v54  ;;  %1691 = vmatprep.mubr.bf16.mxu0 %v3132_v33  ;;  %v2938_v33 = vld [vmem:[%s3096_s11 + $0x8] ss:$12 sps:$4 sm:$0xff]  }
  0x62   : > { %2663 = vmatpush3.bf16.msra.mxu1 %v2934_v25 }
  0x63   : > { %2664 = vmatprep.subr.bf16.mxu1 %v2936_v26 }
  0x66   : > { %2665 = vmatpush3.bf16.msra.mxu1 %v2936_v26 }
  0x67   : > { %2714 = vmatprep.subr.bf16.mxu1 %v3292_v22 }
  0x68   : > { %1171 = vmatmul.mubr.bf16.gmra.mrb[32].mxu1 %v3197_v56  ;;  %1692 = vmatmul.mubr.bf16.vlgmr.msra.gmra.mrb[32].mxu0 %v3141_v36  ;;  %v2941_v36 = vld [vmem:[%s3096_s11 + $0x38] ss:$12 sps:$4 sm:$0xff]  }
  0x69   : > { %2683 = vmatpush3.bf16.msra.mxu0 %v3292_v22  ;;  %1178 = vmatprep.mubr.bf16.mxu1 %v3220_v0 }
  0x6a   : > { %1699 = vmatprep.mubr.bf16.mxu0 %v3161_v43  ;;  %2684 = vmatprep.subr.bf16.mxu0 %v2933_v27  ;;  %v2951_v43 = vld [vmem:[%s3096_s11 + $0xd8] ss:$12 sps:$4 sm:$0xff]  }
  0x6d   : > { %2685 = vmatpush3.bf16.msra.mxu0 %v2933_v27 }
  0x6e   : > { %2686 = vmatprep.subr.bf16.mxu0 %v2935_v28 }
  0x70   : > { %1179 = vmatmul.mubr.bf16.gmra.mrb[36].mxu1 %v3225_v3  ;;  %1700 = vmatmul.mubr.bf16.gmra.mrb[36].mxu0 %v3169_v46  ;;  %v2955_v46 = vld [vmem:[%s3096_s11 + $0x50] ss:$12 sps:$4 sm:$0xff]  }
  0x71   : > { %1186 = vmatprep.mubr.bf16.mxu1 %v3239_v7  ;;  %1707 = vmatprep.mubr.bf16.mxu0 %v3192_v54 }
  0x72   : > { %2687 = vmatpush3.bf16.msra.mxu0 %v2935_v28 }
  0x73   : > { %2688 = vmatprep.subr.bf16.mxu0 %v2937_v29 }
  0x76   : > { %2689 = vmatpush3.bf16.msra.mxu0 %v2937_v29 }
  0x77   : > { %2690 = vmatprep.subr.bf16.mxu0 %v2940_v30 }
  0x78   : > { %1187 = vmatmul.mubr.bf16.gmra.mrb[40].mxu1 %v3243_v8  ;;  %1708 = vmatmul.mubr.bf16.gmra.mrb[40].mxu0 %v3197_v56 }
  0x79   : > { %1194 = vmatprep.mubr.bf16.mxu1 %v3256_v12  ;;  %1715 = vmatprep.mubr.bf16.mxu0 %v3220_v0 }
  0x7a   : > { %2691 = vmatpush3.bf16.msra.mxu0 %v2940_v30 }
  0x7b   : > { %2692 = vmatprep.subr.bf16.mxu0 %v2943_v31 }
  0x7e   : > { %2693 = vmatpush3.bf16.msra.mxu0 %v2943_v31 }
  0x7f   : > { %2694 = vmatprep.subr.bf16.mxu0 %v2946_v32 }
  0x80   : > { %1195 = vmatmul.mubr.bf16.gmra.mrb[44].mxu1 %v3272_v16  ;;  %1716 = vmatmul.mubr.bf16.gmra.mrb[44].mxu0 %v3225_v3 }
  0x81   : > { %2666 = vmatprep.mubr.bf16.mxu1 %v2938_v33  ;;  %1723 = vmatprep.mubr.bf16.mxu0 %v3239_v7 }
  0x82   : > { %2695 = vmatpush3.bf16.msra.mxu0 %v2946_v32 }
  0x83   : > { %2696 = vmatprep.subr.bf16.mxu0 %v2952_v34 }
  0x86   : > { %2697 = vmatpush3.bf16.msra.mxu0 %v2952_v34 }
  0x88   : > { %2667 = vmatmul.mubr.bf16.vlgmr.msra.gmra.mrb[0].mxu1 %v2939_v35  ;;  %1724 = vmatmul.mubr.bf16.gmra.mrb[48].mxu0 %v3243_v8 }
  0x89   : > { %2722 = vmatpush3.bf16.msra.mxu1 %v3292_v22  ;;  %2670 = vmatprep.mubr.bf16.mxu1 %v2941_v36 }
  0x8a   : > { %2715 = vmatprep.subr.bf16.mxu1 %v2933_v27  ;;  %1731 = vmatprep.mubr.bf16.mxu0 %v3256_v12 }
  0x8d   : > { %2723 = vmatpush3.bf16.msra.mxu1 %v2933_v27 }
  0x8e   : > { %2716 = vmatprep.subr.bf16.mxu1 %v2935_v28 }
  0x90   : > { %2671 = vmatmul.mubr.bf16.gmra.mrb[4].mxu1 %v2942_v37  ;;  %1732 = vmatmul.mubr.bf16.gmra.mrb[52].mxu0 %v3272_v16 }
  0x91   : > { %2724 = vmatpush3.bf16.msra.mxu1 %v2935_v28  ;;  %2674 = vmatprep.mubr.bf16.mxu1 %v2944_v38 }
  0x92   : > { %2717 = vmatprep.subr.bf16.mxu1 %v2937_v29  ;;  %1739 = vmatprep.mubr.bf16.mxu0 %v3278_v18 }
  0x95   : > { %2725 = vmatpush3.bf16.msra.mxu1 %v2937_v29 }
  0x96   : > { %2718 = vmatprep.subr.bf16.mxu1 %v2940_v30 }
  0x98   : > { %2675 = vmatmul.mubr.bf16.gmra.mrb[8].mxu1 %v2945_v39  ;;  %1740 = vmatmul.mubr.bf16.gmra.mrb[56].mxu0 %v3303_v24 }
  0x99   : > { %2726 = vmatpush3.bf16.msra.mxu1 %v2940_v30  ;;  %2678 = vmatprep.mubr.bf16.mxu1 %v2947_v40 }
  0x9a   : > { %2719 = vmatprep.subr.bf16.mxu1 %v2943_v31  ;;  %1747 = vmatprep.mubr.bf16.mxu0 %v2948_v41 }
  0x9d   : > { %2727 = vmatpush3.bf16.msra.mxu1 %v2943_v31 }
  0x9e   : > { %2720 = vmatprep.subr.bf16.mxu1 %v2946_v32 }
  0xa0   : > { %2679 = vmatmul.mubr.bf16.gmra.mrb[12].mxu1 %v2950_v42  ;;  %1748 = vmatmul.mubr.bf16.gmra.mrb[60].mxu0 %v2951_v43 }
  0xa1   : > { %2728 = vmatpush3.bf16.msra.mxu1 %v2946_v32  ;;  %2698 = vmatprep.mubr.bf16.mxu0 %v2953_v44 }
  0xa2   : > { %2721 = vmatprep.subr.bf16.mxu1 %v2952_v34  ;;  %2706 = vmatprep.mubr.bf16.mxu1 %v2954_v45 }
  0xa5   : > { %2729 = vmatpush3.bf16.msra.mxu1 %v2952_v34 }
  0xa8   : > { %2699 = vmatmul.mubr.bf16.vlgmr.msra.gmra.mrb[64].mxu0 %v2955_v46  ;;  %2707 = vmatmul.mubr.bf16.vlgmr.msra.gmra.mrb[8].mxu1 %v2956_v47 }
  0xa9   : > { %2702 = vmatprep.mubr.bf16.mxu0 %v2957_v48  ;;  %2710 = vmatprep.mubr.bf16.mxu1 %v2958_v49 }
  0xb0   : > { %2703 = vmatmul.mubr.bf16.gmra.mrb[68].mxu0 %v2959_v50  ;;  %2711 = vmatmul.mubr.bf16.gmra.mrb[12].mxu1 %v2960_v51 }
  0xfb   : > { %v2394_v52 = vpop.f32.mrb[0].mxu0 }
  0xfc   : > { %v2395_v53 = vpop.f32.mrb[1].mxu0 }
  0xfd   : > { %v2396_v54 = vadd.f32 %v2395_v53, %v2394_v52  ;;  %v2397_v55 = vpop.f32.mrb[2].mxu0 }
  0xfe   : > { %v2398_v56 = vpop.f32.mrb[3].mxu0 }
 0x103   : > { %v2400_v57 = vpop.f32.mrb[4].mxu0 }
 0x104   : > { %v2401_v58 = vpop.f32.mrb[5].mxu0 }
 0x105   : > { %v2402_v59 = vadd.f32 %v2401_v58, %v2400_v57  ;;  %v2403_v60 = vpop.f32.mrb[6].mxu0 }
 0x106   : > { %v2404_v61 = vpop.f32.mrb[7].mxu0 }
 0x10b   : > { %v2406_v62 = vpop.f32.mrb[8].mxu0 }
 0x10c   : > { %v2407_v63 = vpop.f32.mrb[9].mxu0 }
 0x10d   : > { %v2408_v0 = vadd.f32 %v2407_v63, %v2406_v62  ;;  %v2409_v1 = vpop.f32.mrb[10].mxu0 }
 0x10e   : > { %v2410_v2 = vpop.f32.mrb[11].mxu0 }
 0x113   : > { %v2412_v3 = vpop.f32.mrb[12].mxu0 }
 0x114   : > { %v2413_v4 = vpop.f32.mrb[13].mxu0 }
 0x115   : > { %v2414_v5 = vadd.f32 %v2413_v4, %v2412_v3  ;;  %v2415_v6 = vpop.f32.mrb[14].mxu0 }
 0x116   : > { %v2416_v7 = vpop.f32.mrb[15].mxu0 }
 0x11b   : > { %v2418_v8 = vpop.f32.mrb[16].mxu0  ;;  %v2474_v9 = vpop.f32.mrb[16].mxu1 }
 0x11c   : > { %v2419_v10 = vpop.f32.mrb[17].mxu0  ;;  %v2475_v11 = vpop.f32.mrb[17].mxu1 }
 0x11d   : > { %v2420_v12 = vadd.f32 %v2419_v10, %v2418_v8  ;;  %v2476_v13 = vadd.f32 %v2475_v11, %v2474_v9  ;;  %v2421_v14 = vpop.f32.mrb[18].mxu0  ;;  %v2477_v15 = vpop.f32.mrb[18].mxu1 }
 0x11e   : > { %v2422_v16 = vpop.f32.mrb[19].mxu0  ;;  %v2478_v17 = vpop.f32.mrb[19].mxu1 }
 0x11f   : > { %v3377_v18 = vadd.f32 %v2476_v13, %v2396_v54 }
 0x123   : > { %v2424_v19 = vpop.f32.mrb[20].mxu0  ;;  %v2480_v20 = vpop.f32.mrb[20].mxu1 }
 0x124   : > { %v2425_v21 = vpop.f32.mrb[21].mxu0  ;;  %v2481_v22 = vpop.f32.mrb[21].mxu1 }
 0x125   : > { %v2426_v23 = vadd.f32 %v2425_v21, %v2424_v19  ;;  %v2482_v24 = vadd.f32 %v2481_v22, %v2480_v20  ;;  %v2427_v25 = vpop.f32.mrb[22].mxu0  ;;  %v2483_v26 = vpop.f32.mrb[22].mxu1 }
 0x126   : > { %v2428_v27 = vpop.f32.mrb[23].mxu0  ;;  %v2484_v28 = vpop.f32.mrb[23].mxu1 }
 0x127   : > { %v3379_v29 = vadd.f32 %v2482_v24, %v2402_v59 }
 0x12b   : > { %v2430_v30 = vpop.f32.mrb[24].mxu0  ;;  %v2486_v31 = vpop.f32.mrb[24].mxu1 }
 0x12c   : > { %v2431_v32 = vpop.f32.mrb[25].mxu0  ;;  %v2487_v33 = vpop.f32.mrb[25].mxu1 }
 0x12d   : > { %v2432_v34 = vadd.f32 %v2431_v32, %v2430_v30  ;;  %v2488_v35 = vadd.f32 %v2487_v33, %v2486_v31  ;;  %v2433_v36 = vpop.f32.mrb[26].mxu0  ;;  %v2489_v37 = vpop.f32.mrb[26].mxu1 }
 0x12e   : > { %v2434_v38 = vpop.f32.mrb[27].mxu0  ;;  %v2490_v39 = vpop.f32.mrb[27].mxu1 }
 0x12f   : > { %v3381_v40 = vadd.f32 %v2488_v35, %v2408_v0 }
 0x133   : > { %v2436_v41 = vpop.f32.mrb[28].mxu0  ;;  %v2492_v42 = vpop.f32.mrb[28].mxu1 }
 0x134   : > { %v2437_v43 = vpop.f32.mrb[29].mxu0  ;;  %v2493_v44 = vpop.f32.mrb[29].mxu1 }
 0x135   : > { %v2438_v45 = vadd.f32 %v2437_v43, %v2436_v41  ;;  %v2494_v46 = vadd.f32 %v2493_v44, %v2492_v42  ;;  %v2439_v47 = vpop.f32.mrb[30].mxu0  ;;  %v2495_v48 = vpop.f32.mrb[30].mxu1 }
 0x136   : > { %v2440_v49 = vpop.f32.mrb[31].mxu0  ;;  %v2496_v50 = vpop.f32.mrb[31].mxu1 }
 0x137   : > { %v2746_v51 = vadd.f32 %v2494_v46, %v2414_v5 }
 0x13b   : > { %v2498_v52 = vpop.f32.mrb[32].mxu1  ;;  %v2554_v53 = vpop.f32.mrb[32].mxu0 }
 0x13c   : > { %v2499_v54 = vpop.f32.mrb[33].mxu1  ;;  %v2555_v55 = vpop.f32.mrb[33].mxu0 }
 0x13d   : > { %v2500_v56 = vadd.f32 %v2499_v54, %v2498_v52  ;;  %v2556_v57 = vadd.f32 %v2555_v55, %v2554_v53  ;;  %v2501_v58 = vpop.f32.mrb[34].mxu1  ;;  %v2557_v59 = vpop.f32.mrb[34].mxu0 }
 0x13e   : > { %v2502_v60 = vpop.f32.mrb[35].mxu1  ;;  %v2558_v61 = vpop.f32.mrb[35].mxu0 }
 0x13f   : > { %v2765_v62 = vadd.f32 %v2500_v56, %v2420_v12 }
 0x143   : > { %v2504_v63 = vpop.f32.mrb[36].mxu1  ;;  %v2560_v0 = vpop.f32.mrb[36].mxu0 }
 0x144   : > { %v2505_v1 = vpop.f32.mrb[37].mxu1  ;;  %v2561_v2 = vpop.f32.mrb[37].mxu0 }
 0x145   : > { %v2506_v3 = vadd.f32 %v2505_v1, %v2504_v63  ;;  %v2562_v4 = vadd.f32 %v2561_v2, %v2560_v0  ;;  %v2507_v6 = vpop.f32.mrb[38].mxu1  ;;  %v2563_v7 = vpop.f32.mrb[38].mxu0 }
 0x146   : > { %v2508_v5 = vpop.f32.mrb[39].mxu1  ;;  %v2564_v8 = vpop.f32.mrb[39].mxu0 }
 0x147   : > { %v2762_v9 = vadd.f32 %v2506_v3, %v2426_v23 }
 0x14b   : > { %v2510_v10 = vpop.f32.mrb[40].mxu1  ;;  %v2566_v11 = vpop.f32.mrb[40].mxu0 }
 0x14c   : > { %v2511_v13 = vpop.f32.mrb[41].mxu1  ;;  %v2567_v14 = vpop.f32.mrb[41].mxu0 }
 0x14d   : > { %v2512_v15 = vadd.f32 %v2511_v13, %v2510_v10  ;;  %v2568_v16 = vadd.f32 %v2567_v14, %v2566_v11  ;;  %v2513_v17 = vpop.f32.mrb[42].mxu1  ;;  %v2569_v19 = vpop.f32.mrb[42].mxu0  ;;  %v2374_v10 = vld [vmem:[%s3404_s2] ss:$0 sm:$0xff] }
 0x14e   : > { %v2514_v12 = vpop.f32.mrb[43].mxu1  ;;  %v2570_v20 = vpop.f32.mrb[43].mxu0 }
 0x14f   : > { %v2777_v21 = vadd.f32 %v2512_v15, %v2432_v34 }
 0x153   : > { %v2516_v22 = vpop.f32.mrb[44].mxu1  ;;  %v2572_v24 = vpop.f32.mrb[44].mxu0 }
 0x154   : > { %v2517_v25 = vpop.f32.mrb[45].mxu1  ;;  %v2573_v26 = vpop.f32.mrb[45].mxu0 }
 0x155   : > { %v2518_v27 = vadd.f32 %v2517_v25, %v2516_v22  ;;  %v2574_v28 = vadd.f32 %v2573_v26, %v2572_v24  ;;  %v2519_v30 = vpop.f32.mrb[46].mxu1  ;;  %v2575_v31 = vpop.f32.mrb[46].mxu0 }
 0x156   : > { %v2520_v23 = vpop.f32.mrb[47].mxu1  ;;  %v2576_v32 = vpop.f32.mrb[47].mxu0 }
 0x157   : > { %v2774_v33 = vadd.f32 %v2518_v27, %v2438_v45 }
 0x15b   : > { %v2668_v35 = vpop.f32.mrb[0].mxu1  ;;  %v2578_v36 = vpop.f32.mrb[48].mxu0 }
 0x15c   : > { %v2731_v37 = vadd.f32 %v3379_v29, %v2668_v35  ;;  %v1237_v38 = vpop.f32.mrb[1].mxu1  ;;  %v2579_v39 = vpop.f32.mrb[49].mxu0 }
 0x15d   : > { %v2735_v41 = vadd.f32 %v3377_v18, %v1237_v38  ;;  %v2580_v34 = vadd.f32 %v2579_v39, %v2578_v36  ;;  %v2669_v42 = vpop.f32.mrb[2].mxu1  ;;  %v2581_v43 = vpop.f32.mrb[50].mxu0 }
 0x15e   : > { %v1240_v44 = vpop.f32.mrb[3].mxu1  ;;  %v2582_v46 = vpop.f32.mrb[51].mxu0  ;;  %v2732_v47 = vadd.f32 %v2731_v37, %v2562_v4 }
 0x15f   : > { %v2736_v48 = vadd.f32 %v2735_v41, %v2556_v57  ;;  %v2766_v49 = vadd.f32 %v2765_v62, %v2580_v34 }
 0x163   : > { %v2672_v50 = vpop.f32.mrb[4].mxu1  ;;  %v2584_v52 = vpop.f32.mrb[52].mxu0 }
 0x164   : > { %v2747_v53 = vadd.f32 %v2746_v51, %v2672_v50  ;;  %v1253_v45 = vpop.f32.mrb[5].mxu1  ;;  %v2585_v54 = vpop.f32.mrb[53].mxu0 }
 0x165   : > { %v2751_v55 = vadd.f32 %v3381_v40, %v1253_v45  ;;  %v2586_v29 = vadd.f32 %v2585_v54, %v2584_v52  ;;  %v2673_v56 = vpop.f32.mrb[6].mxu1  ;;  %v2587_v58 = vpop.f32.mrb[54].mxu0 }
 0x166   : > { %v1256_v59 = vpop.f32.mrb[7].mxu1  ;;  %v2588_v18 = vpop.f32.mrb[55].mxu0  ;;  %v2748_v60 = vadd.f32 %v2747_v53, %v2574_v28 }
 0x167   : > { %v2763_v61 = vadd.f32 %v2762_v9, %v2586_v29  ;;  %v2752_v63 = vadd.f32 %v2751_v55, %v2568_v16 }
 0x16b   : > { %v2590_v0 = vpop.f32.mrb[56].mxu0 }
 0x16c   : > { %v2591_v1 = vpop.f32.mrb[57].mxu0 }
 0x16d   : > { %v2592_v2 = vadd.f32 %v2591_v1, %v2590_v0  ;;  %v2593_v57 = vpop.f32.mrb[58].mxu0 }
 0x16e   : > { %v2594_v62 = vpop.f32.mrb[59].mxu0 }
 0x16f   : > { %v2778_v3 = vadd.f32 %v2777_v21, %v2592_v2 }
 0x173   : > { %v2596_v4 = vpop.f32.mrb[60].mxu0 }
 0x174   : > { %v2597_v51 = vpop.f32.mrb[61].mxu0 }
 0x175   : > { %v2598_v6 = vadd.f32 %v2597_v51, %v2596_v4  ;;  %v2599_v7 = vpop.f32.mrb[62].mxu0 }
 0x176   : > { %v2600_v5 = vpop.f32.mrb[63].mxu0 }
 0x177   : > { %v2775_v40 = vadd.f32 %v2774_v33, %v2598_v6 }
 0x17b   : > { %v2700_v8 = vpop.f32.mrb[64].mxu0  ;;  %v2708_v11 = vpop.f32.mrb[8].mxu1 }
 0x17c   : > { %v2733_v9 = vadd.f32 %v2732_v47, %v2700_v8  ;;  %v2764_v13 = vadd.f32 %v2763_v61, %v2708_v11  ;;  %v1790_v14 = vpop.f32.mrb[65].mxu0  ;;  %v1822_v15 = vpop.f32.mrb[9].mxu1 }
 0x17d   : > { %v2737_v16 = vadd.f32 %v2736_v48, %v1790_v14  ;;  %v2767_v17 = vadd.f32 %v2766_v49, %v1822_v15  ;;  %v2701_v19 = vpop.f32.mrb[66].mxu0  ;;  %v2709_v12 = vpop.f32.mrb[10].mxu1 }
 0x17e   : > { %v1878_v20 = vadd.f32 %v2733_v9, %v2374_v10  ;;  %v1886_v21 = vadd.f32 %v2764_v13, %v2374_v10  ;;  %v1793_v22 = vpop.f32.mrb[67].mxu0  ;;  %v1825_v24 = vpop.f32.mrb[11].mxu1 }
 0x17f   : > { %v1876_v25 = vadd.f32 %v2737_v16, %v2374_v10  ;;  %v1884_v26 = vadd.f32 %v2767_v17, %v2374_v10 }
 0x180   : > { %v1894_v27 = vmax.f32 %v1878_v20, 0.0  ;;  %v1902_v28 = vmax.f32 %v1886_v21, 0.0 }
 0x181   : > { %v1892_v30 = vmax.f32 %v1876_v25, 0.0  ;;  %v1900_v31 = vmax.f32 %v1884_v26, 0.0 }
 0x182   : > { %1910 = vst [vmem:[#allocation2 + $0x10] sm:$0xff] %v1894_v27  ;;  %1918 = vst [vmem:[#allocation2 + $0x50] sm:$0xff] %v1902_v28 }
 0x183   : > { %1908 = vst [vmem:[#allocation2] sm:$0xff] %v1892_v30  ;;  %1916 = vst [vmem:[#allocation2 + $0x40] sm:$0xff] %v1900_v31  ;;  %v2704_v23 = vpop.f32.mrb[68].mxu0  ;;  %v2712_v32 = vpop.f32.mrb[12].mxu1 }
 0x184   : > { %v2749_v33 = vadd.f32 %v2748_v60, %v2704_v23  ;;  %v2776_v35 = vadd.f32 %v2775_v40, %v2712_v32  ;;  %v1806_v36 = vpop.f32.mrb[69].mxu0  ;;  %v1838_v37 = vpop.f32.mrb[13].mxu1 }
 0x185   : > { %v2753_v38 = vadd.f32 %v2752_v63, %v1806_v36  ;;  %v2779_v39 = vadd.f32 %v2778_v3, %v1838_v37  ;;  %v2705_v41 = vpop.f32.mrb[70].mxu0  ;;  %v2713_v34 = vpop.f32.mrb[14].mxu1 }
 0x186   : > { %v1882_v42 = vadd.f32 %v2749_v33, %v2374_v10  ;;  %v1890_v43 = vadd.f32 %v2776_v35, %v2374_v10  ;;  %v1809_v44 = vpop.f32.mrb[71].mxu0  ;;  %v1841_v46 = vpop.f32.mrb[15].mxu1 }
 0x187   : > { %v1880_v52 = vadd.f32 %v2753_v38, %v2374_v10  ;;  %v1888_v53 = vadd.f32 %v2779_v39, %v2374_v10 }
 0x188   : > { %v1898_v47 = vmax.f32 %v1882_v42, 0.0  ;;  %v1906_v48 = vmax.f32 %v1890_v43, 0.0 }
 0x189   : > { %v1926_v49 = vld [vmem:[#allocation2 + $0x10] ss:$2 sm:$0xf]  ;;  %v1942_v50 = vld [vmem:[#allocation2 + $0x11] ss:$2 sm:$0xf] }
 0x18a   : > { %v1956_v45 = vmax.f32 %v1926_v49, %v1942_v50  ;;  %v1934_v54 = vld [vmem:[#allocation2 + $0x50] ss:$2 sm:$0xf]  ;;  %v1950_v55 = vld [vmem:[#allocation2 + $0x51] ss:$2 sm:$0xf] }
 0x18b   : > { %1914 = vst [vmem:[#allocation2 + $0x30] sm:$0xff] %v1898_v47  ;;  %1922 = vst [vmem:[#allocation2 + $0x70] sm:$0xff] %v1906_v48  ;;  %v1960_v29 = vmax.f32 %v1934_v54, %v1950_v55  ;;  %v1924_v56 = vld [vmem:[#allocation2] ss:$2 sm:$0xf]  ;;  %v1896_v63 = vmax.f32 %v1880_v52, 0.0 }
 0x18c   : > { %v1940_v58 = vld [vmem:[#allocation2 + $0x1] ss:$2 sm:$0xf]  ;;  %v1932_v18 = vld [vmem:[#allocation2 + $0x40] ss:$2 sm:$0xf] }
 0x18d   : > { %v1955_v59 = vmax.f32 %v1924_v56, %v1940_v58  ;;  %v1948_v60 = vld [vmem:[#allocation2 + $0x41] ss:$2 sm:$0xf]  ;;  %v1904_v0 = vmax.f32 %v1888_v53, 0.0  ;;  %1912 = vst [vmem:[#allocation2 + $0x20] sm:$0xff] %v1896_v63 }
 0x18e   : > { %v1959_v61 = vmax.f32 %v1932_v18, %v1948_v60 }
 0x18f   : > { %v1963_v1 = vmax.f32 %v1955_v59, %v1956_v45  ;;  %1920 = vst [vmem:[#allocation2 + $0x60] sm:$0xff] %v1904_v0 }
 0x190   : > { %v1965_v2 = vmax.f32 %v1959_v61, %v1960_v29 }
 0x191   : > { %v1967_v57 = vpack.c.bf16 %v1963_v1, %v1963_v1 }
 0x192   : > { %v1969_v62 = vpack.c.bf16 %v1965_v2, %v1965_v2  ;;  %v1930_v3 = vld [vmem:[#allocation2 + $0x30] ss:$2 sm:$0xf]  ;;  %v1946_v4 = vld [vmem:[#allocation2 + $0x31] ss:$2 sm:$0xf] }
 0x193   : > { %1971 = vst [vmem:[%s192_s6] sm:$0x3] %v1967_v57  ;;  %v1938_v51 = vld [vmem:[#allocation2 + $0x70] ss:$2 sm:$0xf]  ;;  %v1958_v7 = vmax.f32 %v1930_v3, %v1946_v4 }
 0x194   : > { %1973 = vst [vmem:[%s192_s6 + $0x4] sm:$0x3] %v1969_v62  ;;  %v1954_v6 = vld [vmem:[#allocation2 + $0x71] ss:$2 sm:$0xf] }
 0x195   : > { %v1962_v5 = vmax.f32 %v1938_v51, %v1954_v6  ;;  %v1928_v40 = vld [vmem:[#allocation2 + $0x20] ss:$2 sm:$0xf]  ;;  %v1944_v8 = vld [vmem:[#allocation2 + $0x21] ss:$2 sm:$0xf] }
 0x196   : > { %v1957_v10 = vmax.f32 %v1928_v40, %v1944_v8  ;;  %v1936_v11 = vld [vmem:[#allocation2 + $0x60] ss:$2 sm:$0xf]  ;;  %v1952_v9 = vld [vmem:[#allocation2 + $0x61] ss:$2 sm:$0xf] }
 0x197   : > { %v1961_v13 = vmax.f32 %v1936_v11, %v1952_v9 }
 0x198   : > { %v1964_v14 = vmax.f32 %v1957_v10, %v1958_v7 }
 0x199   : > { %v1966_v15 = vmax.f32 %v1961_v13, %v1962_v5 }
 0x19a   : > { %v1968_v16 = vpack.c.bf16 %v1964_v14, %v1964_v14 }
 0x19b   : > { %v1970_v17 = vpack.c.bf16 %v1966_v15, %v1966_v15 }
 0x19c   : > { %1972 = vst [vmem:[%s192_s6 + $0x2] sm:$0x3] %v1968_v16 }
 0x19d   : > { %1974 = vst [vmem:[%s192_s6 + $0x6] sm:$0x3] %v1970_v17 }
 0x19e PF: > { %s13_s14 = sadd.s32 1, %s2983_s14   ;;  %s3406_s12 = smov %s2979_s13 }
 0x19f   : > { %p10_p5 = scmp.ge.s32.totalorder %s13_s14, 4   ;;  %s3407_s13 = smov %s3409_s15 }
 0x1a1   :  { %12 = sbr.rel (!%p10_p5) target bundleno = 2 (0x2), region = 82 }

// kernel: _lambda_.13
= control target key start
LH: loop header
LB: loop body
LE: loop exit
PB: predicated region body
PF: predicated region fallthrough
CT: control target
= control target key end

     0   :  { %s1121_s12 = smov 0   ;;  %s1123_s13 = smov 0   ;;  %s1345_s0 = inlined_call_operand.vmem [shape: bf16[2,48,192], index: 0, kind: input, shape index: {}]   ;;  %s1346_s1 = inlined_call_operand.vmem [shape: bf16[3,192,64], index: 1, kind: input, shape index: {}]   ;;  %s1347_s2 = inlined_call_operand.vmem [shape: f32[1,64], index: 2, kind: input, shape index: {}]   ;;  %s1348_s3 = inlined_call_operand.vmem [shape: bf16[2,4,4,64], index: 3, kind: output, shape index: {}]  }
   0x1   :  { %s1125_s14 = smov 0  }
   0x2 LB: > { %s25_s15 = sadd.s32 1, %s1094_s13  ;;  %p862_p0 = scmp.ge.s32.totalorder %s1098_s14, 1  ;;  %s1098_s14 = sphi %s1125_s14, %s13_s14   ;;  %s1094_s13 = sphi %s1123_s13, %s1350_s13   ;;  %s1090_s12 = sphi %s1121_s12, %s1349_s12  }
   0x3   : > { %p27_p1 = scmp.ge.s32.totalorder %s25_s15, 2  ;;  %p151_p2 = scmp.lt.s32.totalorder %s1098_s14, 3 }
   0x5   : > { %s1352_s15 = smov (%p27_p1, %s25_s15), 0  ;;  %p152_p3 = pnand %p862_p0, %p151_p2 }
   0x6   : > { %v1030_v0 = vld [vmem:[%s1346_s1 + $0x60] sm:$0xff] (!%p152_p3)   ;;  %v1100_v1 = vmov (!%p152_p3), 0   ;;  %v1032_v3 = vld [vmem:[%s1346_s1 + $0x68] sm:$0xff] (!%p152_p3)   ;;  %v1034_v5 = vld [vmem:[%s1346_s1 + $0x70] sm:$0xff] (!%p152_p3)   ;;  %p179_p4 = scmp.lt.s32.totalorder (!%p152_p3), %s1090_s12, 1  ;;  %vm354_vm0 = vcmask (!%p152_p3), 523264  }
   0x7   : > { %155 = sbr.rel (%p152_p3) target bundleno = 334 (0x14e), region = 32  ;;  %361 = vmatprep.subr.bf16.mxu0 (!%p152_p3), %v1100_v1  ;;  %506 = vmatprep.subr.bf16.mxu1 (!%p152_p3), %v1100_v1  ;;  %v1031_v2 = vld [vmem:[%s1346_s1] sm:$0xff] (!%p152_p3)   ;;  %v1033_v4 = vld [vmem:[%s1346_s1 + $0x8] sm:$0xff] (!%p152_p3)   ;;  %v1035_v6 = vld [vmem:[%s1346_s1 + $0x10] sm:$0xff] (!%p152_p3)   ;;  %vm766_vm1 = vcmask (!%p152_p3), 517120  }
   0x8   : > { %362 = vmatpush1.bf16.msra.mxu0 (!%p152_p3), %v1030_v0  ;;  %507 = vmatpush1.bf16.msra.mxu1 (!%p152_p3), %v1031_v2  ;;  %v1036_v7 = vld [vmem:[%s1346_s1 + $0x78] sm:$0xff] (!%p152_p3)   ;;  %v1038_v9 = vld [vmem:[%s1346_s1 + $0x80] sm:$0xff] (!%p152_p3)   ;;  %v1040_v11 = vld [vmem:[%s1346_s1 + $0x88] sm:$0xff] (!%p152_p3)  }
   0x9   : > { %363 = vmatprep.subr.bf16.mxu0 (!%p152_p3), %v1100_v1  ;;  %508 = vmatprep.subr.bf16.mxu1 (!%p152_p3), %v1100_v1  ;;  %v1037_v8 = vld [vmem:[%s1346_s1 + $0x18] sm:$0xff] (!%p152_p3)   ;;  %v1039_v10 = vld [vmem:[%s1346_s1 + $0x20] sm:$0xff] (!%p152_p3)   ;;  %v1041_v12 = vld [vmem:[%s1346_s1 + $0x28] sm:$0xff] (!%p152_p3)  }
   0xa   : > { %v1042_v13 = vld [vmem:[%s1346_s1 + $0x90] sm:$0xff] (!%p152_p3)   ;;  %v1044_v20 = vld [vmem:[%s1346_s1 + $0x98] sm:$0xff] (!%p152_p3)   ;;  %v1046_v22 = vld [vmem:[%s1346_s1 + $0xa0] sm:$0xff] (!%p152_p3)  }
   0xb   : > { %v1043_v14 = vld [vmem:[%s1346_s1 + $0x30] sm:$0xff] (!%p152_p3)   ;;  %v1045_v21 = vld [vmem:[%s1346_s1 + $0x38] sm:$0xff] (!%p152_p3)   ;;  %v1047_v23 = vld [vmem:[%s1346_s1 + $0x40] sm:$0xff] (!%p152_p3)  }
   0xc   : > { %364 = vmatpush1.bf16.msra.mxu0 (!%p152_p3), %v1032_v3  ;;  %509 = vmatpush1.bf16.msra.mxu1 (!%p152_p3), %v1033_v4  ;;  %v1048_v24 = vld [vmem:[%s1346_s1 + $0xa8] sm:$0xff] (!%p152_p3)   ;;  %v1050_v26 = vld [vmem:[%s1346_s1 + $0xb0] sm:$0xff] (!%p152_p3)   ;;  %v1052_v28 = vld [vmem:[%s1346_s1 + $0xb8] sm:$0xff] (!%p152_p3)  }
   0xd   : > { %365 = vmatprep.subr.bf16.mxu0 (!%p152_p3), %v1100_v1  ;;  %510 = vmatprep.subr.bf16.mxu1 (!%p152_p3), %v1100_v1  ;;  %v1049_v25 = vld [vmem:[%s1346_s1 + $0x48] sm:$0xff] (!%p152_p3)   ;;  %v1051_v27 = vld [vmem:[%s1346_s1 + $0x50] sm:$0xff] (!%p152_p3)   ;;  %v1053_v29 = vld [vmem:[%s1346_s1 + $0x58] sm:$0xff] (!%p152_p3)  }
   0xe   : > { %s1354_s12 = smov (!%p179_p4, %s1090_s12), 1  ;;  %v1058_v34 = vld [vmem:[%s1346_s1 + $0xc0] sm:$0xff]   ;;  %v1059_v37 = vld [vmem:[%s1346_s1 + $0xc8] sm:$0xff]   ;;  %v1060_v39 = vld [vmem:[%s1346_s1 + $0xd0] sm:$0xff]  }
   0xf   : > { %s1004_s9 = smul.u32 48, %s1354_s12  ;;  %v1061_v43 = vld [vmem:[%s1346_s1 + $0xd8] sm:$0xff]   ;;  %v1062_v44 = vld [vmem:[%s1346_s1 + $0xe0] sm:$0xff]   ;;  %v1063_v45 = vld [vmem:[%s1346_s1 + $0xe8] sm:$0xff]   ;;  %s979_s26 = sshll.u32 %s1354_s12, 3 }
  0x10   : > { %366 = vmatpush1.bf16.msra.mxu0 %v1034_v5  ;;  %511 = vmatpush1.bf16.msra.mxu1 %v1035_v6  ;;  %v1064_v46 = vld [vmem:[%s1346_s1 + $0xf0] sm:$0xff]   ;;  %v1065_v47 = vld [vmem:[%s1346_s1 + $0xf8] sm:$0xff]   ;;  %v1066_v48 = vld [vmem:[%s1346_s1 + $0x100] sm:$0xff]   ;;  %s192_s29 = scalar_lea.vmem %s1348_s3, %s979_s26 }
  0x11   : > { %367 = vmatprep.subr.bf16.mxu0 %v1100_v1  ;;  %512 = vmatprep.subr.bf16.mxu1 %v1100_v1  ;;  %s1197_s20 = scalar_lea.vmem %s1345_s0, %s1004_s9  ;;  %v1071_v49 = vld [vmem:[%s1346_s1 + $0x108] sm:$0xff]   ;;  %v1072_v50 = vld [vmem:[%s1346_s1 + $0x110] sm:$0xff]   ;;  %v1073_v51 = vld [vmem:[%s1346_s1 + $0x118] sm:$0xff]  }
  0x12   : > { %v866_v15 = vld [vmem:[%s1197_s20 + $0x8] sm:$0xff]  ;;  %v867_v16 = vld [vmem:[%s1197_s20 + $0x10] sm:$0xff]  ;;  %v201_v17 = vld [vmem:[%s1197_s20] sm:$0xff] }
  0x13   : > { %v895_v18 = vcombine.high %v866_v15, %v867_v16  ;;  %v913_v19 = vcombine.high %v201_v17, %v866_v15  ;;  %v894_v30 = vcombine.low %v866_v15, %v867_v16  ;;  %v868_v31 = vld [vmem:[%s1197_s20 + $0x18] sm:$0xff]  ;;  %v1254_v32 = vld [vmem:[%s1197_s20 + $0x20] sm:$0xff]  ;;  %v912_v33 = vcombine.low %v201_v17, %v866_v15  ;;  %v933_v41 = vld [vmem:[%s1197_s20 + $0x28] sm:$0xff] }
  0x14   : > { %368 = vmatpush1.bf16.msra.mxu0 %v1036_v7  ;;  %513 = vmatpush1.bf16.msra.mxu1 %v1037_v8  ;;  %v897_v35 = vcombine.high %v868_v31, %v1254_v32  ;;  %v915_v36 = vcombine.high %v867_v16, %v868_v31  ;;  %v896_v38 = vcombine.low %v868_v31, %v1254_v32 }
  0x15   : > { %369 = vmatprep.subr.bf16.mxu0 %v1100_v1  ;;  %514 = vmatprep.subr.bf16.mxu1 %v1100_v1  ;;  %v914_v40 = vcombine.low %v867_v16, %v868_v31  ;;  %v961_v42 = vcombine.high %v1254_v32, %v933_v41  ;;  %v960_v52 = vcombine.low %v1254_v32, %v933_v41 }
  0x16   : > { %910 = vmatprep.mubr.msk.bf16.mxu0 %vm354_vm0, %v895_v18  ;;  %928 = vmatprep.mubr.msk.bf16.mxu1 %vm354_vm0, %v913_v19 }
  0x18   : > { %370 = vmatpush1.bf16.msra.mxu0 %v1038_v9  ;;  %515 = vmatpush1.bf16.msra.mxu1 %v1039_v10  ;;  %v976_v10 = vld [vmem:[%s1347_s2] ss:$0 sm:$0xff] }
  0x19   : > { %371 = vmatprep.subr.bf16.mxu0 %v1100_v1  ;;  %516 = vmatprep.subr.bf16.mxu1 %v1100_v1 }
  0x1c   : > { %372 = vmatpush1.bf16.msra.mxu0 %v1040_v11  ;;  %517 = vmatpush1.bf16.msra.mxu1 %v1041_v12 }
  0x1d   : > { %373 = vmatprep.subr.bf16.mxu0 %v1100_v1  ;;  %518 = vmatprep.subr.bf16.mxu1 %v1100_v1 }
  0x20   : > { %374 = vmatpush1.bf16.msra.mxu0 %v1042_v13  ;;  %519 = vmatpush1.bf16.msra.mxu1 %v1043_v14 }
  0x21   : > { %375 = vmatprep.subr.bf16.mxu0 %v1100_v1  ;;  %520 = vmatprep.subr.bf16.mxu1 %v1100_v1 }
  0x24   : > { %376 = vmatpush1.bf16.msra.mxu0 %v1044_v20  ;;  %521 = vmatpush1.bf16.msra.mxu1 %v1045_v21 }
  0x25   : > { %377 = vmatprep.subr.bf16.mxu0 %v1100_v1  ;;  %522 = vmatprep.subr.bf16.mxu1 %v1100_v1 }
  0x28   : > { %378 = vmatpush1.bf16.msra.mxu0 %v1046_v22  ;;  %523 = vmatpush1.bf16.msra.mxu1 %v1047_v23 }
  0x29   : > { %379 = vmatprep.subr.bf16.mxu0 %v1100_v1  ;;  %524 = vmatprep.subr.bf16.mxu1 %v1100_v1 }
  0x2c   : > { %380 = vmatpush1.bf16.msra.mxu0 %v1048_v24  ;;  %525 = vmatpush1.bf16.msra.mxu1 %v1049_v25 }
  0x2d   : > { %381 = vmatprep.subr.bf16.mxu0 %v1100_v1  ;;  %526 = vmatprep.subr.bf16.mxu1 %v1100_v1 }
  0x30   : > { %382 = vmatpush1.bf16.msra.mxu0 %v1050_v26  ;;  %527 = vmatpush1.bf16.msra.mxu1 %v1051_v27 }
  0x31   : > { %383 = vmatprep.subr.bf16.mxu0 %v1100_v1  ;;  %528 = vmatprep.subr.bf16.mxu1 %v1100_v1 }
  0x34   : > { %384 = vmatpush1.bf16.msra.mxu0 %v1052_v28  ;;  %529 = vmatpush1.bf16.msra.mxu1 %v1053_v29 }
  0x35   : > { %686 = vmatprep.subr.bf16.mxu0 %v1100_v1  ;;  %980 = vmatprep.subr.bf16.mxu1 %v1100_v1 }
  0x37   : > { %394 = vmatmul.mubr.bf16.vlgmr.msra.gmra.mrb[0].mxu0 %v894_v30  ;;  %539 = vmatmul.mubr.bf16.vlgmr.msra.gmra.mrb[0].mxu1 %v912_v33 }
  0x38   : > { %687 = vmatpush1.bf16.msra.mxu0 %v1058_v34  ;;  %992 = vmatpush1.bf16.msra.mxu1 %v1058_v34 }
  0x39   : > { %688 = vmatprep.subr.bf16.mxu0 %v1100_v1  ;;  %981 = vmatprep.subr.bf16.mxu1 %v1100_v1 }
  0x3a   : > { %911 = vmatprep.mubr.msk.bf16.mxu0 %vm354_vm0, %v897_v35  ;;  %929 = vmatprep.mubr.msk.bf16.mxu1 %vm354_vm0, %v915_v36 }
  0x3c   : > { %689 = vmatpush1.bf16.msra.mxu0 %v1059_v37  ;;  %993 = vmatpush1.bf16.msra.mxu1 %v1059_v37 }
  0x3d   : > { %690 = vmatprep.subr.bf16.mxu0 %v1100_v1  ;;  %982 = vmatprep.subr.bf16.mxu1 %v1100_v1 }
  0x3f   : > { %402 = vmatmul.mubr.bf16.gmra.mrb[4].mxu0 %v896_v38  ;;  %547 = vmatmul.mubr.bf16.gmra.mrb[4].mxu1 %v914_v40 }
  0x40   : > { %691 = vmatpush1.bf16.msra.mxu0 %v1060_v39  ;;  %994 = vmatpush1.bf16.msra.mxu1 %v1060_v39 }
  0x41   : > { %692 = vmatprep.subr.bf16.mxu0 %v1100_v1  ;;  %983 = vmatprep.subr.bf16.mxu1 %v1100_v1 }
  0x42   : > { %974 = vmatprep.mubr.msk.bf16.mxu0 %vm354_vm0, %v915_v36  ;;  %975 = vmatprep.mubr.msk.bf16.mxu1 %vm354_vm0, %v961_v42 }
  0x44   : > { %693 = vmatpush1.bf16.msra.mxu0 %v1061_v43  ;;  %995 = vmatpush1.bf16.msra.mxu1 %v1061_v43 }
  0x45   : > { %694 = vmatprep.subr.bf16.mxu0 %v1100_v1  ;;  %984 = vmatprep.subr.bf16.mxu1 %v1100_v1 }
  0x48   : > { %695 = vmatpush1.bf16.msra.mxu0 %v1062_v44  ;;  %996 = vmatpush1.bf16.msra.mxu1 %v1062_v44 }
  0x49   : > { %696 = vmatprep.subr.bf16.mxu0 %v1100_v1  ;;  %985 = vmatprep.subr.bf16.mxu1 %v1100_v1 }
  0x4c   : > { %697 = vmatpush1.bf16.msra.mxu0 %v1063_v45  ;;  %997 = vmatpush1.bf16.msra.mxu1 %v1063_v45 }
  0x4d   : > { %698 = vmatprep.subr.bf16.mxu0 %v1100_v1  ;;  %986 = vmatprep.subr.bf16.mxu1 %v1100_v1 }
  0x50   : > { %699 = vmatpush1.bf16.msra.mxu0 %v1064_v46  ;;  %998 = vmatpush1.bf16.msra.mxu1 %v1064_v46 }
  0x51   : > { %700 = vmatprep.subr.bf16.mxu0 %v1100_v1  ;;  %987 = vmatprep.subr.bf16.mxu1 %v1100_v1 }
  0x54   : > { %701 = vmatpush1.bf16.msra.mxu0 %v1065_v47  ;;  %999 = vmatpush1.bf16.msra.mxu1 %v1065_v47 }
  0x55   : > { %702 = vmatprep.subr.bf16.mxu0 %v1100_v1  ;;  %988 = vmatprep.subr.bf16.mxu1 %v1100_v1 }
  0x58   : > { %703 = vmatpush1.bf16.msra.mxu0 %v1066_v48  ;;  %1000 = vmatpush1.bf16.msra.mxu1 %v1066_v48 }
  0x59   : > { %704 = vmatprep.subr.bf16.mxu0 %v1100_v1  ;;  %989 = vmatprep.subr.bf16.mxu1 %v1100_v1 }
  0x5c   : > { %705 = vmatpush1.bf16.msra.mxu0 %v1071_v49  ;;  %1001 = vmatpush1.bf16.msra.mxu1 %v1071_v49 }
  0x5d   : > { %706 = vmatprep.subr.bf16.mxu0 %v1100_v1  ;;  %990 = vmatprep.subr.bf16.mxu1 %v1100_v1 }
  0x60   : > { %707 = vmatpush1.bf16.msra.mxu0 %v1072_v50  ;;  %1002 = vmatpush1.bf16.msra.mxu1 %v1072_v50 }
  0x61   : > { %708 = vmatprep.subr.bf16.mxu0 %v1100_v1  ;;  %991 = vmatprep.subr.bf16.mxu1 %v1100_v1 }
  0x64   : > { %709 = vmatpush1.bf16.msra.mxu0 %v1073_v51  ;;  %1003 = vmatpush1.bf16.msra.mxu1 %v1073_v51 }
  0x67   : > { %719 = vmatmul.mubr.bf16.vlgmr.msra.gmra.mrb[8].mxu0 %v914_v40  ;;  %727 = vmatmul.mubr.bf16.vlgmr.msra.gmra.mrb[8].mxu1 %v960_v52 }
 0x10a   : > { %v395_v53 = vpop.f32.mrb[0].mxu0  ;;  %v540_v54 = vpop.f32.mrb[0].mxu1 }
 0x10b   : > { %v397_v55 = vpop.f32.mrb[1].mxu0  ;;  %v541_v56 = vadd.f32 %v540_v54, %v395_v53  ;;  %v542_v57 = vpop.f32.mrb[1].mxu1 }
 0x10c   : > { %v398_v58 = vpop.f32.mrb[2].mxu0  ;;  %v543_v59 = vpop.f32.mrb[2].mxu1 }
 0x10d   : > { %v400_v60 = vpop.f32.mrb[3].mxu0  ;;  %v544_v61 = vadd.f32 %v543_v59, %v398_v58  ;;  %v545_v62 = vpop.f32.mrb[3].mxu1 }
 0x112   : > { %v403_v63 = vpop.f32.mrb[4].mxu0  ;;  %v548_v0 = vpop.f32.mrb[4].mxu1 }
 0x113   : > { %v405_v2 = vpop.f32.mrb[5].mxu0  ;;  %v549_v1 = vadd.f32 %v548_v0, %v403_v63  ;;  %v550_v3 = vpop.f32.mrb[5].mxu1 }
 0x114   : > { %v406_v4 = vpop.f32.mrb[6].mxu0  ;;  %v551_v5 = vpop.f32.mrb[6].mxu1 }
 0x115   : > { %v408_v6 = vpop.f32.mrb[7].mxu0  ;;  %v552_v7 = vadd.f32 %v551_v5, %v406_v4  ;;  %v553_v8 = vpop.f32.mrb[7].mxu1 }
 0x13a   : > { %v720_v9 = vpop.f32.mrb[8].mxu0  ;;  %v728_v12 = vpop.f32.mrb[8].mxu1 }
 0x13b   : > { %v735_v11 = vadd.f32 %v720_v9, %v541_v56  ;;  %v722_v13 = vpop.f32.mrb[9].mxu0  ;;  %v737_v14 = vadd.f32 %v728_v12, %v549_v1  ;;  %v730_v15 = vpop.f32.mrb[9].mxu1 }
 0x13c   : > { %v723_v16 = vpop.f32.mrb[10].mxu0  ;;  %v731_v19 = vpop.f32.mrb[10].mxu1 }
 0x13d   : > { %v746_v17 = vadd.f32 %v976_v10, %v735_v11  ;;  %v736_v18 = vadd.f32 %v723_v16, %v544_v61  ;;  %v725_v20 = vpop.f32.mrb[11].mxu0  ;;  %v748_v21 = vadd.f32 %v976_v10, %v737_v14  ;;  %v738_v22 = vadd.f32 %v731_v19, %v552_v7  ;;  %v733_v23 = vpop.f32.mrb[11].mxu1 }
 0x13f   : > { %v750_v24 = vmax.f32 %v746_v17, 0.0  ;;  %v747_v25 = vadd.f32 %v976_v10, %v736_v18  ;;  %v752_v26 = vmax.f32 %v748_v21, 0.0  ;;  %v749_v27 = vadd.f32 %v976_v10, %v738_v22 }
 0x141   : > { %754 = vst.msk [vmem:[#allocation2] sm:$0xff] %vm354_vm0, %v750_v24  ;;  %v751_v28 = vmax.f32 %v747_v25, 0.0  ;;  %756 = vst.msk [vmem:[#allocation2 + $0x10] sm:$0xff] %vm354_vm0, %v752_v26  ;;  %v753_v29 = vmax.f32 %v749_v27, 0.0 }
 0x143   : > { %755 = vst.msk [vmem:[#allocation2 + $0x8] sm:$0xff] %vm354_vm0, %v751_v28  ;;  %757 = vst.msk [vmem:[#allocation2 + $0x18] sm:$0xff] %vm354_vm0, %v753_v29 }
 0x148   : > { %v758_v30 = vld [vmem:[#allocation2] sm:$0xf]  ;;  %v760_v32 = vld [vmem:[#allocation2 + $0x10] sm:$0xf] }
 0x149   : > { %v762_v31 = vpack.c.bf16 %v758_v30, %v758_v30  ;;  %v764_v33 = vpack.c.bf16 %v760_v32, %v760_v32 }
 0x14a   : > { %v759_v34 = vld [vmem:[#allocation2 + $0x8] sm:$0xf]  ;;  %v761_v36 = vld [vmem:[#allocation2 + $0x18] sm:$0xf] }
 0x14b   : > { %767 = vst.msk [vmem:[%s192_s29] sm:$0x3] %vm766_vm1, %v762_v31  ;;  %v763_v35 = vpack.c.bf16 %v759_v34, %v759_v34  ;;  %769 = vst.msk [vmem:[%s192_s29 + $0x4] sm:$0x3] %vm766_vm1, %v764_v33  ;;  %v765_v37 = vpack.c.bf16 %v761_v36, %v761_v36 }
 0x14d   : > { %768 = vst.msk [vmem:[%s192_s29 + $0x2] sm:$0x3] %vm766_vm1, %v763_v35  ;;  %770 = vst.msk [vmem:[%s192_s29 + $0x6] sm:$0x3] %vm766_vm1, %v765_v37 }
 0x14e PF: > { %s13_s14 = sadd.s32 1, %s1098_s14   ;;  %s1349_s12 = smov %s1094_s13 }
 0x14f   : > { %p10_p5 = scmp.ge.s32.totalorder %s13_s14, 4   ;;  %s1350_s13 = smov %s1352_s15 }
 0x151   :  { %12 = sbr.rel (!%p10_p5) target bundleno = 2 (0x2), region = 67 }

// kernel: _lambda_.14
= control target key start
LH: loop header
LB: loop body
LE: loop exit
PB: predicated region body
PF: predicated region fallthrough
CT: control target
= control target key end

     0   :  { %s544_s12 = smov 0   ;;  %s546_s13 = smov 0   ;;  %s622_s0 = inlined_call_operand.vmem [shape: bf16[2,4,4,64], index: 0, kind: input, shape index: {}]   ;;  %s623_s1 = inlined_call_operand.vmem [shape: bf16[64,256], index: 1, kind: input, shape index: {}]   ;;  %s624_s2 = inlined_call_operand.vmem [shape: f32[1,256], index: 2, kind: input, shape index: {}]   ;;  %s625_s3 = inlined_call_operand.vmem [shape: bf16[2,4,2,4,128], index: 3, kind: output, shape index: {}]  }
   0x1   :  { %s548_s14 = smov 0   ;;  %s550_s15 = smov 0  }
   0x2   :  { %s552_s16 = smov 0  }
   0x3 LB: > { %s22_s17 = sadd.s32 1, %s513_s14  ;;  %s25_s18 = sadd.s32 1, %s517_s15  ;;  %s521_s16 = sphi %s552_s16, %s13_s16   ;;  %s517_s15 = sphi %s550_s15, %s629_s15   ;;  %s513_s14 = sphi %s548_s14, %s628_s14   ;;  %s509_s13 = sphi %s546_s13, %s627_s13   ;;  %s505_s12 = sphi %s544_s12, %s626_s12  }
   0x4   : > { %p23_p0 = scmp.ge.s32.totalorder %s22_s17, 4  ;;  %p412_p1 = scmp.ge.s32.totalorder %s521_s16, 1 }
   0x5   : > { %p156_p2 = scmp.lt.s32.totalorder %s521_s16, 9 }
   0x6   : > { %s631_s17 = smov (%p23_p0, %s22_s17), 0  ;;  %s633_s18 = smov (!%p23_p0, %s25_s18), %s517_s15 }
   0x7   : > { %p157_p3 = pnand %p412_p1, %p156_p2  ;;  %p27_p4 = scmp.ge.s32.totalorder %s633_s18, 2 }
   0x8   : > { %v471_v0 = vld [vmem:[%s623_s1 + $0x4] ss:$8 sps:$4 sm:$0xff] (!%p157_p3)   ;;  %p187_p5 = scmp.lt.s32.totalorder (!%p157_p3), %s509_s13, 1  ;;  %v473_v1 = vld [vmem:[%s623_s1] ss:$8 sps:$4 sm:$0xff] (!%p157_p3)   ;;  %v523_v2 = vmov (!%p157_p3), 0   ;;  %v216_v10 = vlaneseq (!%p157_p3) }
   0x9   : > { %s635_s18 = smov (%p27_p4, %s633_s18), 0  ;;  %160 = sbr.rel (%p157_p3) target bundleno = 244 (0xf4), region = 32 }
   0xa   : > { %302 = vmatprep.mubr.bf16.mxu0 (!%p157_p3), %v523_v2  ;;  %p189_p6 = scmp.lt.s32.totalorder (!%p157_p3), %s505_s12, 3  ;;  %270 = vmatprep.subr.bf16.mxu0 (!%p157_p3), %v471_v0  ;;  %v474_v3 = vld [vmem:[%s623_s1 + $0x14] ss:$8 sps:$4 sm:$0xff] (!%p157_p3)   ;;  %v476_v4 = vld [vmem:[%s623_s1 + $0x10] ss:$8 sps:$4 sm:$0xff] (!%p157_p3)   ;;  %vm266_vm0 = vcmask (!%p157_p3), 523264  }
   0xb   : > { %271 = vmatpush1.bf16.msra.mxu0 (!%p157_p3), %v473_v1  ;;  %v477_v5 = vld [vmem:[%s623_s1 + $0x24] ss:$8 sps:$4 sm:$0xff] (!%p157_p3)   ;;  %v479_v6 = vld [vmem:[%s623_s1 + $0x20] ss:$8 sps:$4 sm:$0xff] (!%p157_p3)   ;;  %v480_v7 = vld [vmem:[%s623_s1 + $0x34] ss:$8 sps:$4 sm:$0xff] (!%p157_p3)  }
   0xc   : > { %272 = vmatprep.subr.bf16.mxu0 (!%p157_p3), %v474_v3  ;;  %v482_v8 = vld [vmem:[%s623_s1 + $0x30] ss:$8 sps:$4 sm:$0xff] (!%p157_p3)   ;;  %v217_v11 = vshrl.u32 (!%p157_p3), %v216_v10, 7  ;;  %v214_v13 = vld [vmem:[%s624_s2] sm:$0x3] (!%p157_p3) }
   0xe   : > { %v218_v12 = vsub.s32 (!%p157_p3), 0, %v217_v11  ;;  %v222_v14 = vsub.s32 (!%p157_p3), 1, %v217_v11 }
   0xf   : > { %273 = vmatpush1.bf16.msra.mxu0 (!%p157_p3), %v476_v4 }
  0x10   : > { %s637_s13 = smov (!%p187_p5, %s509_s13), 1  ;;  %s639_s12 = smov (!%p189_p6, %s505_s12), 3  ;;  %274 = vmatprep.subr.bf16.mxu0 %v477_v5  ;;  %v219_v15 = vrot.slane %v214_v13, %v218_v12  ;;  %v223_v16 = vrot.slane %v214_v13, %v222_v14 }
  0x11   : > { %s413_s29 = sshll.u32 %s637_s13, 2  ;;  %s416_s30 = sshll.u32 %s637_s13, 3 }
  0x12   : > { %s415_s4 = sshll.u32 %s639_s12, 1  ;;  %s192_s5 = sadd.s32 %s413_s29, %s639_s12 }
  0x13   : > { %s201_s6 = sadd.s32 %s416_s30, %s415_s4  ;;  %s414_s11 = sshll.u32 %s192_s5, 1  ;;  %275 = vmatpush1.bf16.msra.mxu0 %v479_v6 }
  0x14   : > { %276 = vmatprep.subr.bf16.mxu0 %v480_v7  ;;  %s194_s21 = scalar_lea.vmem %s622_s0, %s414_s11  ;;  %s417_s24 = sshll.u32 %s201_s6, 1 }
  0x15   : > { %v205_v9 = vld [vmem:[%s194_s21] sm:$0x3]  ;;  %s203_s27 = scalar_lea.vmem %s625_s3, %s417_s24 }
  0x17   : > { %277 = vmatpush1.bf16.msra.mxu0 %v482_v8 }
  0x1a   : > { %426 = vmatmul.mubr.msk.bf16.vlgmr.msra.gmra.mrb[0].mxu0 %vm266_vm0, %v205_v9 }
  0xed   : > { %v304_v17 = vpop.f32.mrb[0].mxu0 }
  0xee   : > { %v305_v18 = vadd.f32 %v304_v17, %v219_v15  ;;  %v306_v19 = vpop.f32.mrb[1].mxu0 }
  0xef   : > { %v307_v20 = vadd.f32 %v306_v19, %v223_v16  ;;  %v308_v21 = vpop.f32.mrb[2].mxu0 }
  0xf0   : > { %v311_v22 = vpack.c.bf16 %v305_v18, %v305_v18  ;;  %v309_v23 = vpop.f32.mrb[3].mxu0 }
  0xf1   : > { %v313_v24 = vpack.c.bf16 %v307_v20, %v307_v20 }
  0xf2   : > { %312 = vst [vmem:[%s203_s27] sm:$0x3] %v311_v22 }
  0xf3   : > { %427 = vst [vmem:[%s203_s27 + $0x2] sm:$0x3] %v313_v24 }
  0xf4 PF: > { %s13_s16 = sadd.s32 1, %s521_s16   ;;  %s626_s12 = smov %s513_s14 }
  0xf5   : > { %p10_p7 = scmp.ge.s32.totalorder %s13_s16, 10   ;;  %s627_s13 = smov %s517_s15 }
  0xf6   : > { %s628_s14 = smov %s631_s17  ;;  %s629_s15 = smov %s635_s18 }
  0xf7   :  { %12 = sbr.rel (!%p10_p7) target bundleno = 3 (0x3), region = 63 }

// kernel: _lambda_.12
= control target key start
LH: loop header
LB: loop body
LE: loop exit
PB: predicated region body
PF: predicated region fallthrough
CT: control target
= control target key end

     0   :  { %s1894_s12 = smov 0   ;;  %s1896_s13 = smov 0   ;;  %s2196_s0 = inlined_call_operand.vmem [shape: bf16[2,48,384], index: 0, kind: input, shape index: {}]   ;;  %s2197_s1 = inlined_call_operand.vmem [shape: bf16[3,384,64], index: 1, kind: input, shape index: {}]   ;;  %s2198_s2 = inlined_call_operand.vmem [shape: f32[1,64], index: 2, kind: input, shape index: {}]   ;;  %s2199_s3 = inlined_call_operand.vmem [shape: bf16[2,4,4,64], index: 3, kind: output, shape index: {}]  }
   0x1   :  { %s1898_s14 = smov 0  }
   0x2 LB: > { %s25_s15 = sadd.s32 1, %s1868_s13  ;;  %p1333_p0 = scmp.ge.s32.totalorder %s1872_s14, 1  ;;  %s1872_s14 = sphi %s1898_s14, %s13_s14   ;;  %s1868_s13 = sphi %s1896_s13, %s2201_s13   ;;  %s1864_s12 = sphi %s1894_s12, %s2200_s12  }
   0x3   : > { %p27_p1 = scmp.ge.s32.totalorder %s25_s15, 2  ;;  %p151_p2 = scmp.lt.s32.totalorder %s1872_s14, 3 }
   0x5   : > { %s2203_s15 = smov (%p27_p1, %s25_s15), 0  ;;  %p152_p3 = pnand %p1333_p0, %p151_p2 }
   0x6   : > { %v1762_v0 = vld [vmem:[%s2197_s1 + $0x100] sm:$0xff] (!%p152_p3)   ;;  %v1765_v3 = vld [vmem:[%s2197_s1 + $0x108] sm:$0xff] (!%p152_p3)   ;;  %v1768_v6 = vld [vmem:[%s2197_s1 + $0x110] sm:$0xff] (!%p152_p3)   ;;  %p179_p4 = scmp.lt.s32.totalorder (!%p152_p3), %s1864_s12, 1  ;;  %vm1224_vm0 = vcmask (!%p152_p3), 523264   ;;  %vm1237_vm1 = vcmask (!%p152_p3), 517120  }
   0x7   : > { %155 = sbr.rel (%p152_p3) target bundleno = 349 (0x15d), region = 32  ;;  %v1763_v1 = vld [vmem:[%s2197_s1 + $0x140] sm:$0xff] (!%p152_p3)   ;;  %1543 = vmatprep.subr.bf16.mxu0 (!%p152_p3), %v1762_v0  ;;  %v1766_v4 = vld [vmem:[%s2197_s1 + $0x148] sm:$0xff] (!%p152_p3)   ;;  %v1769_v7 = vld [vmem:[%s2197_s1 + $0x150] sm:$0xff] (!%p152_p3)  }
   0x8   : > { %v1764_v2 = vld [vmem:[%s2197_s1 + $0xc0] sm:$0xff] (!%p152_p3)   ;;  %1657 = vmatprep.subr.bf16.mxu1 (!%p152_p3), %v1763_v1  ;;  %v1767_v5 = vld [vmem:[%s2197_s1 + $0xc8] sm:$0xff] (!%p152_p3)   ;;  %v1770_v8 = vld [vmem:[%s2197_s1 + $0xd0] sm:$0xff] (!%p152_p3)  }
   0x9   : > { %1544 = vmatpush3.bf16.msra.mxu0 (!%p152_p3), %v1764_v2  ;;  %1658 = vmatpush3.bf16.msra.mxu1 (!%p152_p3), %v1763_v1  ;;  %v1771_v9 = vld [vmem:[%s2197_s1 + $0x118] sm:$0xff] (!%p152_p3)   ;;  %v1774_v12 = vld [vmem:[%s2197_s1 + $0x120] sm:$0xff] (!%p152_p3)   ;;  %v1777_v15 = vld [vmem:[%s2197_s1 + $0x128] sm:$0xff] (!%p152_p3)  }
   0xa   : > { %1545 = vmatprep.subr.bf16.mxu0 (!%p152_p3), %v1765_v3  ;;  %1659 = vmatprep.subr.bf16.mxu1 (!%p152_p3), %v1766_v4  ;;  %v1772_v10 = vld [vmem:[%s2197_s1 + $0x158] sm:$0xff] (!%p152_p3)   ;;  %v1775_v13 = vld [vmem:[%s2197_s1 + $0x160] sm:$0xff] (!%p152_p3)   ;;  %v1778_v16 = vld [vmem:[%s2197_s1 + $0x168] sm:$0xff] (!%p152_p3)  }
   0xb   : > { %v1773_v11 = vld [vmem:[%s2197_s1 + $0xd8] sm:$0xff] (!%p152_p3)   ;;  %v1776_v14 = vld [vmem:[%s2197_s1 + $0xe0] sm:$0xff] (!%p152_p3)   ;;  %v1779_v17 = vld [vmem:[%s2197_s1 + $0xe8] sm:$0xff] (!%p152_p3)  }
   0xc   : > { %v1780_v18 = vld [vmem:[%s2197_s1 + $0x130] sm:$0xff] (!%p152_p3)   ;;  %v1783_v21 = vld [vmem:[%s2197_s1 + $0x138] sm:$0xff] (!%p152_p3)   ;;  %v1789_v28 = vld [vmem:[%s2197_s1 + $0x40] sm:$0xff] (!%p152_p3)  }
   0xd   : > { %1546 = vmatpush3.bf16.msra.mxu0 (!%p152_p3), %v1767_v5  ;;  %1660 = vmatpush3.bf16.msra.mxu1 (!%p152_p3), %v1766_v4  ;;  %v1781_v19 = vld [vmem:[%s2197_s1 + $0x170] sm:$0xff] (!%p152_p3)   ;;  %v1784_v22 = vld [vmem:[%s2197_s1 + $0x178] sm:$0xff] (!%p152_p3)   ;;  %v1790_v29 = vld [vmem:[%s2197_s1 + $0x80] sm:$0xff] (!%p152_p3)  }
   0xe   : > { %1547 = vmatprep.subr.bf16.mxu0 %v1768_v6  ;;  %1661 = vmatprep.subr.bf16.mxu1 %v1769_v7  ;;  %s2205_s12 = smov (!%p179_p4, %s1864_s12), 1  ;;  %v1782_v20 = vld [vmem:[%s2197_s1 + $0xf0] sm:$0xff]   ;;  %v1785_v27 = vld [vmem:[%s2197_s1 + $0xf8] sm:$0xff]   ;;  %v1792_v32 = vld [vmem:[%s2197_s1] sm:$0xff]  }
   0xf   : > { %s1737_s27 = smul.u32 72, %s2205_s12  ;;  %v1793_v33 = vld [vmem:[%s2197_s1 + $0x48] sm:$0xff]   ;;  %v1796_v36 = vld [vmem:[%s2197_s1 + $0x50] sm:$0xff]   ;;  %v1799_v39 = vld [vmem:[%s2197_s1 + $0x58] sm:$0xff]   ;;  %s1542_s4 = sshll.u32 %s2205_s12, 3 }
  0x10   : > { %v1794_v34 = vld [vmem:[%s2197_s1 + $0x88] sm:$0xff]   ;;  %v1797_v37 = vld [vmem:[%s2197_s1 + $0x90] sm:$0xff]   ;;  %v1800_v40 = vld [vmem:[%s2197_s1 + $0x98] sm:$0xff]   ;;  %s192_s7 = scalar_lea.vmem %s2199_s3, %s1542_s4 }
  0x11   : > { %1548 = vmatpush3.bf16.msra.mxu0 %v1770_v8  ;;  %1662 = vmatpush3.bf16.msra.mxu1 %v1769_v7  ;;  %s1982_s9 = scalar_lea.vmem %s2196_s0, %s1737_s27  ;;  %v1795_v35 = vld [vmem:[%s2197_s1 + $0x8] sm:$0xff]   ;;  %v1798_v38 = vld [vmem:[%s2197_s1 + $0x10] sm:$0xff]   ;;  %v1801_v41 = vld [vmem:[%s2197_s1 + $0x18] sm:$0xff]  }
  0x12   : > { %1549 = vmatprep.subr.bf16.mxu0 %v1771_v9  ;;  %1663 = vmatprep.subr.bf16.mxu1 %v1772_v10  ;;  %v1994_v23 = vld [vmem:[%s1982_s9 + $0xc] sm:$0xff]  ;;  %v1997_v24 = vld [vmem:[%s1982_s9 + $0x18] sm:$0xff]  ;;  %v1788_v26 = vld [vmem:[%s1982_s9 + $0x14] ss:$12 sps:$4 sm:$0xff]  }
  0x13   : > { %v1394_v25 = vcombine.high %v1994_v23, %v1997_v24  ;;  %1673 = vmatprep.mubr.bf16.mxu1 %v1788_v26  ;;  %v1791_v30 = vld [vmem:[%s1982_s9 + $0x2c] ss:$12 sps:$4 sm:$0xff]   ;;  %v1393_v31 = vcombine.low %v1994_v23, %v1997_v24  ;;  %v1802_v42 = vld [vmem:[%s2197_s1 + $0x60] sm:$0xff]   ;;  %v2051_v44 = vld [vmem:[%s1982_s9 + $0x30] sm:$0xff] }
  0x14   : > { %v2048_v43 = vld [vmem:[%s1982_s9 + $0x24] sm:$0xff]  ;;  %v1810_v52 = vld [vmem:[%s2197_s1 + $0x70] sm:$0xff]   ;;  %v1813_v58 = vld [vmem:[%s2197_s1 + $0x78] sm:$0xff]  }
  0x15   : > { %1550 = vmatpush3.bf16.msra.mxu0 %v1773_v11  ;;  %1664 = vmatpush3.bf16.msra.mxu1 %v1772_v10  ;;  %v1803_v45 = vld [vmem:[%s2197_s1 + $0xa0] sm:$0xff]   ;;  %v1397_v46 = vcombine.high %v2048_v43, %v2051_v44  ;;  %v1396_v47 = vcombine.low %v2048_v43, %v2051_v44  ;;  %v1805_v49 = vld [vmem:[%s2197_s1 + $0x68] sm:$0xff]   ;;  %v1811_v56 = vld [vmem:[%s2197_s1 + $0xb0] sm:$0xff]   ;;  %v1427_v4 = vcombine.high %v1997_v24, %v2048_v43 }
  0x16   : > { %1551 = vmatprep.subr.bf16.mxu0 %v1774_v12  ;;  %1665 = vmatprep.subr.bf16.mxu1 %v1775_v13  ;;  %v1804_v48 = vld [vmem:[%s2197_s1 + $0x20] sm:$0xff]   ;;  %v1806_v50 = vld [vmem:[%s2197_s1 + $0xa8] sm:$0xff]   ;;  %v1812_v57 = vld [vmem:[%s2197_s1 + $0x30] sm:$0xff]   ;;  %v1426_v8 = vcombine.low %v1997_v24, %v2048_v43 }
  0x17   : > { %528 = vmatprep.mubr.bf16.mxu0 %v1394_v25  ;;  %v1808_v51 = vld [vmem:[%s2197_s1 + $0x28] sm:$0xff]   ;;  %v201_v53 = vld [vmem:[%s1982_s9] sm:$0xff]  ;;  %v1814_v59 = vld [vmem:[%s2197_s1 + $0xb8] sm:$0xff]  }
  0x18   : > { %v1424_v54 = vcombine.high %v201_v53, %v1994_v23  ;;  %v1818_v55 = vld [vmem:[%s1982_s9 + $0x8] ss:$12 sps:$4 sm:$0xff]   ;;  %v1815_v60 = vld [vmem:[%s2197_s1 + $0x38] sm:$0xff]   ;;  %v1819_v61 = vld [vmem:[%s2197_s1 + $0x1c0] sm:$0xff]   ;;  %v1423_v0 = vcombine.low %v201_v53, %v1994_v23 }
  0x19   : > { %1552 = vmatpush3.bf16.msra.mxu0 %v1776_v14  ;;  %1666 = vmatpush3.bf16.msra.mxu1 %v1775_v13  ;;  %v1820_v62 = vld [vmem:[%s2197_s1 + $0x200] sm:$0xff]   ;;  %v1823_v2 = vld [vmem:[%s2197_s1 + $0x1c8] sm:$0xff]   ;;  %v1828_v6 = vld [vmem:[%s2197_s1 + $0x1d0] sm:$0xff]  }
  0x1a   : > { %1553 = vmatprep.subr.bf16.mxu0 %v1777_v15  ;;  %1667 = vmatprep.subr.bf16.mxu1 %v1778_v16  ;;  %v1821_v63 = vld [vmem:[%s1982_s9 + $0x20] ss:$12 sps:$4 sm:$0xff]   ;;  %v1829_v7 = vld [vmem:[%s2197_s1 + $0x210] sm:$0xff]   ;;  %v1831_v10 = vld [vmem:[%s2197_s1 + $0x1d8] sm:$0xff]  }
  0x1b   : > { %v1822_v1 = vld [vmem:[%s2197_s1 + $0x180] sm:$0xff]   ;;  %v1824_v3 = vld [vmem:[%s2197_s1 + $0x208] sm:$0xff]   ;;  %v1830_v9 = vld [vmem:[%s2197_s1 + $0x190] sm:$0xff]  }
  0x1c   : > { %v1825_v5 = vld [vmem:[%s2197_s1 + $0x188] sm:$0xff]   ;;  %v1832_v11 = vld [vmem:[%s2197_s1 + $0x218] sm:$0xff]   ;;  %v1834_v13 = vld [vmem:[%s2197_s1 + $0x1e0] sm:$0xff]  }
  0x1d   : > { %1554 = vmatpush3.bf16.msra.mxu0 %v1779_v17  ;;  %1668 = vmatpush3.bf16.msra.mxu1 %v1778_v16  ;;  %v1833_v12 = vld [vmem:[%s2197_s1 + $0x198] sm:$0xff]   ;;  %v1835_v14 = vld [vmem:[%s2197_s1 + $0x220] sm:$0xff]   ;;  %v1837_v17 = vld [vmem:[%s2197_s1 + $0x1e8] sm:$0xff]  }
  0x1e   : > { %1555 = vmatprep.subr.bf16.mxu0 %v1780_v18  ;;  %1669 = vmatprep.subr.bf16.mxu1 %v1781_v19  ;;  %v1846_v15 = vld [vmem:[%s1982_s9 + $0x20] ss:$12 sps:$4 sm:$0xff]   ;;  %v1843_v23 = vld [vmem:[%s2197_s1 + $0x1f8] sm:$0xff]  }
  0x1f   : > { %v1836_v16 = vld [vmem:[%s2197_s1 + $0x1a0] sm:$0xff]   ;;  %v1838_v18 = vld [vmem:[%s2197_s1 + $0x228] sm:$0xff]   ;;  %v1844_v24 = vld [vmem:[%s2197_s1 + $0x238] sm:$0xff]  }
  0x20   : > { %v1845_v25 = vld [vmem:[%s2197_s1 + $0x1b8] sm:$0xff]  }
  0x21   : > { %1556 = vmatpush3.bf16.msra.mxu0 %v1782_v20  ;;  %1670 = vmatpush3.bf16.msra.mxu1 %v1781_v19  ;;  %v1839_v19 = vld [vmem:[%s2197_s1 + $0x1a8] sm:$0xff]   ;;  %v1840_v20 = vld [vmem:[%s2197_s1 + $0x1f0] sm:$0xff]   ;;  %v1459_v26 = vld [vmem:[%s1982_s9 + $0x3c] sm:$0xff] }
  0x22   : > { %1557 = vmatprep.subr.bf16.mxu0 %v1783_v21  ;;  %1671 = vmatprep.subr.bf16.mxu1 %v1784_v22  ;;  %v1841_v21 = vld [vmem:[%s2197_s1 + $0x230] sm:$0xff]  }
  0x25   : > { %1558 = vmatpush3.bf16.msra.mxu0 %v1785_v27  ;;  %1672 = vmatpush3.bf16.msra.mxu1 %v1784_v22  ;;  %v1842_v22 = vld [vmem:[%s2197_s1 + $0x1b0] sm:$0xff]   ;;  %v1847_v27 = vld [vmem:[%s1982_s9 + $0x38] ss:$12 sps:$4 sm:$0xff]  }
  0x26   : > { %1581 = vmatprep.subr.bf16.mxu0 %v1789_v28  ;;  %1677 = vmatprep.subr.bf16.mxu1 %v1790_v29  ;;  %v1513_v28 = vcombine.high %v2051_v44, %v1459_v26 }
  0x28   : > { %529 = vmatmul.mubr.bf16.vlgmr.msra.gmra.mrb[0].mxu0 %v1393_v31  ;;  %1674 = vmatmul.mubr.bf16.vlgmr.msra.gmra.mrb[0].mxu1 %v1791_v30 }
  0x29   : > { %1582 = vmatpush3.bf16.msra.mxu0 %v1792_v32  ;;  %1678 = vmatpush3.bf16.msra.mxu1 %v1790_v29  ;;  %v1512_v29 = vcombine.low %v2051_v44, %v1459_v26 }
  0x2a   : > { %1583 = vmatprep.subr.bf16.mxu0 %v1793_v33  ;;  %1679 = vmatprep.subr.bf16.mxu1 %v1794_v34 }
  0x2b   : > { %536 = vmatprep.mubr.bf16.mxu0 %v1397_v46  ;;  %1693 = vmatprep.mubr.bf16.mxu1 %v1818_v55 }
  0x2d   : > { %1584 = vmatpush3.bf16.msra.mxu0 %v1795_v35  ;;  %1680 = vmatpush3.bf16.msra.mxu1 %v1794_v34 }
  0x2e   : > { %1585 = vmatprep.subr.bf16.mxu0 %v1796_v36  ;;  %1681 = vmatprep.subr.bf16.mxu1 %v1797_v37 }
  0x30   : > { %537 = vmatmul.mubr.bf16.gmra.mrb[4].mxu0 %v1396_v47 }
  0x31   : > { %1586 = vmatpush3.bf16.msra.mxu0 %v1798_v38  ;;  %1682 = vmatpush3.bf16.msra.mxu1 %v1797_v37 }
  0x32   : > { %1587 = vmatprep.subr.bf16.mxu0 %v1799_v39  ;;  %1683 = vmatprep.subr.bf16.mxu1 %v1800_v40 }
  0x33   : > { %802 = vmatprep.mubr.bf16.mxu0 %v1424_v54 }
  0x35   : > { %1588 = vmatpush3.bf16.msra.mxu0 %v1801_v41  ;;  %1684 = vmatpush3.bf16.msra.mxu1 %v1800_v40 }
  0x36   : > { %1589 = vmatprep.subr.bf16.mxu0 %v1802_v42  ;;  %1685 = vmatprep.subr.bf16.mxu1 %v1803_v45 }
  0x39   : > { %1590 = vmatpush3.bf16.msra.mxu0 %v1804_v48  ;;  %1686 = vmatpush3.bf16.msra.mxu1 %v1803_v45 }
  0x3a   : > { %1591 = vmatprep.subr.bf16.mxu0 %v1805_v49  ;;  %1687 = vmatprep.subr.bf16.mxu1 %v1806_v50 }
  0x3d   : > { %1592 = vmatpush3.bf16.msra.mxu0 %v1808_v51  ;;  %1688 = vmatpush3.bf16.msra.mxu1 %v1806_v50 }
  0x3e   : > { %1593 = vmatprep.subr.bf16.mxu0 %v1810_v52  ;;  %1689 = vmatprep.subr.bf16.mxu1 %v1811_v56 }
  0x41   : > { %1594 = vmatpush3.bf16.msra.mxu0 %v1812_v57  ;;  %1690 = vmatpush3.bf16.msra.mxu1 %v1811_v56 }
  0x42   : > { %1595 = vmatprep.subr.bf16.mxu0 %v1813_v58  ;;  %1691 = vmatprep.subr.bf16.mxu1 %v1814_v59 }
  0x45   : > { %1596 = vmatpush3.bf16.msra.mxu0 %v1815_v60  ;;  %1692 = vmatpush3.bf16.msra.mxu1 %v1814_v59 }
  0x46   : > { %1619 = vmatprep.subr.bf16.mxu0 %v1819_v61  ;;  %1697 = vmatprep.subr.bf16.mxu1 %v1820_v62 }
  0x48   : > { %803 = vmatmul.mubr.bf16.vlgmr.msra.gmra.mrb[8].mxu0 %v1423_v0  ;;  %1694 = vmatmul.mubr.bf16.vlgmr.msra.gmra.mrb[0].mxu1 %v1821_v63 }
  0x49   : > { %1620 = vmatpush3.bf16.msra.mxu0 %v1822_v1  ;;  %1698 = vmatpush3.bf16.msra.mxu1 %v1820_v62 }
  0x4a   : > { %1621 = vmatprep.subr.bf16.mxu0 %v1823_v2  ;;  %1699 = vmatprep.subr.bf16.mxu1 %v1824_v3 }
  0x4b   : > { %810 = vmatprep.mubr.bf16.mxu0 %v1427_v4  ;;  %1713 = vmatprep.mubr.bf16.mxu1 %v1846_v15 }
  0x4d   : > { %1622 = vmatpush3.bf16.msra.mxu0 %v1825_v5  ;;  %1700 = vmatpush3.bf16.msra.mxu1 %v1824_v3  ;;  %v1539_v5 = vld [vmem:[%s2198_s2] ss:$0 sm:$0xff] }
  0x4e   : > { %1623 = vmatprep.subr.bf16.mxu0 %v1828_v6  ;;  %1701 = vmatprep.subr.bf16.mxu1 %v1829_v7 }
  0x50   : > { %811 = vmatmul.mubr.bf16.gmra.mrb[12].mxu0 %v1426_v8 }
  0x51   : > { %1624 = vmatpush3.bf16.msra.mxu0 %v1830_v9  ;;  %1702 = vmatpush3.bf16.msra.mxu1 %v1829_v7 }
  0x52   : > { %1625 = vmatprep.subr.bf16.mxu0 %v1831_v10  ;;  %1703 = vmatprep.subr.bf16.mxu1 %v1832_v11 }
  0x53   : > { %1139 = vmatprep.mubr.bf16.mxu0 %v1427_v4 }
  0x55   : > { %1626 = vmatpush3.bf16.msra.mxu0 %v1833_v12  ;;  %1704 = vmatpush3.bf16.msra.mxu1 %v1832_v11 }
  0x56   : > { %1627 = vmatprep.subr.bf16.mxu0 %v1834_v13  ;;  %1705 = vmatprep.subr.bf16.mxu1 %v1835_v14 }
  0x59   : > { %1628 = vmatpush3.bf16.msra.mxu0 %v1836_v16  ;;  %1706 = vmatpush3.bf16.msra.mxu1 %v1835_v14 }
  0x5a   : > { %1629 = vmatprep.subr.bf16.mxu0 %v1837_v17  ;;  %1707 = vmatprep.subr.bf16.mxu1 %v1838_v18 }
  0x5d   : > { %1630 = vmatpush3.bf16.msra.mxu0 %v1839_v19  ;;  %1708 = vmatpush3.bf16.msra.mxu1 %v1838_v18 }
  0x5e   : > { %1631 = vmatprep.subr.bf16.mxu0 %v1840_v20  ;;  %1709 = vmatprep.subr.bf16.mxu1 %v1841_v21 }
  0x61   : > { %1632 = vmatpush3.bf16.msra.mxu0 %v1842_v22  ;;  %1710 = vmatpush3.bf16.msra.mxu1 %v1841_v21 }
  0x62   : > { %1633 = vmatprep.subr.bf16.mxu0 %v1843_v23  ;;  %1711 = vmatprep.subr.bf16.mxu1 %v1844_v24 }
  0x65   : > { %1634 = vmatpush3.bf16.msra.mxu0 %v1845_v25  ;;  %1712 = vmatpush3.bf16.msra.mxu1 %v1844_v24 }
  0x68   : > { %1140 = vmatmul.mubr.bf16.vlgmr.msra.gmra.mrb[16].mxu0 %v1426_v8  ;;  %1714 = vmatmul.mubr.bf16.vlgmr.msra.gmra.mrb[0].mxu1 %v1847_v27 }
  0x69   : > { %1147 = vmatprep.mubr.bf16.mxu0 %v1513_v28 }
  0x70   : > { %1148 = vmatmul.mubr.bf16.gmra.mrb[20].mxu0 %v1512_v29 }
  0xfb   : > { %v1559_v30 = vpop.f32.mrb[0].mxu0 }
  0xfc   : > { %v1560_v31 = vpop.f32.mrb[1].mxu0 }
  0xfd   : > { %v1561_v32 = vadd.f32 %v1560_v31, %v1559_v30  ;;  %v1562_v33 = vpop.f32.mrb[2].mxu0 }
  0xfe   : > { %v1563_v34 = vpop.f32.mrb[3].mxu0 }
  0xff   : > { %v1564_v35 = vadd.f32 %v1563_v34, %v1562_v33 }
 0x103   : > { %v1565_v36 = vpop.f32.mrb[4].mxu0 }
 0x104   : > { %v1566_v37 = vpop.f32.mrb[5].mxu0 }
 0x105   : > { %v1567_v38 = vadd.f32 %v1566_v37, %v1565_v36  ;;  %v1568_v39 = vpop.f32.mrb[6].mxu0 }
 0x106   : > { %v1569_v40 = vpop.f32.mrb[7].mxu0 }
 0x107   : > { %v1570_v41 = vadd.f32 %v1569_v40, %v1568_v39 }
 0x11b   : > { %v1597_v42 = vpop.f32.mrb[8].mxu0 }
 0x11c   : > { %v1598_v43 = vpop.f32.mrb[9].mxu0 }
 0x11d   : > { %v1599_v45 = vadd.f32 %v1598_v43, %v1597_v42  ;;  %v1600_v46 = vpop.f32.mrb[10].mxu0 }
 0x11e   : > { %v1601_v47 = vpop.f32.mrb[11].mxu0 }
 0x11f   : > { %v1720_v48 = vadd.f32 %v1599_v45, %v1561_v32  ;;  %v1602_v44 = vadd.f32 %v1601_v47, %v1600_v46 }
 0x121   : > { %v1726_v49 = vadd.f32 %v1602_v44, %v1564_v35 }
 0x123   : > { %v1603_v50 = vpop.f32.mrb[12].mxu0 }
 0x124   : > { %v1604_v51 = vpop.f32.mrb[13].mxu0 }
 0x125   : > { %v1605_v52 = vadd.f32 %v1604_v51, %v1603_v50  ;;  %v1606_v53 = vpop.f32.mrb[14].mxu0 }
 0x126   : > { %v1607_v54 = vpop.f32.mrb[15].mxu0 }
 0x127   : > { %v1717_v55 = vadd.f32 %v1605_v52, %v1567_v38  ;;  %v1608_v56 = vadd.f32 %v1607_v54, %v1606_v53 }
 0x129   : > { %v1723_v57 = vadd.f32 %v1608_v56, %v1570_v41 }
 0x13b   : > { %v1635_v58 = vpop.f32.mrb[16].mxu0  ;;  %v1715_v59 = vpop.f32.mrb[0].mxu1 }
 0x13c   : > { %v1636_v60 = vpop.f32.mrb[17].mxu0  ;;  %v1190_v61 = vpop.f32.mrb[1].mxu1 }
 0x13d   : > { %v1637_v62 = vadd.f32 %v1636_v60, %v1635_v58  ;;  %v1638_v63 = vpop.f32.mrb[18].mxu0  ;;  %v1716_v0 = vpop.f32.mrb[2].mxu1 }
 0x13e   : > { %v1639_v1 = vpop.f32.mrb[19].mxu0  ;;  %v1193_v2 = vpop.f32.mrb[3].mxu1 }
 0x13f   : > { %v1721_v3 = vadd.f32 %v1720_v48, %v1637_v62  ;;  %v1640_v4 = vadd.f32 %v1639_v1, %v1638_v63 }
 0x141   : > { %v1722_v6 = vadd.f32 %v1721_v3, %v1190_v61  ;;  %v1727_v7 = vadd.f32 %v1726_v49, %v1640_v4 }
 0x143   : > { %v1216_v8 = vadd.f32 %v1722_v6, %v1539_v5  ;;  %v1728_v9 = vadd.f32 %v1727_v7, %v1193_v2  ;;  %v1641_v10 = vpop.f32.mrb[20].mxu0 }
 0x144   : > { %v1642_v11 = vpop.f32.mrb[21].mxu0 }
 0x145   : > { %v1220_v12 = vmax.f32 %v1216_v8, 0.0  ;;  %v1217_v13 = vadd.f32 %v1728_v9, %v1539_v5  ;;  %v1643_v14 = vadd.f32 %v1642_v11, %v1641_v10  ;;  %v1644_v15 = vpop.f32.mrb[22].mxu0 }
 0x146   : > { %v1645_v16 = vpop.f32.mrb[23].mxu0 }
 0x147   : > { %1225 = vst.msk [vmem:[#allocation2] sm:$0xff] %vm1224_vm0, %v1220_v12  ;;  %v1221_v17 = vmax.f32 %v1217_v13, 0.0  ;;  %v1718_v18 = vadd.f32 %v1717_v55, %v1643_v14  ;;  %v1646_v19 = vadd.f32 %v1645_v16, %v1644_v15 }
 0x149   : > { %1226 = vst.msk [vmem:[#allocation2 + $0x8] sm:$0xff] %vm1224_vm0, %v1221_v17  ;;  %v1719_v20 = vadd.f32 %v1718_v18, %v1715_v59  ;;  %v1724_v21 = vadd.f32 %v1723_v57, %v1646_v19 }
 0x14b   : > { %v1218_v22 = vadd.f32 %v1719_v20, %v1539_v5  ;;  %v1725_v23 = vadd.f32 %v1724_v21, %v1716_v0 }
 0x14d   : > { %v1222_v24 = vmax.f32 %v1218_v22, 0.0  ;;  %v1219_v25 = vadd.f32 %v1725_v23, %v1539_v5 }
 0x14e   : > { %v1229_v26 = vld [vmem:[#allocation2] sm:$0xf] }
 0x14f   : > { %v1233_v27 = vpack.c.bf16 %v1229_v26, %v1229_v26  ;;  %1227 = vst.msk [vmem:[#allocation2 + $0x10] sm:$0xff] %vm1224_vm0, %v1222_v24  ;;  %v1223_v28 = vmax.f32 %v1219_v25, 0.0 }
 0x150   : > { %v1230_v29 = vld [vmem:[#allocation2 + $0x8] sm:$0xf] }
 0x151   : > { %1238 = vst.msk [vmem:[%s192_s7] sm:$0x3] %vm1237_vm1, %v1233_v27  ;;  %v1234_v30 = vpack.c.bf16 %v1230_v29, %v1230_v29 }
 0x152   : > { %1228 = vst.msk [vmem:[#allocation2 + $0x18] sm:$0xff] %vm1224_vm0, %v1223_v28 }
 0x153   : > { %1239 = vst.msk [vmem:[%s192_s7 + $0x2] sm:$0x3] %vm1237_vm1, %v1234_v30 }
 0x156   : > { %v1231_v31 = vld [vmem:[#allocation2 + $0x10] sm:$0xf] }
 0x157   : > { %v1235_v32 = vpack.c.bf16 %v1231_v31, %v1231_v31 }
 0x159   : > { %v1232_v33 = vld [vmem:[#allocation2 + $0x18] sm:$0xf]  ;;  %1240 = vst.msk [vmem:[%s192_s7 + $0x4] sm:$0x3] %vm1237_vm1, %v1235_v32 }
 0x15a   : > { %v1236_v34 = vpack.c.bf16 %v1232_v33, %v1232_v33 }
 0x15c   : > { %1241 = vst.msk [vmem:[%s192_s7 + $0x6] sm:$0x3] %vm1237_vm1, %v1236_v34 }
 0x15d PF: > { %s13_s14 = sadd.s32 1, %s1872_s14   ;;  %s2200_s12 = smov %s1868_s13 }
 0x15e   : > { %p10_p5 = scmp.ge.s32.totalorder %s13_s14, 4   ;;  %s2201_s13 = smov %s2203_s15 }
 0x160   :  { %12 = sbr.rel (!%p10_p5) target bundleno = 2 (0x2), region = 67 }

// kernel: _lambda_.15
= control target key start
LH: loop header
LB: loop body
LE: loop exit
PB: predicated region body
PF: predicated region fallthrough
CT: control target
= control target key end

     0   :  { %s1650_s12 = smov 0   ;;  %s1652_s13 = smov 0   ;;  %s1953_s0 = inlined_call_operand.vmem [shape: bf16[2,160,192], index: 0, kind: input, shape index: {}]   ;;  %s1954_s1 = inlined_call_operand.vmem [shape: bf16[3,192,128], index: 1, kind: input, shape index: {}]   ;;  %s1955_s2 = inlined_call_operand.vmem [shape: f32[1,128], index: 2, kind: input, shape index: {}]   ;;  %s1956_s3 = inlined_call_operand.vmem [shape: f32[2,8,8,128], index: 3, kind: output, shape index: {}]  }
   0x1   :  { %s1654_s14 = smov 0  }
   0x2 LB: > { %s25_s15 = sadd.s32 1, %s1623_s13  ;;  %p1293_p0 = scmp.ge.s32.totalorder %s1627_s14, 1  ;;  %s1627_s14 = sphi %s1654_s14, %s13_s14   ;;  %s1623_s13 = sphi %s1652_s13, %s1958_s13   ;;  %s1619_s12 = sphi %s1650_s12, %s1957_s12  }
   0x3   : > { %p27_p1 = scmp.ge.s32.totalorder %s25_s15, 2  ;;  %p151_p2 = scmp.lt.s32.totalorder %s1627_s14, 3 }
   0x5   : > { %s1960_s15 = smov (%p27_p1, %s25_s15), 0  ;;  %p152_p3 = pnand %p1293_p0, %p151_p2 }
   0x6   : > { %v1539_v0 = vld [vmem:[%s1954_s1 + $0x60] sm:$0xff] (!%p152_p3)   ;;  %v1629_v1 = vmov (!%p152_p3), 0   ;;  %v1541_v3 = vld [vmem:[%s1954_s1 + $0x68] sm:$0xff] (!%p152_p3)   ;;  %v1543_v5 = vld [vmem:[%s1954_s1 + $0x70] sm:$0xff] (!%p152_p3)   ;;  %p179_p4 = scmp.lt.s32.totalorder (!%p152_p3), %s1619_s12, 1  ;;  %vm432_vm0 = vcmask (!%p152_p3), 523264  }
   0x7   : > { %155 = sbr.rel (%p152_p3) target bundleno = 360 (0x168), region = 32  ;;  %457 = vmatprep.subr.bf16.mxu0 (!%p152_p3), %v1629_v1  ;;  %722 = vmatprep.subr.bf16.mxu1 (!%p152_p3), %v1629_v1  ;;  %v1540_v2 = vld [vmem:[%s1954_s1] sm:$0xff] (!%p152_p3)   ;;  %v1542_v4 = vld [vmem:[%s1954_s1 + $0x8] sm:$0xff] (!%p152_p3)   ;;  %v1544_v6 = vld [vmem:[%s1954_s1 + $0x10] sm:$0xff] (!%p152_p3)  }
   0x8   : > { %458 = vmatpush1.bf16.msra.mxu0 (!%p152_p3), %v1539_v0  ;;  %723 = vmatpush1.bf16.msra.mxu1 (!%p152_p3), %v1540_v2  ;;  %v1545_v7 = vld [vmem:[%s1954_s1 + $0x78] sm:$0xff] (!%p152_p3)   ;;  %v1547_v9 = vld [vmem:[%s1954_s1 + $0x80] sm:$0xff] (!%p152_p3)   ;;  %v1549_v11 = vld [vmem:[%s1954_s1 + $0x88] sm:$0xff] (!%p152_p3)  }
   0x9   : > { %459 = vmatprep.subr.bf16.mxu0 (!%p152_p3), %v1629_v1  ;;  %724 = vmatprep.subr.bf16.mxu1 (!%p152_p3), %v1629_v1  ;;  %v1546_v8 = vld [vmem:[%s1954_s1 + $0x18] sm:$0xff] (!%p152_p3)   ;;  %v1548_v10 = vld [vmem:[%s1954_s1 + $0x20] sm:$0xff] (!%p152_p3)   ;;  %v1550_v12 = vld [vmem:[%s1954_s1 + $0x28] sm:$0xff] (!%p152_p3)  }
   0xa   : > { %v1551_v13 = vld [vmem:[%s1954_s1 + $0x90] sm:$0xff] (!%p152_p3)   ;;  %v1553_v16 = vld [vmem:[%s1954_s1 + $0x98] sm:$0xff] (!%p152_p3)   ;;  %v1555_v19 = vld [vmem:[%s1954_s1 + $0xa0] sm:$0xff] (!%p152_p3)  }
   0xb   : > { %v1552_v14 = vld [vmem:[%s1954_s1 + $0x30] sm:$0xff] (!%p152_p3)   ;;  %v1554_v18 = vld [vmem:[%s1954_s1 + $0x38] sm:$0xff] (!%p152_p3)   ;;  %v1556_v20 = vld [vmem:[%s1954_s1 + $0x40] sm:$0xff] (!%p152_p3)  }
   0xc   : > { %460 = vmatpush1.bf16.msra.mxu0 (!%p152_p3), %v1541_v3  ;;  %725 = vmatpush1.bf16.msra.mxu1 (!%p152_p3), %v1542_v4  ;;  %v1557_v21 = vld [vmem:[%s1954_s1 + $0xa8] sm:$0xff] (!%p152_p3)   ;;  %v1559_v23 = vld [vmem:[%s1954_s1 + $0xb0] sm:$0xff] (!%p152_p3)   ;;  %v1561_v25 = vld [vmem:[%s1954_s1 + $0xb8] sm:$0xff] (!%p152_p3)  }
   0xd   : > { %461 = vmatprep.subr.bf16.mxu0 (!%p152_p3), %v1629_v1  ;;  %726 = vmatprep.subr.bf16.mxu1 (!%p152_p3), %v1629_v1  ;;  %v1558_v22 = vld [vmem:[%s1954_s1 + $0x48] sm:$0xff] (!%p152_p3)   ;;  %v1560_v24 = vld [vmem:[%s1954_s1 + $0x50] sm:$0xff] (!%p152_p3)   ;;  %v1562_v26 = vld [vmem:[%s1954_s1 + $0x58] sm:$0xff] (!%p152_p3)  }
   0xe   : > { %s1962_s12 = smov (!%p179_p4, %s1619_s12), 1  ;;  %v1569_v29 = vld [vmem:[%s1954_s1 + $0xc0] sm:$0xff]   ;;  %v1572_v31 = vld [vmem:[%s1954_s1 + $0xc8] sm:$0xff]   ;;  %v1574_v33 = vld [vmem:[%s1954_s1 + $0xd0] sm:$0xff]  }
   0xf   : > { %s1513_s11 = smul.u32 160, %s1962_s12  ;;  %v1578_v35 = vld [vmem:[%s1954_s1 + $0xd8] sm:$0xff]   ;;  %v1581_v38 = vld [vmem:[%s1954_s1 + $0xe0] sm:$0xff]   ;;  %v1583_v39 = vld [vmem:[%s1954_s1 + $0xe8] sm:$0xff]  }
  0x10   : > { %462 = vmatpush1.bf16.msra.mxu0 %v1543_v5  ;;  %727 = vmatpush1.bf16.msra.mxu1 %v1544_v6  ;;  %v1587_v42 = vld [vmem:[%s1954_s1 + $0xf0] sm:$0xff]   ;;  %v1590_v43 = vld [vmem:[%s1954_s1 + $0xf8] sm:$0xff]   ;;  %v1592_v46 = vld [vmem:[%s1954_s1 + $0x100] sm:$0xff]  }
  0x11   : > { %463 = vmatprep.subr.bf16.mxu0 %v1629_v1  ;;  %728 = vmatprep.subr.bf16.mxu1 %v1629_v1  ;;  %s1729_s22 = scalar_lea.vmem %s1953_s0, %s1513_s11  ;;  %v1596_v47 = vld [vmem:[%s1954_s1 + $0x108] sm:$0xff]   ;;  %v1599_v50 = vld [vmem:[%s1954_s1 + $0x110] sm:$0xff]   ;;  %v1601_v51 = vld [vmem:[%s1954_s1 + $0x118] sm:$0xff]  }
  0x12   : > { %v1565_v15 = vld [vmem:[%s1729_s22 + $0x14] ss:$8 sps:$4 sm:$0xff]   ;;  %v1568_v17 = vld [vmem:[%s1729_s22 + $0x4] ss:$8 sps:$4 sm:$0xff]   ;;  %v1563_v27 = vld [vmem:[%s1729_s22 + $0x10] ss:$8 sps:$4 sm:$0xff]  }
  0x13   : > { %1365 = vmatprep.mubr.msk.bf16.mxu0 %vm432_vm0, %v1565_v15  ;;  %1401 = vmatprep.mubr.msk.bf16.mxu1 %vm432_vm0, %v1568_v17  ;;  %v1566_v28 = vld [vmem:[%s1729_s22] ss:$8 sps:$4 sm:$0xff]   ;;  %v1788_v30 = vld [vmem:[%s1729_s22 + $0x24] ss:$8 sps:$4 sm:$0xff]   ;;  %v1806_v34 = vld [vmem:[%s1729_s22 + $0x34] ss:$8 sps:$4 sm:$0xff]  }
  0x14   : > { %464 = vmatpush1.bf16.msra.mxu0 %v1545_v7  ;;  %729 = vmatpush1.bf16.msra.mxu1 %v1546_v8  ;;  %v1799_v32 = vld [vmem:[%s1729_s22 + $0x20] ss:$8 sps:$4 sm:$0xff]   ;;  %v1819_v36 = vld [vmem:[%s1729_s22 + $0x30] ss:$8 sps:$4 sm:$0xff]   ;;  %v1823_v37 = vld [vmem:[%s1729_s22 + $0x44] ss:$8 sps:$4 sm:$0xff]  }
  0x15   : > { %465 = vmatprep.subr.bf16.mxu0 %v1629_v1  ;;  %730 = vmatprep.subr.bf16.mxu1 %v1629_v1  ;;  %v1841_v40 = vld [vmem:[%s1729_s22 + $0x40] ss:$8 sps:$4 sm:$0xff]   ;;  %v1845_v41 = vld [vmem:[%s1729_s22 + $0x54] ss:$8 sps:$4 sm:$0xff]   ;;  %v1586_v44 = vld [vmem:[%s1729_s22 + $0x50] ss:$8 sps:$4 sm:$0xff]  }
  0x16   : > { %v1588_v45 = vld [vmem:[%s1729_s22 + $0x64] ss:$8 sps:$4 sm:$0xff]   ;;  %v1591_v48 = vld [vmem:[%s1729_s22 + $0x60] ss:$8 sps:$4 sm:$0xff]   ;;  %v1593_v49 = vld [vmem:[%s1729_s22 + $0x74] ss:$8 sps:$4 sm:$0xff]  }
  0x17   : > { %v1595_v52 = vld [vmem:[%s1729_s22 + $0x70] ss:$8 sps:$4 sm:$0xff]   ;;  %v1597_v53 = vld [vmem:[%s1729_s22 + $0x84] ss:$8 sps:$4 sm:$0xff]   ;;  %v1600_v54 = vld [vmem:[%s1729_s22 + $0x80] ss:$8 sps:$4 sm:$0xff]  }
  0x18   : > { %466 = vmatpush1.bf16.msra.mxu0 %v1547_v9  ;;  %731 = vmatpush1.bf16.msra.mxu1 %v1548_v10  ;;  %v1602_v55 = vld [vmem:[%s1729_s22 + $0x94] ss:$8 sps:$4 sm:$0xff]   ;;  %v1604_v56 = vld [vmem:[%s1729_s22 + $0x90] ss:$8 sps:$4 sm:$0xff]   ;;  %s1488_s22 = sshll.u32 %s1962_s12, 6 }
  0x19   : > { %467 = vmatprep.subr.bf16.mxu0 %v1629_v1  ;;  %732 = vmatprep.subr.bf16.mxu1 %v1629_v1  ;;  %s1931_s29 = scalar_lea.vmem %s1956_s3, %s1488_s22 }
  0x1c   : > { %468 = vmatpush1.bf16.msra.mxu0 %v1549_v11  ;;  %733 = vmatpush1.bf16.msra.mxu1 %v1550_v12 }
  0x1d   : > { %469 = vmatprep.subr.bf16.mxu0 %v1629_v1  ;;  %734 = vmatprep.subr.bf16.mxu1 %v1629_v1 }
  0x20   : > { %470 = vmatpush1.bf16.msra.mxu0 %v1551_v13  ;;  %735 = vmatpush1.bf16.msra.mxu1 %v1552_v14 }
  0x21   : > { %471 = vmatprep.subr.bf16.mxu0 %v1629_v1  ;;  %736 = vmatprep.subr.bf16.mxu1 %v1629_v1 }
  0x24   : > { %472 = vmatpush1.bf16.msra.mxu0 %v1553_v16  ;;  %737 = vmatpush1.bf16.msra.mxu1 %v1554_v18 }
  0x25   : > { %473 = vmatprep.subr.bf16.mxu0 %v1629_v1  ;;  %738 = vmatprep.subr.bf16.mxu1 %v1629_v1 }
  0x28   : > { %474 = vmatpush1.bf16.msra.mxu0 %v1555_v19  ;;  %739 = vmatpush1.bf16.msra.mxu1 %v1556_v20 }
  0x29   : > { %475 = vmatprep.subr.bf16.mxu0 %v1629_v1  ;;  %740 = vmatprep.subr.bf16.mxu1 %v1629_v1 }
  0x2c   : > { %476 = vmatpush1.bf16.msra.mxu0 %v1557_v21  ;;  %741 = vmatpush1.bf16.msra.mxu1 %v1558_v22 }
  0x2d   : > { %477 = vmatprep.subr.bf16.mxu0 %v1629_v1  ;;  %742 = vmatprep.subr.bf16.mxu1 %v1629_v1 }
  0x30   : > { %478 = vmatpush1.bf16.msra.mxu0 %v1559_v23  ;;  %743 = vmatpush1.bf16.msra.mxu1 %v1560_v24 }
  0x31   : > { %479 = vmatprep.subr.bf16.mxu0 %v1629_v1  ;;  %744 = vmatprep.subr.bf16.mxu1 %v1629_v1 }
  0x34   : > { %480 = vmatpush1.bf16.msra.mxu0 %v1561_v25  ;;  %745 = vmatpush1.bf16.msra.mxu1 %v1562_v26 }
  0x35   : > { %1034 = vmatprep.subr.bf16.mxu0 %v1629_v1  ;;  %1489 = vmatprep.subr.bf16.mxu1 %v1629_v1 }
  0x37   : > { %490 = vmatmul.mubr.bf16.vlgmr.msra.gmra.mrb[0].mxu0 %v1563_v27  ;;  %755 = vmatmul.mubr.bf16.vlgmr.msra.gmra.mrb[0].mxu1 %v1566_v28 }
  0x38   : > { %1035 = vmatpush1.bf16.msra.mxu0 %v1569_v29  ;;  %1501 = vmatpush1.bf16.msra.mxu1 %v1569_v29 }
  0x39   : > { %1036 = vmatprep.subr.bf16.mxu0 %v1629_v1  ;;  %1490 = vmatprep.subr.bf16.mxu1 %v1629_v1 }
  0x3a   : > { %1366 = vmatprep.mubr.msk.bf16.mxu0 %vm432_vm0, %v1788_v30  ;;  %1402 = vmatprep.mubr.msk.bf16.mxu1 %vm432_vm0, %v1565_v15 }
  0x3c   : > { %1037 = vmatpush1.bf16.msra.mxu0 %v1572_v31  ;;  %1502 = vmatpush1.bf16.msra.mxu1 %v1572_v31 }
  0x3d   : > { %1038 = vmatprep.subr.bf16.mxu0 %v1629_v1  ;;  %1491 = vmatprep.subr.bf16.mxu1 %v1629_v1 }
  0x3f   : > { %498 = vmatmul.mubr.bf16.gmra.mrb[4].mxu0 %v1799_v32  ;;  %763 = vmatmul.mubr.bf16.gmra.mrb[4].mxu1 %v1563_v27 }
  0x40   : > { %1039 = vmatpush1.bf16.msra.mxu0 %v1574_v33  ;;  %1503 = vmatpush1.bf16.msra.mxu1 %v1574_v33 }
  0x41   : > { %1367 = vmatprep.mubr.msk.bf16.mxu0 %vm432_vm0, %v1806_v34  ;;  %1403 = vmatprep.mubr.msk.bf16.mxu1 %vm432_vm0, %v1788_v30 }
  0x42   : > { %1040 = vmatprep.subr.bf16.mxu0 %v1629_v1  ;;  %1492 = vmatprep.subr.bf16.mxu1 %v1629_v1 }
  0x44   : > { %1041 = vmatpush1.bf16.msra.mxu0 %v1578_v35  ;;  %1504 = vmatpush1.bf16.msra.mxu1 %v1578_v35 }
  0x45   : > { %1042 = vmatprep.subr.bf16.mxu0 %v1629_v1  ;;  %1493 = vmatprep.subr.bf16.mxu1 %v1629_v1 }
  0x47   : > { %506 = vmatmul.mubr.bf16.gmra.mrb[8].mxu0 %v1819_v36  ;;  %771 = vmatmul.mubr.bf16.gmra.mrb[8].mxu1 %v1799_v32 }
  0x48   : > { %1368 = vmatprep.mubr.msk.bf16.mxu0 %vm432_vm0, %v1823_v37  ;;  %1404 = vmatprep.mubr.msk.bf16.mxu1 %vm432_vm0, %v1806_v34 }
  0x49   : > { %1043 = vmatpush1.bf16.msra.mxu0 %v1581_v38  ;;  %1505 = vmatpush1.bf16.msra.mxu1 %v1581_v38 }
  0x4a   : > { %1044 = vmatprep.subr.bf16.mxu0 %v1629_v1  ;;  %1494 = vmatprep.subr.bf16.mxu1 %v1629_v1 }
  0x4d   : > { %1045 = vmatpush1.bf16.msra.mxu0 %v1583_v39  ;;  %1506 = vmatpush1.bf16.msra.mxu1 %v1583_v39 }
  0x4e   : > { %1046 = vmatprep.subr.bf16.mxu0 %v1629_v1  ;;  %1495 = vmatprep.subr.bf16.mxu1 %v1629_v1 }
  0x4f   : > { %514 = vmatmul.mubr.bf16.gmra.mrb[12].mxu0 %v1841_v40  ;;  %779 = vmatmul.mubr.bf16.gmra.mrb[12].mxu1 %v1819_v36 }
  0x50   : > { %1369 = vmatprep.mubr.msk.bf16.mxu0 %vm432_vm0, %v1845_v41  ;;  %1405 = vmatprep.mubr.msk.bf16.mxu1 %vm432_vm0, %v1823_v37 }
  0x51   : > { %1047 = vmatpush1.bf16.msra.mxu0 %v1587_v42  ;;  %1507 = vmatpush1.bf16.msra.mxu1 %v1587_v42 }
  0x52   : > { %1048 = vmatprep.subr.bf16.mxu0 %v1629_v1  ;;  %1496 = vmatprep.subr.bf16.mxu1 %v1629_v1 }
  0x55   : > { %1049 = vmatpush1.bf16.msra.mxu0 %v1590_v43  ;;  %1508 = vmatpush1.bf16.msra.mxu1 %v1590_v43 }
  0x56   : > { %1050 = vmatprep.subr.bf16.mxu0 %v1629_v1  ;;  %1497 = vmatprep.subr.bf16.mxu1 %v1629_v1 }
  0x57   : > { %522 = vmatmul.mubr.bf16.gmra.mrb[16].mxu0 %v1586_v44  ;;  %787 = vmatmul.mubr.bf16.gmra.mrb[16].mxu1 %v1841_v40 }
  0x58   : > { %1370 = vmatprep.mubr.msk.bf16.mxu0 %vm432_vm0, %v1588_v45  ;;  %1406 = vmatprep.mubr.msk.bf16.mxu1 %vm432_vm0, %v1845_v41 }
  0x59   : > { %1051 = vmatpush1.bf16.msra.mxu0 %v1592_v46  ;;  %1509 = vmatpush1.bf16.msra.mxu1 %v1592_v46 }
  0x5a   : > { %1052 = vmatprep.subr.bf16.mxu0 %v1629_v1  ;;  %1498 = vmatprep.subr.bf16.mxu1 %v1629_v1 }
  0x5d   : > { %1053 = vmatpush1.bf16.msra.mxu0 %v1596_v47  ;;  %1510 = vmatpush1.bf16.msra.mxu1 %v1596_v47 }
  0x5e   : > { %1054 = vmatprep.subr.bf16.mxu0 %v1629_v1  ;;  %1499 = vmatprep.subr.bf16.mxu1 %v1629_v1 }
  0x5f   : > { %530 = vmatmul.mubr.bf16.gmra.mrb[20].mxu0 %v1591_v48  ;;  %795 = vmatmul.mubr.bf16.gmra.mrb[20].mxu1 %v1586_v44 }
  0x60   : > { %1371 = vmatprep.mubr.msk.bf16.mxu0 %vm432_vm0, %v1593_v49  ;;  %1407 = vmatprep.mubr.msk.bf16.mxu1 %vm432_vm0, %v1588_v45 }
  0x61   : > { %1055 = vmatpush1.bf16.msra.mxu0 %v1599_v50  ;;  %1511 = vmatpush1.bf16.msra.mxu1 %v1599_v50 }
  0x62   : > { %1056 = vmatprep.subr.bf16.mxu0 %v1629_v1  ;;  %1500 = vmatprep.subr.bf16.mxu1 %v1629_v1 }
  0x65   : > { %1057 = vmatpush1.bf16.msra.mxu0 %v1601_v51  ;;  %1512 = vmatpush1.bf16.msra.mxu1 %v1601_v51 }
  0x67   : > { %538 = vmatmul.mubr.bf16.gmra.mrb[24].mxu0 %v1595_v52  ;;  %803 = vmatmul.mubr.bf16.gmra.mrb[24].mxu1 %v1591_v48 }
  0x68   : > { %1372 = vmatprep.mubr.msk.bf16.mxu0 %vm432_vm0, %v1597_v53  ;;  %1408 = vmatprep.mubr.msk.bf16.mxu1 %vm432_vm0, %v1593_v49 }
  0x6f   : > { %546 = vmatmul.mubr.bf16.gmra.mrb[28].mxu0 %v1600_v54  ;;  %811 = vmatmul.mubr.bf16.gmra.mrb[28].mxu1 %v1595_v52 }
  0x70   : > { %1477 = vmatprep.mubr.msk.bf16.mxu0 %vm432_vm0, %v1788_v30  ;;  %1481 = vmatprep.mubr.msk.bf16.mxu1 %vm432_vm0, %v1588_v45 }
  0x77   : > { %1067 = vmatmul.mubr.bf16.vlgmr.msra.gmra.mrb[32].mxu0 %v1799_v32  ;;  %1099 = vmatmul.mubr.bf16.vlgmr.msra.gmra.mrb[32].mxu1 %v1591_v48 }
  0x78   : > { %1478 = vmatprep.mubr.msk.bf16.mxu0 %vm432_vm0, %v1806_v34  ;;  %1482 = vmatprep.mubr.msk.bf16.mxu1 %vm432_vm0, %v1593_v49 }
  0x7f   : > { %1075 = vmatmul.mubr.bf16.gmra.mrb[36].mxu0 %v1819_v36  ;;  %1107 = vmatmul.mubr.bf16.gmra.mrb[36].mxu1 %v1595_v52 }
  0x80   : > { %1479 = vmatprep.mubr.msk.bf16.mxu0 %vm432_vm0, %v1823_v37  ;;  %1483 = vmatprep.mubr.msk.bf16.mxu1 %vm432_vm0, %v1597_v53 }
  0x87   : > { %1083 = vmatmul.mubr.bf16.gmra.mrb[40].mxu0 %v1841_v40  ;;  %1115 = vmatmul.mubr.bf16.gmra.mrb[40].mxu1 %v1600_v54 }
  0x88   : > { %1480 = vmatprep.mubr.msk.bf16.mxu0 %vm432_vm0, %v1845_v41  ;;  %1484 = vmatprep.mubr.msk.bf16.mxu1 %vm432_vm0, %v1602_v55 }
  0x8f   : > { %1091 = vmatmul.mubr.bf16.gmra.mrb[44].mxu0 %v1586_v44  ;;  %1123 = vmatmul.mubr.bf16.gmra.mrb[44].mxu1 %v1604_v56 }
 0x10a   : > { %v491_v57 = vpop.f32.mrb[0].mxu0  ;;  %v756_v58 = vpop.f32.mrb[0].mxu1 }
 0x10b   : > { %v493_v59 = vpop.f32.mrb[1].mxu0  ;;  %v1915_v60 = vadd.f32 %v756_v58, %v491_v57  ;;  %v758_v61 = vpop.f32.mrb[1].mxu1 }
 0x10c   : > { %v494_v62 = vpop.f32.mrb[2].mxu0  ;;  %v759_v63 = vpop.f32.mrb[2].mxu1 }
 0x10d   : > { %v496_v0 = vpop.f32.mrb[3].mxu0  ;;  %v761_v1 = vpop.f32.mrb[3].mxu1 }
 0x112   : > { %v499_v2 = vpop.f32.mrb[4].mxu0  ;;  %v764_v3 = vpop.f32.mrb[4].mxu1 }
 0x113   : > { %v501_v4 = vpop.f32.mrb[5].mxu0  ;;  %v1917_v5 = vadd.f32 %v764_v3, %v499_v2  ;;  %v766_v6 = vpop.f32.mrb[5].mxu1  ;;  %v1485_v3 = vld [vmem:[%s1955_s2] ss:$0 sm:$0xff] }
 0x114   : > { %v502_v7 = vpop.f32.mrb[6].mxu0  ;;  %v767_v8 = vpop.f32.mrb[6].mxu1 }
 0x115   : > { %v504_v9 = vpop.f32.mrb[7].mxu0  ;;  %v769_v10 = vpop.f32.mrb[7].mxu1 }
 0x11a   : > { %v507_v11 = vpop.f32.mrb[8].mxu0  ;;  %v772_v12 = vpop.f32.mrb[8].mxu1 }
 0x11b   : > { %v509_v13 = vpop.f32.mrb[9].mxu0  ;;  %v1919_v14 = vadd.f32 %v772_v12, %v507_v11  ;;  %v774_v15 = vpop.f32.mrb[9].mxu1 }
 0x11c   : > { %v510_v16 = vpop.f32.mrb[10].mxu0  ;;  %v775_v17 = vpop.f32.mrb[10].mxu1 }
 0x11d   : > { %v512_v18 = vpop.f32.mrb[11].mxu0  ;;  %v777_v19 = vpop.f32.mrb[11].mxu1 }
 0x122   : > { %v515_v20 = vpop.f32.mrb[12].mxu0  ;;  %v780_v21 = vpop.f32.mrb[12].mxu1 }
 0x123   : > { %v517_v22 = vpop.f32.mrb[13].mxu0  ;;  %v1921_v23 = vadd.f32 %v780_v21, %v515_v20  ;;  %v782_v24 = vpop.f32.mrb[13].mxu1 }
 0x124   : > { %v518_v25 = vpop.f32.mrb[14].mxu0  ;;  %v783_v26 = vpop.f32.mrb[14].mxu1 }
 0x125   : > { %v520_v27 = vpop.f32.mrb[15].mxu0  ;;  %v785_v28 = vpop.f32.mrb[15].mxu1 }
 0x12a   : > { %v523_v29 = vpop.f32.mrb[16].mxu0  ;;  %v788_v30 = vpop.f32.mrb[16].mxu1 }
 0x12b   : > { %v525_v31 = vpop.f32.mrb[17].mxu0  ;;  %v789_v32 = vadd.f32 %v788_v30, %v523_v29  ;;  %v790_v33 = vpop.f32.mrb[17].mxu1 }
 0x12c   : > { %v526_v34 = vpop.f32.mrb[18].mxu0  ;;  %v791_v35 = vpop.f32.mrb[18].mxu1 }
 0x12d   : > { %v528_v36 = vpop.f32.mrb[19].mxu0  ;;  %v793_v37 = vpop.f32.mrb[19].mxu1 }
 0x132   : > { %v531_v38 = vpop.f32.mrb[20].mxu0  ;;  %v796_v39 = vpop.f32.mrb[20].mxu1 }
 0x133   : > { %v533_v40 = vpop.f32.mrb[21].mxu0  ;;  %v797_v41 = vadd.f32 %v796_v39, %v531_v38  ;;  %v798_v42 = vpop.f32.mrb[21].mxu1 }
 0x134   : > { %v534_v43 = vpop.f32.mrb[22].mxu0  ;;  %v799_v44 = vpop.f32.mrb[22].mxu1 }
 0x135   : > { %v536_v45 = vpop.f32.mrb[23].mxu0  ;;  %v801_v46 = vpop.f32.mrb[23].mxu1 }
 0x13a   : > { %v539_v47 = vpop.f32.mrb[24].mxu0  ;;  %v804_v48 = vpop.f32.mrb[24].mxu1 }
 0x13b   : > { %v541_v49 = vpop.f32.mrb[25].mxu0  ;;  %v805_v50 = vadd.f32 %v804_v48, %v539_v47  ;;  %v806_v51 = vpop.f32.mrb[25].mxu1 }
 0x13c   : > { %v542_v52 = vpop.f32.mrb[26].mxu0  ;;  %v807_v53 = vpop.f32.mrb[26].mxu1 }
 0x13d   : > { %v544_v54 = vpop.f32.mrb[27].mxu0  ;;  %v809_v55 = vpop.f32.mrb[27].mxu1 }
 0x142   : > { %v547_v56 = vpop.f32.mrb[28].mxu0  ;;  %v812_v57 = vpop.f32.mrb[28].mxu1 }
 0x143   : > { %v549_v58 = vpop.f32.mrb[29].mxu0  ;;  %v813_v59 = vadd.f32 %v812_v57, %v547_v56  ;;  %v814_v61 = vpop.f32.mrb[29].mxu1 }
 0x144   : > { %v550_v62 = vpop.f32.mrb[30].mxu0  ;;  %v815_v63 = vpop.f32.mrb[30].mxu1 }
 0x145   : > { %v552_v0 = vpop.f32.mrb[31].mxu0  ;;  %v817_v1 = vpop.f32.mrb[31].mxu1 }
 0x14a   : > { %v1068_v2 = vpop.f32.mrb[32].mxu0  ;;  %v1100_v6 = vpop.f32.mrb[32].mxu1 }
 0x14b   : > { %v1131_v4 = vadd.f32 %v1068_v2, %v1915_v60  ;;  %v1070_v7 = vpop.f32.mrb[33].mxu0  ;;  %v1139_v8 = vadd.f32 %v1100_v6, %v789_v32  ;;  %v1102_v9 = vpop.f32.mrb[33].mxu1 }
 0x14c   : > { %v1071_v10 = vpop.f32.mrb[34].mxu0  ;;  %v1103_v12 = vpop.f32.mrb[34].mxu1 }
 0x14d   : > { %v1154_v11 = vadd.f32 %v1485_v3, %v1131_v4  ;;  %v1073_v13 = vpop.f32.mrb[35].mxu0  ;;  %v1162_v15 = vadd.f32 %v1485_v3, %v1139_v8  ;;  %v1105_v16 = vpop.f32.mrb[35].mxu1 }
 0x14f   : > { %1194 = vst [vmem:[%s1931_s29] sm:$0xff] %v1154_v11  ;;  %1198 = vst [vmem:[%s1931_s29 + $0x20] sm:$0xff] %v1162_v15 }
 0x152   : > { %v1076_v60 = vpop.f32.mrb[36].mxu0  ;;  %v1108_v18 = vpop.f32.mrb[36].mxu1 }
 0x153   : > { %v1133_v17 = vadd.f32 %v1076_v60, %v1917_v5  ;;  %v1078_v19 = vpop.f32.mrb[37].mxu0  ;;  %v1141_v20 = vadd.f32 %v1108_v18, %v797_v41  ;;  %v1110_v21 = vpop.f32.mrb[37].mxu1 }
 0x154   : > { %v1079_v22 = vpop.f32.mrb[38].mxu0  ;;  %v1111_v25 = vpop.f32.mrb[38].mxu1 }
 0x155   : > { %v1156_v24 = vadd.f32 %v1485_v3, %v1133_v17  ;;  %v1081_v26 = vpop.f32.mrb[39].mxu0  ;;  %v1164_v27 = vadd.f32 %v1485_v3, %v1141_v20  ;;  %v1113_v28 = vpop.f32.mrb[39].mxu1 }
 0x157   : > { %1195 = vst [vmem:[%s1931_s29 + $0x8] sm:$0xff] %v1156_v24  ;;  %1199 = vst [vmem:[%s1931_s29 + $0x28] sm:$0xff] %v1164_v27 }
 0x15a   : > { %v1084_v29 = vpop.f32.mrb[40].mxu0  ;;  %v1116_v31 = vpop.f32.mrb[40].mxu1 }
 0x15b   : > { %v1135_v30 = vadd.f32 %v1084_v29, %v1919_v14  ;;  %v1086_v32 = vpop.f32.mrb[41].mxu0  ;;  %v1143_v5 = vadd.f32 %v1116_v31, %v805_v50  ;;  %v1118_v33 = vpop.f32.mrb[41].mxu1 }
 0x15c   : > { %v1087_v34 = vpop.f32.mrb[42].mxu0  ;;  %v1119_v36 = vpop.f32.mrb[42].mxu1 }
 0x15d   : > { %v1158_v35 = vadd.f32 %v1485_v3, %v1135_v30  ;;  %v1089_v37 = vpop.f32.mrb[43].mxu0  ;;  %v1166_v38 = vadd.f32 %v1485_v3, %v1143_v5  ;;  %v1121_v39 = vpop.f32.mrb[43].mxu1 }
 0x15f   : > { %1196 = vst [vmem:[%s1931_s29 + $0x10] sm:$0xff] %v1158_v35  ;;  %1200 = vst [vmem:[%s1931_s29 + $0x30] sm:$0xff] %v1166_v38 }
 0x162   : > { %v1092_v40 = vpop.f32.mrb[44].mxu0  ;;  %v1124_v42 = vpop.f32.mrb[44].mxu1 }
 0x163   : > { %v1137_v41 = vadd.f32 %v1092_v40, %v1921_v23  ;;  %v1094_v43 = vpop.f32.mrb[45].mxu0  ;;  %v1145_v14 = vadd.f32 %v1124_v42, %v813_v59  ;;  %v1126_v44 = vpop.f32.mrb[45].mxu1 }
 0x164   : > { %v1095_v45 = vpop.f32.mrb[46].mxu0  ;;  %v1127_v47 = vpop.f32.mrb[46].mxu1 }
 0x165   : > { %v1160_v46 = vadd.f32 %v1485_v3, %v1137_v41  ;;  %v1097_v48 = vpop.f32.mrb[47].mxu0  ;;  %v1168_v49 = vadd.f32 %v1485_v3, %v1145_v14  ;;  %v1129_v50 = vpop.f32.mrb[47].mxu1 }
 0x167   : > { %1197 = vst [vmem:[%s1931_s29 + $0x18] sm:$0xff] %v1160_v46  ;;  %1201 = vst [vmem:[%s1931_s29 + $0x38] sm:$0xff] %v1168_v49 }
 0x168 PF: > { %s13_s14 = sadd.s32 1, %s1627_s14   ;;  %s1957_s12 = smov %s1623_s13 }
 0x169   : > { %p10_p5 = scmp.ge.s32.totalorder %s13_s14, 4   ;;  %s1958_s13 = smov %s1960_s15 }
 0x16b   :  { %12 = sbr.rel (!%p10_p5) target bundleno = 2 (0x2), region = 67 }

</bundles_post_ra>
